<compile_context>
chip_gen: v7x
topology: tpu7x:2x2x1
jax: 0.10.0
libtpu: 0.0.40
codegen_flags: <defaults>
</compile_context>

<pallas_src>
import functools

import jax
import jax.numpy as jnp
from jax import lax
from jax.experimental import pallas as pl
from jax.experimental.pallas import tpu as pltpu


def _round_up(a, m):
    return (a + m - 1) // m * m


# ---------------------------------------------------------------------------
# Fused GEMM + bias + ReLU kernel (used for both conv layers via im2col)
# ---------------------------------------------------------------------------
def _gemm_bias_relu_kernel(x_ref, w_ref, b_ref, o_ref):
    acc = jnp.dot(x_ref[...], w_ref[...], preferred_element_type=jnp.float32)
    o_ref[...] = jnp.maximum(acc + b_ref[...], 0.0)


def gemm_bias_relu(x, w, b, *, tile_m=256):
    """relu(x @ w + b). x:(M,K) f32, w:(K,N) f32, b:(N,) f32 -> (M,N) f32."""
    M, K = x.shape
    N = w.shape[1]
    Mp = _round_up(M, tile_m)
    if Mp != M:
        x = jnp.pad(x, ((0, Mp - M), (0, 0)))

    cost = pl.CostEstimate(
        flops=2 * Mp * K * N,
        transcendentals=0,
        bytes_accessed=4 * (Mp * K + K * N + N + Mp * N),
    )
    out = pl.pallas_call(
        _gemm_bias_relu_kernel,
        out_shape=jax.ShapeDtypeStruct((Mp, N), jnp.float32),
        grid=(Mp // tile_m,),
        in_specs=[
            pl.BlockSpec((tile_m, K), lambda i: (i, 0)),   # row tiles of im2col
            pl.BlockSpec((K, N), lambda i: (0, 0)),        # weight stays resident
            pl.BlockSpec((1, N), lambda i: (0, 0)),        # bias stays resident
        ],
        out_specs=pl.BlockSpec((tile_m, N), lambda i: (i, 0)),
        compiler_params=pltpu.CompilerParams(dimension_semantics=("parallel",)),
        cost_estimate=cost,
    )(x, w, b.reshape(1, N))
    return out[:M]


def conv2d_relu(x_nhwc, w_hwio, b):
    """VALID conv, stride 1, fused bias + ReLU. NHWC in, NHWC out (f32)."""
    B, H, W, Cin = x_nhwc.shape
    KH, KW, _, Cout = w_hwio.shape
    Ho, Wo = H - KH + 1, W - KW + 1
    # im2col: wrapper-side slicing/stacking (layout plumbing, no compute)
    patches = [x_nhwc[:, i:i + Ho, j:j + Wo, :] for i in range(KH) for j in range(KW)]
    x_col = jnp.stack(patches, axis=3).reshape(B * Ho * Wo, KH * KW * Cin)
    w_col = w_hwio.reshape(KH * KW * Cin, Cout)
    y = gemm_bias_relu(x_col, w_col, b)
    return y.reshape(B, Ho, Wo, Cout)


# ---------------------------------------------------------------------------
# 2x2 max-pool kernel (elementwise max of the four window members)
# ---------------------------------------------------------------------------
def _max4_kernel(a_ref, b_ref, c_ref, d_ref, o_ref):
    o_ref[...] = jnp.maximum(jnp.maximum(a_ref[...], b_ref[...]),
                             jnp.maximum(c_ref[...], d_ref[...]))


def maxpool_2x2(y_nhwc):
    B, H, W, C = y_nhwc.shape
    Hp, Wp = H // 2, W // 2
    M = B * Hp * Wp
    # strided-slice plumbing done wrapper-side; the kernel is pure VPU max
    a = y_nhwc[:, 0::2, 0::2, :].reshape(M, C)
    b = y_nhwc[:, 0::2, 1::2, :].reshape(M, C)
    c = y_nhwc[:, 1::2, 0::2, :].reshape(M, C)
    d = y_nhwc[:, 1::2, 1::2, :].reshape(M, C)
    out = pl.pallas_call(
        _max4_kernel,
        out_shape=jax.ShapeDtypeStruct((M, C), jnp.float32),
        grid=(1,),
        in_specs=[pl.BlockSpec((M, C), lambda i: (0, 0))] * 4,
        out_specs=pl.BlockSpec((M, C), lambda i: (0, 0)),
    )(a, b, c, d)
    return out.reshape(B, Hp, Wp, C)


# ---------------------------------------------------------------------------
# Fused classifier head: fc1 -> ReLU -> dropout(id) -> fc2 -> ReLU -> LogSoftmax
# ---------------------------------------------------------------------------
def _head_kernel(num_classes, x_ref, w1_ref, b1_ref, w2_ref, b2_ref,
                 out1_ref, out2_ref):
    # fc1: bf16 inputs, f32 accumulate
    h = jnp.dot(x_ref[...], w1_ref[...],
                preferred_element_type=jnp.float32) + b1_ref[...]
    h = jnp.maximum(h, 0.0)
    # Dropout: identity in eval mode.
    # TODO(synk): training-mode dropout (stateful PRNG mask) not implemented; eval semantics used.
    logits = jnp.dot(h.astype(jnp.bfloat16), w2_ref[...],
                     preferred_element_type=jnp.float32) + b2_ref[...]
    out1 = jnp.maximum(logits, 0.0)            # out1 = relu(fc2(x))
    out1_ref[...] = out1

    # LogSoftmax over the real class lanes; padded lanes masked to -inf so the
    # zero-padded fc2 columns cannot corrupt the max / lse.
    lane = lax.broadcasted_iota(jnp.int32, out1.shape, 1)
    masked = jnp.where(lane < num_classes, out1, -jnp.inf)
    m = jnp.max(masked, axis=-1, keepdims=True)
    z = masked - m
    lse = jnp.log(jnp.sum(jnp.exp(z), axis=-1, keepdims=True))
    out2_ref[...] = z - lse


def mlp_head(x2d, w1, b1, w2, b2, num_classes):
    """x2d:(B, Din) f32 -> (out1, out2), each (B, num_classes) f32."""
    B, Din = x2d.shape
    Dh = w1.shape[1]
    DOUT_PAD = 128                                # lane-dense output stores

    tile_m = 128 if B >= 128 else _round_up(B, 8)  # fill sublanes / MXU rows
    Bp = _round_up(B, tile_m)

    # bf16 at the boundary (halves weight HBM traffic, native MXU path);
    # biases / accumulation / softmax stay f32.
    x_p = jnp.pad(x2d, ((0, Bp - B), (0, 0))).astype(jnp.bfloat16)
    w1_b = w1.astype(jnp.bfloat16)
    b1_r = b1.reshape(1, Dh).astype(jnp.float32)
    w2_p = jnp.pad(w2, ((0, 0), (0, DOUT_PAD - num_classes))).astype(jnp.bfloat16)
    b2_p = jnp.pad(b2, (0, DOUT_PAD - num_classes)).reshape(1, DOUT_PAD)
    b2_p = b2_p.astype(jnp.float32)

    cost = pl.CostEstimate(
        flops=2 * Bp * (Din * Dh + Dh * DOUT_PAD),
        transcendentals=Bp * DOUT_PAD,
        bytes_accessed=(2 * (Bp * Din + Din * Dh + Dh * DOUT_PAD)
                        + 4 * (Dh + DOUT_PAD) + 2 * 4 * Bp * DOUT_PAD),
    )

    out1_p, out2_p = pl.pallas_call(
        functools.partial(_head_kernel, num_classes),
        out_shape=(jax.ShapeDtypeStruct((Bp, DOUT_PAD), jnp.float32),
                   jax.ShapeDtypeStruct((Bp, DOUT_PAD), jnp.float32)),
        grid=(Bp // tile_m,),
        in_specs=[
            pl.BlockSpec((tile_m, Din), lambda i: (i, 0)),   # batch tiles
            pl.BlockSpec((Din, Dh), lambda i: (0, 0)),       # w1 resident
            pl.BlockSpec((1, Dh), lambda i: (0, 0)),
            pl.BlockSpec((Dh, DOUT_PAD), lambda i: (0, 0)),  # w2 resident
            pl.BlockSpec((1, DOUT_PAD), lambda i: (0, 0)),
        ],
        out_specs=(pl.BlockSpec((tile_m, DOUT_PAD), lambda i: (i, 0)),
                   pl.BlockSpec((tile_m, DOUT_PAD), lambda i: (i, 0))),
        compiler_params=pltpu.CompilerParams(dimension_semantics=("parallel",)),
        cost_estimate=cost,
    )(x_p, w1_b, b1_r, w2_p, b2_p)
    return out1_p[:B, :num_classes], out2_p[:B, :num_classes]


# ---------------------------------------------------------------------------
# Full CNNLeaf forward
# ---------------------------------------------------------------------------
def cnnleaf_forward(x_nchw, params):
    (wc1, bc1, wc2, bc2, wf1, bf1, wf2, bf2) = params
    num_classes = wf2.shape[1]
    B = x_nchw.shape[0]

    x_nhwc = jnp.transpose(x_nchw, (0, 2, 3, 1))          # NCHW -> NHWC
    y = conv2d_relu(x_nhwc, wc1, bc1)                     # (B, 28, 28, 32)
    y = maxpool_2x2(y)                                    # (B, 14, 14, 32)
    y = conv2d_relu(y, wc2, bc2)                          # (B, 10, 10, 64)
    y = maxpool_2x2(y)                                    # (B,  5,  5, 64)
    # x.view(-1, 64*5*5): PyTorch flattens in NCHW order
    y = jnp.transpose(y, (0, 3, 1, 2)).reshape(B, -1)     # (B, 1600)
    return mlp_head(y, wf1, bf1, wf2, bf2, num_classes)


# ---------------------------------------------------------------------------
# Params (mimic nn.Conv2d / nn.Linear uniform(-1/sqrt(fan_in), 1/sqrt(fan_in)))
# ---------------------------------------------------------------------------
def init_params(key, num_classes):
    ks = jax.random.split(key, 8)

    def u(k, shape, fan_in):
        lim = 1.0 / (fan_in ** 0.5)
        return jax.random.uniform(k, shape, jnp.float32, -lim, lim)

    wc1 = u(ks[0], (5, 5, 3, 32), 3 * 5 * 5)      # HWIO
    bc1 = u(ks[1], (32,), 3 * 5 * 5)
    wc2 = u(ks[2], (5, 5, 32, 64), 32 * 5 * 5)
    bc2 = u(ks[3], (64,), 32 * 5 * 5)
    wf1 = u(ks[4], (64 * 5 * 5, 512), 64 * 5 * 5)  # (in, out)
    bf1 = u(ks[5], (512,), 64 * 5 * 5)
    wf2 = u(ks[6], (512, num_classes), 512)
    bf2 = u(ks[7], (num_classes,), 512)
    return (wc1, bc1, wc2, bc2, wf1, bf1, wf2, bf2)


# ---------------------------------------------------------------------------
# Pure-JAX reference (mirrors the kernel's bf16-input / f32-accumulate policy
# on the fc layers; convs in full f32)
# ---------------------------------------------------------------------------
def reference_forward(x_nchw, params):
    (wc1, bc1, wc2, bc2, wf1, bf1, wf2, bf2) = params
    dn = ("NCHW", "HWIO", "NCHW")
    y = lax.conv_general_dilated(x_nchw, wc1, (1, 1), "VALID",
                                 dimension_numbers=dn,
                                 precision=lax.Precision.HIGHEST)
    y = jnp.maximum(y + bc1[None, :, None, None], 0.0)
    y = lax.reduce_window(y, -jnp.inf, lax.max, (1, 1, 2, 2), (1, 1, 2, 2), "VALID")
    y = lax.conv_general_dilated(y, wc2, (1, 1), "VALID",
                                 dimension_numbers=dn,
                                 precision=lax.Precision.HIGHEST)
    y = jnp.maximum(y + bc2[None, :, None, None], 0.0)
    y = lax.reduce_window(y, -jnp.inf, lax.max, (1, 1, 2, 2), (1, 1, 2, 2), "VALID")
    x2 = y.reshape(y.shape[0], -1)                         # NCHW flatten
    h = jnp.maximum(
        jnp.dot(x2.astype(jnp.bfloat16), wf1.astype(jnp.bfloat16),
                preferred_element_type=jnp.float32) + bf1, 0.0)
    logits = jnp.dot(h.astype(jnp.bfloat16), wf2.astype(jnp.bfloat16),
                     preferred_element_type=jnp.float32) + bf2
    out1 = jnp.maximum(logits, 0.0)
    out2 = jax.nn.log_softmax(out1, axis=-1)
    return out1, out2


if __name__ == "__main__":
    key = jax.random.PRNGKey(0)
    kx, kp = jax.random.split(key)

    # CNNLeaf's forward implies 3x32x32 inputs (64*5*5 flatten after two
    # 5x5 VALID convs + two 2x2 pools).
    B, C, H, W = 2, 3, 32, 32
    num_classes = 10

    x = jax.random.normal(kx, (B, C, H, W), jnp.float32)
    params = init_params(kp, num_classes)

    fwd = jax.jit(cnnleaf_forward)
    out1, out2 = jax.block_until_ready(fwd(x, params))

    ref1, ref2 = reference_forward(x, params)
    assert out1.shape == (B, num_classes) and out2.shape == (B, num_classes)
    assert bool(jnp.all(jnp.isfinite(out1))) and bool(jnp.all(jnp.isfinite(out2)))
    assert jnp.allclose(out1, ref1, atol=1e-2, rtol=1e-2), float(jnp.max(jnp.abs(out1 - ref1)))
    assert jnp.allclose(out2, ref2, atol=1e-2, rtol=1e-2), float(jnp.max(jnp.abs(out2 - ref2)))

    print("KERNEL_OK")
</pallas_src>

<mosaic_0001>
module attributes {stable_mosaic.version = 11 : i64} {
  func.func @_gemm_bias_relu_kernel(%arg0: i32, %arg1: memref<256x75xf32, #tpu.memory_space<vmem>>, %arg2: memref<75x32xf32, #tpu.memory_space<vmem>>, %arg3: memref<1x32xf32, #tpu.memory_space<vmem>>, %arg4: memref<256x32xf32, #tpu.memory_space<vmem>>) attributes {dimension_semantics = [#tpu.dimension_semantics<parallel>], iteration_bounds = array<i64: 7>, scalar_prefetch = 0 : i64, scratch_operands = 0 : i64, tpu.core_type = #tpu.core_type<tc>, window_params = [{transform_indices = @transform_0, window_bounds = array<i64: 256, 75>}, {pipeline_mode = #tpu.pipeline_mode<synchronous>, transform_indices = @transform_1, window_bounds = array<i64: 75, 32>}, {pipeline_mode = #tpu.pipeline_mode<synchronous>, transform_indices = @transform_2, window_bounds = array<i64: 1, 32>}, {transform_indices = @transform_3, window_bounds = array<i64: 256, 32>}]} {
    %c0 = arith.constant 0 : index
    %c0_0 = arith.constant 0 : index
    %0 = vector.load %arg1[%c0, %c0_0] : memref<256x75xf32, #tpu.memory_space<vmem>>, vector<256x75xf32>
    %c0_1 = arith.constant 0 : index
    %c0_2 = arith.constant 0 : index
    %1 = vector.load %arg2[%c0_1, %c0_2] : memref<75x32xf32, #tpu.memory_space<vmem>>, vector<75x32xf32>
    %cst = arith.constant dense<0.000000e+00> : vector<256x32xf32>
    %2 = tpu.matmul %0, %1, %cst {dimension_numbers = #tpu.dot_dimension_numbers<[1], [0], [0], [1], [0, 0, 1, 1], [], []>} : vector<256x75xf32>, vector<75x32xf32>, vector<256x32xf32> -> vector<256x32xf32>
    %c0_3 = arith.constant 0 : index
    %c0_4 = arith.constant 0 : index
    %3 = vector.load %arg3[%c0_3, %c0_4] : memref<1x32xf32, #tpu.memory_space<vmem>>, vector<1x32xf32>
    %4 = vector.broadcast %3 : vector<1x32xf32> to vector<256x32xf32>
    %5 = arith.addf %2, %4 : vector<256x32xf32>
    %cst_5 = arith.constant 0.000000e+00 : f32
    %6 = vector.broadcast %cst_5 : f32 to vector<256x32xf32>
    %7 = arith.maximumf %5, %6 : vector<256x32xf32>
    %c0_6 = arith.constant 0 : index
    %c0_7 = arith.constant 0 : index
    %8 = vector.load %arg4[%c0_6, %c0_7] : memref<256x32xf32, #tpu.memory_space<vmem>>, vector<256x32xf32>
    tpu.vector_store %arg4[%c0_6, %c0_7], %7 {strides = array<i32>} : memref<256x32xf32, #tpu.memory_space<vmem>>, vector<256x32xf32>,
    return
  }
  func.func @transform_0(%arg0: i32) -> (i32, i32) {
    %c0_i32 = arith.constant 0 : i32
    %c0_i32_0 = arith.constant 0 : i32
    return %arg0, %c0_i32 : i32, i32
  }
  func.func @transform_1(%arg0: i32) -> (i32, i32) {
    %c0_i32 = arith.constant 0 : i32
    %c0_i32_0 = arith.constant 0 : i32
    %c0_i32_1 = arith.constant 0 : i32
    return %c0_i32, %c0_i32_0 : i32, i32
  }
  func.func @transform_2(%arg0: i32) -> (i32, i32) {
    %c0_i32 = arith.constant 0 : i32
    %c0_i32_0 = arith.constant 0 : i32
    %c0_i32_1 = arith.constant 0 : i32
    return %c0_i32, %c0_i32_0 : i32, i32
  }
  func.func @transform_3(%arg0: i32) -> (i32, i32) {
    %c0_i32 = arith.constant 0 : i32
    %c0_i32_0 = arith.constant 0 : i32
    return %arg0, %c0_i32 : i32, i32
  }
}

module attributes {stable_mosaic.version = 11 : i64} {
  func.func @_max4_kernel(%arg0: i32, %arg1: memref<392x32xf32, #tpu.memory_space<vmem>>, %arg2: memref<392x32xf32, #tpu.memory_space<vmem>>, %arg3: memref<392x32xf32, #tpu.memory_space<vmem>>, %arg4: memref<392x32xf32, #tpu.memory_space<vmem>>, %arg5: memref<392x32xf32, #tpu.memory_space<vmem>>) attributes {dimension_semantics = [#tpu.dimension_semantics<arbitrary>], iteration_bounds = array<i64: 1>, scalar_prefetch = 0 : i64, scratch_operands = 0 : i64, tpu.core_type = #tpu.core_type<tc>, window_params = [{pipeline_mode = #tpu.pipeline_mode<synchronous>, transform_indices = @transform_0, window_bounds = array<i64: 392, 32>}, {pipeline_mode = #tpu.pipeline_mode<synchronous>, transform_indices = @transform_1, window_bounds = array<i64: 392, 32>}, {pipeline_mode = #tpu.pipeline_mode<synchronous>, transform_indices = @transform_2, window_bounds = array<i64: 392, 32>}, {pipeline_mode = #tpu.pipeline_mode<synchronous>, transform_indices = @transform_3, window_bounds = array<i64: 392, 32>}, {pipeline_mode = #tpu.pipeline_mode<synchronous>, transform_indices = @transform_4, window_bounds = array<i64: 392, 32>}]} {
    %c0 = arith.constant 0 : index
    %c0_0 = arith.constant 0 : index
    %0 = vector.load %arg1[%c0, %c0_0] : memref<392x32xf32, #tpu.memory_space<vmem>>, vector<392x32xf32>
    %c0_1 = arith.constant 0 : index
    %c0_2 = arith.constant 0 : index
    %1 = vector.load %arg2[%c0_1, %c0_2] : memref<392x32xf32, #tpu.memory_space<vmem>>, vector<392x32xf32>
    %2 = arith.maximumf %0, %1 : vector<392x32xf32>
    %c0_3 = arith.constant 0 : index
    %c0_4 = arith.constant 0 : index
    %3 = vector.load %arg3[%c0_3, %c0_4] : memref<392x32xf32, #tpu.memory_space<vmem>>, vector<392x32xf32>
    %c0_5 = arith.constant 0 : index
    %c0_6 = arith.constant 0 : index
    %4 = vector.load %arg4[%c0_5, %c0_6] : memref<392x32xf32, #tpu.memory_space<vmem>>, vector<392x32xf32>
    %5 = arith.maximumf %3, %4 : vector<392x32xf32>
    %6 = arith.maximumf %2, %5 : vector<392x32xf32>
    %c0_7 = arith.constant 0 : index
    %c0_8 = arith.constant 0 : index
    %7 = vector.load %arg5[%c0_7, %c0_8] : memref<392x32xf32, #tpu.memory_space<vmem>>, vector<392x32xf32>
    tpu.vector_store %arg5[%c0_7, %c0_8], %6 {strides = array<i32>} : memref<392x32xf32, #tpu.memory_space<vmem>>, vector<392x32xf32>,
    return
  }
  func.func @transform_0(%arg0: i32) -> (i32, i32) {
    %c0_i32 = arith.constant 0 : i32
    %c0_i32_0 = arith.constant 0 : i32
    %c0_i32_1 = arith.constant 0 : i32
    return %c0_i32, %c0_i32_0 : i32, i32
  }
  func.func @transform_1(%arg0: i32) -> (i32, i32) {
    %c0_i32 = arith.constant 0 : i32
    %c0_i32_0 = arith.constant 0 : i32
    %c0_i32_1 = arith.constant 0 : i32
    return %c0_i32, %c0_i32_0 : i32, i32
  }
  func.func @transform_2(%arg0: i32) -> (i32, i32) {
    %c0_i32 = arith.constant 0 : i32
    %c0_i32_0 = arith.constant 0 : i32
    %c0_i32_1 = arith.constant 0 : i32
    return %c0_i32, %c0_i32_0 : i32, i32
  }
  func.func @transform_3(%arg0: i32) -> (i32, i32) {
    %c0_i32 = arith.constant 0 : i32
    %c0_i32_0 = arith.constant 0 : i32
    %c0_i32_1 = arith.constant 0 : i32
    return %c0_i32, %c0_i32_0 : i32, i32
  }
  func.func @transform_4(%arg0: i32) -> (i32, i32) {
    %c0_i32 = arith.constant 0 : i32
    %c0_i32_0 = arith.constant 0 : i32
    %c0_i32_1 = arith.constant 0 : i32
    return %c0_i32, %c0_i32_0 : i32, i32
  }
}

module attributes {stable_mosaic.version = 11 : i64} {
  func.func @_gemm_bias_relu_kernel(%arg0: i32, %arg1: memref<256x800xf32, #tpu.memory_space<vmem>>, %arg2: memref<800x64xf32, #tpu.memory_space<vmem>>, %arg3: memref<1x64xf32, #tpu.memory_space<vmem>>, %arg4: memref<256x64xf32, #tpu.memory_space<vmem>>) attributes {dimension_semantics = [#tpu.dimension_semantics<parallel>], iteration_bounds = array<i64: 1>, scalar_prefetch = 0 : i64, scratch_operands = 0 : i64, tpu.core_type = #tpu.core_type<tc>, window_params = [{transform_indices = @transform_0, window_bounds = array<i64: 256, 800>}, {pipeline_mode = #tpu.pipeline_mode<synchronous>, transform_indices = @transform_1, window_bounds = array<i64: 800, 64>}, {pipeline_mode = #tpu.pipeline_mode<synchronous>, transform_indices = @transform_2, window_bounds = array<i64: 1, 64>}, {transform_indices = @transform_3, window_bounds = array<i64: 256, 64>}]} {
    %c0 = arith.constant 0 : index
    %c0_0 = arith.constant 0 : index
    %0 = vector.load %arg1[%c0, %c0_0] : memref<256x800xf32, #tpu.memory_space<vmem>>, vector<256x800xf32>
    %c0_1 = arith.constant 0 : index
    %c0_2 = arith.constant 0 : index
    %1 = vector.load %arg2[%c0_1, %c0_2] : memref<800x64xf32, #tpu.memory_space<vmem>>, vector<800x64xf32>
    %cst = arith.constant dense<0.000000e+00> : vector<256x64xf32>
    %2 = tpu.matmul %0, %1, %cst {dimension_numbers = #tpu.dot_dimension_numbers<[1], [0], [0], [1], [0, 0, 1, 1], [], []>} : vector<256x800xf32>, vector<800x64xf32>, vector<256x64xf32> -> vector<256x64xf32>
    %c0_3 = arith.constant 0 : index
    %c0_4 = arith.constant 0 : index
    %3 = vector.load %arg3[%c0_3, %c0_4] : memref<1x64xf32, #tpu.memory_space<vmem>>, vector<1x64xf32>
    %4 = vector.broadcast %3 : vector<1x64xf32> to vector<256x64xf32>
    %5 = arith.addf %2, %4 : vector<256x64xf32>
    %cst_5 = arith.constant 0.000000e+00 : f32
    %6 = vector.broadcast %cst_5 : f32 to vector<256x64xf32>
    %7 = arith.maximumf %5, %6 : vector<256x64xf32>
    %c0_6 = arith.constant 0 : index
    %c0_7 = arith.constant 0 : index
    %8 = vector.load %arg4[%c0_6, %c0_7] : memref<256x64xf32, #tpu.memory_space<vmem>>, vector<256x64xf32>
    tpu.vector_store %arg4[%c0_6, %c0_7], %7 {strides = array<i32>} : memref<256x64xf32, #tpu.memory_space<vmem>>, vector<256x64xf32>,
    return
  }
  func.func @transform_0(%arg0: i32) -> (i32, i32) {
    %c0_i32 = arith.constant 0 : i32
    %c0_i32_0 = arith.constant 0 : i32
    return %arg0, %c0_i32 : i32, i32
  }
  func.func @transform_1(%arg0: i32) -> (i32, i32) {
    %c0_i32 = arith.constant 0 : i32
    %c0_i32_0 = arith.constant 0 : i32
    %c0_i32_1 = arith.constant 0 : i32
    return %c0_i32, %c0_i32_0 : i32, i32
  }
  func.func @transform_2(%arg0: i32) -> (i32, i32) {
    %c0_i32 = arith.constant 0 : i32
    %c0_i32_0 = arith.constant 0 : i32
    %c0_i32_1 = arith.constant 0 : i32
    return %c0_i32, %c0_i32_0 : i32, i32
  }
  func.func @transform_3(%arg0: i32) -> (i32, i32) {
    %c0_i32 = arith.constant 0 : i32
    %c0_i32_0 = arith.constant 0 : i32
    return %arg0, %c0_i32 : i32, i32
  }
}

module attributes {stable_mosaic.version = 11 : i64} {
  func.func @_max4_kernel(%arg0: i32, %arg1: memref<50x64xf32, #tpu.memory_space<vmem>>, %arg2: memref<50x64xf32, #tpu.memory_space<vmem>>, %arg3: memref<50x64xf32, #tpu.memory_space<vmem>>, %arg4: memref<50x64xf32, #tpu.memory_space<vmem>>, %arg5: memref<50x64xf32, #tpu.memory_space<vmem>>) attributes {dimension_semantics = [#tpu.dimension_semantics<arbitrary>], iteration_bounds = array<i64: 1>, scalar_prefetch = 0 : i64, scratch_operands = 0 : i64, tpu.core_type = #tpu.core_type<tc>, window_params = [{pipeline_mode = #tpu.pipeline_mode<synchronous>, transform_indices = @transform_0, window_bounds = array<i64: 50, 64>}, {pipeline_mode = #tpu.pipeline_mode<synchronous>, transform_indices = @transform_1, window_bounds = array<i64: 50, 64>}, {pipeline_mode = #tpu.pipeline_mode<synchronous>, transform_indices = @transform_2, window_bounds = array<i64: 50, 64>}, {pipeline_mode = #tpu.pipeline_mode<synchronous>, transform_indices = @transform_3, window_bounds = array<i64: 50, 64>}, {pipeline_mode = #tpu.pipeline_mode<synchronous>, transform_indices = @transform_4, window_bounds = array<i64: 50, 64>}]} {
    %c0 = arith.constant 0 : index
    %c0_0 = arith.constant 0 : index
    %0 = vector.load %arg1[%c0, %c0_0] : memref<50x64xf32, #tpu.memory_space<vmem>>, vector<50x64xf32>
    %c0_1 = arith.constant 0 : index
    %c0_2 = arith.constant 0 : index
    %1 = vector.load %arg2[%c0_1, %c0_2] : memref<50x64xf32, #tpu.memory_space<vmem>>, vector<50x64xf32>
    %2 = arith.maximumf %0, %1 : vector<50x64xf32>
    %c0_3 = arith.constant 0 : index
    %c0_4 = arith.constant 0 : index
    %3 = vector.load %arg3[%c0_3, %c0_4] : memref<50x64xf32, #tpu.memory_space<vmem>>, vector<50x64xf32>
    %c0_5 = arith.constant 0 : index
    %c0_6 = arith.constant 0 : index
    %4 = vector.load %arg4[%c0_5, %c0_6] : memref<50x64xf32, #tpu.memory_space<vmem>>, vector<50x64xf32>
    %5 = arith.maximumf %3, %4 : vector<50x64xf32>
    %6 = arith.maximumf %2, %5 : vector<50x64xf32>
    %c0_7 = arith.constant 0 : index
    %c0_8 = arith.constant 0 : index
    %7 = vector.load %arg5[%c0_7, %c0_8] : memref<50x64xf32, #tpu.memory_space<vmem>>, vector<50x64xf32>
    tpu.vector_store %arg5[%c0_7, %c0_8], %6 {strides = array<i32>} : memref<50x64xf32, #tpu.memory_space<vmem>>, vector<50x64xf32>,
    return
  }
  func.func @transform_0(%arg0: i32) -> (i32, i32) {
    %c0_i32 = arith.constant 0 : i32
    %c0_i32_0 = arith.constant 0 : i32
    %c0_i32_1 = arith.constant 0 : i32
    return %c0_i32, %c0_i32_0 : i32, i32
  }
  func.func @transform_1(%arg0: i32) -> (i32, i32) {
    %c0_i32 = arith.constant 0 : i32
    %c0_i32_0 = arith.constant 0 : i32
    %c0_i32_1 = arith.constant 0 : i32
    return %c0_i32, %c0_i32_0 : i32, i32
  }
  func.func @transform_2(%arg0: i32) -> (i32, i32) {
    %c0_i32 = arith.constant 0 : i32
    %c0_i32_0 = arith.constant 0 : i32
    %c0_i32_1 = arith.constant 0 : i32
    return %c0_i32, %c0_i32_0 : i32, i32
  }
  func.func @transform_3(%arg0: i32) -> (i32, i32) {
    %c0_i32 = arith.constant 0 : i32
    %c0_i32_0 = arith.constant 0 : i32
    %c0_i32_1 = arith.constant 0 : i32
    return %c0_i32, %c0_i32_0 : i32, i32
  }
  func.func @transform_4(%arg0: i32) -> (i32, i32) {
    %c0_i32 = arith.constant 0 : i32
    %c0_i32_0 = arith.constant 0 : i32
    %c0_i32_1 = arith.constant 0 : i32
    return %c0_i32, %c0_i32_0 : i32, i32
  }
}

module attributes {stable_mosaic.version = 11 : i64} {
  func.func @_head_kernel(%arg0: i32, %arg1: memref<8x1600xbf16, #tpu.memory_space<vmem>>, %arg2: memref<1600x512xbf16, #tpu.memory_space<vmem>>, %arg3: memref<1x512xf32, #tpu.memory_space<vmem>>, %arg4: memref<512x128xbf16, #tpu.memory_space<vmem>>, %arg5: memref<1x128xf32, #tpu.memory_space<vmem>>, %arg6: memref<8x128xf32, #tpu.memory_space<vmem>>, %arg7: memref<8x128xf32, #tpu.memory_space<vmem>>) attributes {dimension_semantics = [#tpu.dimension_semantics<parallel>], iteration_bounds = array<i64: 1>, scalar_prefetch = 0 : i64, scratch_operands = 0 : i64, tpu.core_type = #tpu.core_type<tc>, window_params = [{transform_indices = @transform_0, window_bounds = array<i64: 8, 1600>}, {pipeline_mode = #tpu.pipeline_mode<synchronous>, transform_indices = @transform_1, window_bounds = array<i64: 1600, 512>}, {pipeline_mode = #tpu.pipeline_mode<synchronous>, transform_indices = @transform_2, window_bounds = array<i64: 1, 512>}, {pipeline_mode = #tpu.pipeline_mode<synchronous>, transform_indices = @transform_3, window_bounds = array<i64: 512, 128>}, {pipeline_mode = #tpu.pipeline_mode<synchronous>, transform_indices = @transform_4, window_bounds = array<i64: 1, 128>}, {transform_indices = @transform_5, window_bounds = array<i64: 8, 128>}, {transform_indices = @transform_6, window_bounds = array<i64: 8, 128>}]} {
    %c0 = arith.constant 0 : index
    %c0_0 = arith.constant 0 : index
    %0 = vector.load %arg1[%c0, %c0_0] : memref<8x1600xbf16, #tpu.memory_space<vmem>>, vector<8x1600xbf16>
    %c0_1 = arith.constant 0 : index
    %c0_2 = arith.constant 0 : index
    %1 = vector.load %arg2[%c0_1, %c0_2] : memref<1600x512xbf16, #tpu.memory_space<vmem>>, vector<1600x512xbf16>
    %cst = arith.constant dense<0.000000e+00> : vector<8x512xf32>
    %2 = tpu.matmul %0, %1, %cst {dimension_numbers = #tpu.dot_dimension_numbers<[1], [0], [0], [1], [0, 0, 1, 1], [], []>} : vector<8x1600xbf16>, vector<1600x512xbf16>, vector<8x512xf32> -> vector<8x512xf32>
    %c0_3 = arith.constant 0 : index
    %c0_4 = arith.constant 0 : index
    %3 = vector.load %arg3[%c0_3, %c0_4] : memref<1x512xf32, #tpu.memory_space<vmem>>, vector<1x512xf32>
    %4 = vector.broadcast %3 : vector<1x512xf32> to vector<8x512xf32>
    %5 = arith.addf %2, %4 : vector<8x512xf32>
    %cst_5 = arith.constant 0.000000e+00 : f32
    %6 = vector.broadcast %cst_5 : f32 to vector<8x512xf32>
    %7 = arith.maximumf %5, %6 : vector<8x512xf32>
    %8 = arith.truncf %7 : vector<8x512xf32> to vector<8x512xbf16>
    %c0_6 = arith.constant 0 : index
    %c0_7 = arith.constant 0 : index
    %9 = vector.load %arg4[%c0_6, %c0_7] : memref<512x128xbf16, #tpu.memory_space<vmem>>, vector<512x128xbf16>
    %cst_8 = arith.constant dense<0.000000e+00> : vector<8x128xf32>
    %10 = tpu.matmul %8, %9, %cst_8 {dimension_numbers = #tpu.dot_dimension_numbers<[1], [0], [0], [1], [0, 0, 1, 1], [], []>} : vector<8x512xbf16>, vector<512x128xbf16>, vector<8x128xf32> -> vector<8x128xf32>
    %c0_9 = arith.constant 0 : index
    %c0_10 = arith.constant 0 : index
    %11 = vector.load %arg5[%c0_9, %c0_10] : memref<1x128xf32, #tpu.memory_space<vmem>>, vector<1x128xf32>
    %12 = vector.broadcast %11 : vector<1x128xf32> to vector<8x128xf32>
    %13 = arith.addf %10, %12 : vector<8x128xf32>
    %cst_11 = arith.constant 0.000000e+00 : f32
    %14 = vector.broadcast %cst_11 : f32 to vector<8x128xf32>
    %15 = arith.maximumf %13, %14 : vector<8x128xf32>
    %c0_12 = arith.constant 0 : index
    %c0_13 = arith.constant 0 : index
    %16 = vector.load %arg6[%c0_12, %c0_13] : memref<8x128xf32, #tpu.memory_space<vmem>>, vector<8x128xf32>
    tpu.vector_store %arg6[%c0_12, %c0_13], %15 {strides = array<i32>} : memref<8x128xf32, #tpu.memory_space<vmem>>, vector<8x128xf32>,
    %17 = tpu.iota {dimensions = array<i32: 1>} : vector<8x128xi32>
    %c10_i32 = arith.constant 10 : i32
    %18 = vector.broadcast %c10_i32 : i32 to vector<8x128xi32>
    %19 = arith.cmpi slt, %17, %18 : vector<8x128xi32>
    %cst_14 = arith.constant 0xFF800000 : f32
    %20 = vector.broadcast %cst_14 : f32 to vector<8x128xf32>
    %21 = arith.select %19, %15, %20 : vector<8x128xi1>, vector<8x128xf32>
    %cst_15 = arith.constant dense<0xFF800000> : vector<8xf32>
    %22 = vector.multi_reduction <maximumf>, %21, %cst_15 [1] : vector<8x128xf32> to vector<8xf32>
    %23 = vector.shape_cast %22 : vector<8xf32> to vector<8x1xf32>
    %24 = vector.broadcast %23 : vector<8x1xf32> to vector<8x128xf32>
    %25 = arith.subf %21, %24 : vector<8x128xf32>
    %26 = math.exp %25 : vector<8x128xf32>
    %cst_16 = arith.constant dense<0.000000e+00> : vector<8xf32>
    %27 = vector.multi_reduction <add>, %26, %cst_16 [1] : vector<8x128xf32> to vector<8xf32>
    %28 = vector.shape_cast %27 : vector<8xf32> to vector<8x1xf32>
    %29 = math.log %28 : vector<8x1xf32>
    %30 = vector.broadcast %29 : vector<8x1xf32> to vector<8x128xf32>
    %31 = arith.subf %25, %30 : vector<8x128xf32>
    %c0_17 = arith.constant 0 : index
    %c0_18 = arith.constant 0 : index
    %32 = vector.load %arg7[%c0_17, %c0_18] : memref<8x128xf32, #tpu.memory_space<vmem>>, vector<8x128xf32>
    tpu.vector_store %arg7[%c0_17, %c0_18], %31 {strides = array<i32>} : memref<8x128xf32, #tpu.memory_space<vmem>>, vector<8x128xf32>,
    return
  }
  func.func @transform_0(%arg0: i32) -> (i32, i32) {
    %c0_i32 = arith.constant 0 : i32
    %c0_i32_0 = arith.constant 0 : i32
    return %arg0, %c0_i32 : i32, i32
  }
  func.func @transform_1(%arg0: i32) -> (i32, i32) {
    %c0_i32 = arith.constant 0 : i32
    %c0_i32_0 = arith.constant 0 : i32
    %c0_i32_1 = arith.constant 0 : i32
    return %c0_i32, %c0_i32_0 : i32, i32
  }
  func.func @transform_2(%arg0: i32) -> (i32, i32) {
    %c0_i32 = arith.constant 0 : i32
    %c0_i32_0 = arith.constant 0 : i32
    %c0_i32_1 = arith.constant 0 : i32
    return %c0_i32, %c0_i32_0 : i32, i32
  }
  func.func @transform_3(%arg0: i32) -> (i32, i32) {
    %c0_i32 = arith.constant 0 : i32
    %c0_i32_0 = arith.constant 0 : i32
    %c0_i32_1 = arith.constant 0 : i32
    return %c0_i32, %c0_i32_0 : i32, i32
  }
  func.func @transform_4(%arg0: i32) -> (i32, i32) {
    %c0_i32 = arith.constant 0 : i32
    %c0_i32_0 = arith.constant 0 : i32
    %c0_i32_1 = arith.constant 0 : i32
    return %c0_i32, %c0_i32_0 : i32, i32
  }
  func.func @transform_5(%arg0: i32) -> (i32, i32) {
    %c0_i32 = arith.constant 0 : i32
    %c0_i32_0 = arith.constant 0 : i32
    return %arg0, %c0_i32 : i32, i32
  }
  func.func @transform_6(%arg0: i32) -> (i32, i32) {
    %c0_i32 = arith.constant 0 : i32
    %c0_i32_0 = arith.constant 0 : i32
    return %arg0, %c0_i32 : i32, i32
  }
}

</mosaic_0001>

<bundles_post_ra>
// kernel: cnnleaf_forward.5
= control target key start
LH: loop header
LB: loop body
LE: loop exit
PB: predicated region body
PF: predicated region fallthrough
CT: control target
= control target key end

     0   :  { %s895_s12 = smov 0   ;;  %s1118_s0 = inlined_call_operand.vmem [shape: f32[1792,75], index: 0, kind: input, shape index: {}]   ;;  %s1119_s1 = inlined_call_operand.vmem [shape: f32[75,32], index: 1, kind: input, shape index: {}]   ;;  %s1120_s2 = inlined_call_operand.vmem [shape: f32[1,32], index: 2, kind: input, shape index: {}]   ;;  %s1121_s3 = inlined_call_operand.vmem [shape: f32[1792,32], index: 3, kind: output, shape index: {}]  }
   0x1 LB: > { %s670_s13 = sadd.s32 4294967295, %s872_s12   ;;  %p674_p0 = scmp.ge.s32.totalorder %s872_s12, 1  ;;  %s872_s12 = sphi %s895_s12, %s13_s12  }
   0x2   : > { %p138_p1 = scmp.lt.s32.totalorder %s872_s12, 8 }
   0x4   : > { %p139_p2 = pnand %p674_p0, %p138_p1 }
   0x5   : > { %v206_v0 = vld [vmem:[%s1119_s1] sm:$0xff] (!%p139_p2)  ;;  %v207_v1 = vld [vmem:[%s1119_s1 + $0x8] sm:$0xff] (!%p139_p2)  ;;  %v208_v2 = vld [vmem:[%s1119_s1 + $0x10] sm:$0xff] (!%p139_p2)  ;;  %s675_s20 = sshll.u32 (!%p139_p2), %s670_s13, 5  ;;  %vm223_vm0 = vcmask (!%p139_p2), 613376   ;;  %vm320_vm1 = vcmask (!%p139_p2), 1042432  }
   0x6   : > { %142 = sbr.rel (%p139_p2) target bundleno = 275 (0x113), region = 32  ;;  %v825_v3 = vpack.c.bf16 (!%p139_p2), %v207_v1, %v206_v0  ;;  %v209_v4 = vld [vmem:[%s1119_s1 + $0x18] sm:$0xff] (!%p139_p2)  ;;  %p163_p3 = scmp.lt.s32.totalorder (!%p139_p2), %s675_s20, 223  ;;  %v210_v6 = vld [vmem:[%s1119_s1 + $0x20] sm:$0xff] (!%p139_p2)  ;;  %v211_v7 = vld [vmem:[%s1119_s1 + $0x28] sm:$0xff] (!%p139_p2)  ;;  %vm874_vm2 = vmmov (!%p139_p2), 1  }
   0x7   : > { %v829_v5 = vpack.c.bf16 (!%p139_p2), %v209_v4, %v208_v2  ;;  %v833_v8 = vpack.c.bf16 (!%p139_p2), %v211_v7, %v210_v6  ;;  %v212_v9 = vld [vmem:[%s1119_s1 + $0x30] sm:$0xff] (!%p139_p2)  ;;  %v213_v10 = vld [vmem:[%s1119_s1 + $0x38] sm:$0xff] (!%p139_p2)  ;;  %v214_v14 = vld [vmem:[%s1119_s1 + $0x40] sm:$0xff] (!%p139_p2)  ;;  %vm581_vm4 = vcmask (!%p139_p2), 261120  }
   0x8   : > { %826 = vmatprep.subr.bf16.mxu0 (!%p139_p2), %v825_v3  ;;  %847 = vmatprep.subr.bf16.mxu1 (!%p139_p2), %v825_v3  ;;  %v837_v13 = vpack.c.bf16 (!%p139_p2), %v213_v10, %v212_v9  ;;  %v215_v15 = vld [vmem:[%s1119_s1 + $0x48] sm:$0x7] (!%p139_p2)  ;;  %vm842_vm3 = vmpackc.low (!%p139_p2), %vm320_vm1, %vm874_vm2  ;;  %v1010_v47 = vld [vmem:[%s1120_s2] ss:$0 sm:$0xff] (!%p139_p2) }
   0x9   : > { %828 = vmatpush3.bf16.msra.mxu0 (!%p139_p2), %v825_v3  ;;  %852 = vmatpush3.bf16.msra.mxu1 (!%p139_p2), %v825_v3  ;;  %v841_v16 = vpack.c.bf16 (!%p139_p2), %v215_v15, %v214_v14 }
   0xa   : > { %830 = vmatprep.subr.bf16.mxu0 (!%p139_p2), %v829_v5  ;;  %848 = vmatprep.subr.bf16.mxu1 (!%p139_p2), %v829_v5 }
   0xd   : > { %s1123_s20 = smov (!%p163_p3, %s675_s20), 223  ;;  %832 = vmatpush3.bf16.msra.mxu0 %v829_v5  ;;  %853 = vmatpush3.bf16.msra.mxu1 %v829_v5 }
   0xe   : > { %s676_s27 = sshll.u32 %s1123_s20, 3  ;;  %834 = vmatprep.subr.bf16.mxu0 %v833_v8  ;;  %849 = vmatprep.subr.bf16.mxu1 %v833_v8 }
   0xf   : > { %s935_s7 = scalar_lea.vmem %s1118_s0, %s676_s27  ;;  %s1019_s17 = scalar_lea.vmem %s1121_s3, %s676_s27 }
  0x10   : > { %v174_v11 = vld [vmem:[%s935_s7] sm:$0xff]  ;;  %v175_v17 = vld [vmem:[%s935_s7 + $0x8] sm:$0xff]  ;;  %v176_v19 = vld [vmem:[%s935_s7 + $0x10] sm:$0xff] }
  0x11   : > { %v190_v12 = vld [vmem:[%s935_s7 + $0x80] sm:$0xff]  ;;  %777 = vmatprep.mubr.msk.f32.mxu0 %vm223_vm0, %v174_v11  ;;  %836 = vmatpush3.bf16.msra.mxu0 %v833_v8  ;;  %v191_v18 = vld [vmem:[%s935_s7 + $0x88] sm:$0xff]  ;;  %v192_v20 = vld [vmem:[%s935_s7 + $0x90] sm:$0xff] }
  0x12   : > { %801 = vmatprep.mubr.msk.f32.mxu1 %vm223_vm0, %v190_v12  ;;  %854 = vmatpush3.bf16.msra.mxu1 %v833_v8  ;;  %v177_v21 = vld [vmem:[%s935_s7 + $0x18] sm:$0xff]  ;;  %v178_v23 = vld [vmem:[%s935_s7 + $0x20] sm:$0xff]  ;;  %v179_v25 = vld [vmem:[%s935_s7 + $0x28] sm:$0xff] }
  0x13   : > { %838 = vmatprep.subr.bf16.mxu0 %v837_v13  ;;  %850 = vmatprep.subr.bf16.mxu1 %v837_v13  ;;  %v193_v22 = vld [vmem:[%s935_s7 + $0x98] sm:$0xff]  ;;  %v194_v24 = vld [vmem:[%s935_s7 + $0xa0] sm:$0xff]  ;;  %v195_v26 = vld [vmem:[%s935_s7 + $0xa8] sm:$0xff] }
  0x14   : > { %v180_v27 = vld [vmem:[%s935_s7 + $0x30] sm:$0xff]  ;;  %v181_v29 = vld [vmem:[%s935_s7 + $0x38] sm:$0xff]  ;;  %v182_v31 = vld [vmem:[%s935_s7 + $0x40] sm:$0xff] }
  0x15   : > { %840 = vmatpush3.bf16.msra.mxu0 %v837_v13  ;;  %v196_v28 = vld [vmem:[%s935_s7 + $0xb0] sm:$0xff]  ;;  %v197_v30 = vld [vmem:[%s935_s7 + $0xb8] sm:$0xff]  ;;  %v198_v32 = vld [vmem:[%s935_s7 + $0xc0] sm:$0xff] }
  0x16   : > { %855 = vmatpush3.bf16.msra.mxu1 %v837_v13  ;;  %843 = vmatprep.subr.msk.bf16.mxu0 %vm842_vm3, %v841_v16  ;;  %v183_v33 = vld [vmem:[%s935_s7 + $0x48] sm:$0xff]  ;;  %v184_v35 = vld [vmem:[%s935_s7 + $0x50] sm:$0xff]  ;;  %v185_v37 = vld [vmem:[%s935_s7 + $0x58] sm:$0xff] }
  0x17   : > { %851 = vmatprep.subr.msk.bf16.mxu1 %vm842_vm3, %v841_v16  ;;  %v199_v34 = vld [vmem:[%s935_s7 + $0xc8] sm:$0xff]  ;;  %v200_v36 = vld [vmem:[%s935_s7 + $0xd0] sm:$0xff]  ;;  %v201_v38 = vld [vmem:[%s935_s7 + $0xd8] sm:$0xff] }
  0x18   : > { %v186_v39 = vld [vmem:[%s935_s7 + $0x60] sm:$0xff]  ;;  %v187_v41 = vld [vmem:[%s935_s7 + $0x68] sm:$0xff]  ;;  %v188_v43 = vld [vmem:[%s935_s7 + $0x70] sm:$0xff] }
  0x19   : > { %846 = vmatpush3.bf16.msk.msra.mxu0 %vm842_vm3, %v841_v16  ;;  %v202_v40 = vld [vmem:[%s935_s7 + $0xe0] sm:$0xff]  ;;  %v203_v42 = vld [vmem:[%s935_s7 + $0xe8] sm:$0xff]  ;;  %v204_v44 = vld [vmem:[%s935_s7 + $0xf0] sm:$0xff] }
  0x1a   : > { %856 = vmatpush3.bf16.msk.msra.mxu1 %vm842_vm3, %v841_v16  ;;  %v189_v45 = vld [vmem:[%s935_s7 + $0x78] sm:$0xff] }
  0x1b   : > { %v205_v46 = vld [vmem:[%s935_s7 + $0xf8] sm:$0xff] }
  0x1c   : > { %778 = vmatmul.mubr.msk.f32.vlgmr.msra.gmra.mrb[0].mxu0 %vm223_vm0, %v175_v17 }
  0x1d   : > { %802 = vmatmul.mubr.msk.f32.vlgmr.msra.gmra.mrb[0].mxu1 %vm223_vm0, %v191_v18  ;;  %780 = vmatprep.mubr.msk.f32.mxu0 %vm223_vm0, %v176_v19 }
  0x1e   : > { %804 = vmatprep.mubr.msk.f32.mxu1 %vm223_vm0, %v192_v20 }
  0x20   : > { %781 = vmatmul.mubr.msk.f32.gmra.mrb[2].mxu0 %vm223_vm0, %v177_v21 }
  0x21   : > { %805 = vmatmul.mubr.msk.f32.gmra.mrb[2].mxu1 %vm223_vm0, %v193_v22  ;;  %783 = vmatprep.mubr.msk.f32.mxu0 %vm223_vm0, %v178_v23 }
  0x22   : > { %807 = vmatprep.mubr.msk.f32.mxu1 %vm223_vm0, %v194_v24 }
  0x24   : > { %784 = vmatmul.mubr.msk.f32.gmra.mrb[4].mxu0 %vm223_vm0, %v179_v25 }
  0x25   : > { %808 = vmatmul.mubr.msk.f32.gmra.mrb[4].mxu1 %vm223_vm0, %v195_v26  ;;  %786 = vmatprep.mubr.msk.f32.mxu0 %vm223_vm0, %v180_v27 }
  0x26   : > { %810 = vmatprep.mubr.msk.f32.mxu1 %vm223_vm0, %v196_v28 }
  0x28   : > { %787 = vmatmul.mubr.msk.f32.gmra.mrb[6].mxu0 %vm223_vm0, %v181_v29 }
  0x29   : > { %811 = vmatmul.mubr.msk.f32.gmra.mrb[6].mxu1 %vm223_vm0, %v197_v30  ;;  %789 = vmatprep.mubr.msk.f32.mxu0 %vm223_vm0, %v182_v31 }
  0x2a   : > { %813 = vmatprep.mubr.msk.f32.mxu1 %vm223_vm0, %v198_v32 }
  0x2c   : > { %790 = vmatmul.mubr.msk.f32.gmra.mrb[8].mxu0 %vm223_vm0, %v183_v33 }
  0x2d   : > { %814 = vmatmul.mubr.msk.f32.gmra.mrb[8].mxu1 %vm223_vm0, %v199_v34  ;;  %792 = vmatprep.mubr.msk.f32.mxu0 %vm223_vm0, %v184_v35 }
  0x2e   : > { %816 = vmatprep.mubr.msk.f32.mxu1 %vm223_vm0, %v200_v36 }
  0x30   : > { %793 = vmatmul.mubr.msk.f32.gmra.mrb[10].mxu0 %vm223_vm0, %v185_v37 }
  0x31   : > { %817 = vmatmul.mubr.msk.f32.gmra.mrb[10].mxu1 %vm223_vm0, %v201_v38  ;;  %795 = vmatprep.mubr.msk.f32.mxu0 %vm223_vm0, %v186_v39 }
  0x32   : > { %819 = vmatprep.mubr.msk.f32.mxu1 %vm223_vm0, %v202_v40 }
  0x34   : > { %796 = vmatmul.mubr.msk.f32.gmra.mrb[12].mxu0 %vm223_vm0, %v187_v41 }
  0x35   : > { %820 = vmatmul.mubr.msk.f32.gmra.mrb[12].mxu1 %vm223_vm0, %v203_v42  ;;  %798 = vmatprep.mubr.msk.f32.mxu0 %vm223_vm0, %v188_v43 }
  0x36   : > { %822 = vmatprep.mubr.msk.f32.mxu1 %vm223_vm0, %v204_v44 }
  0x38   : > { %799 = vmatmul.mubr.msk.f32.gmra.mrb[14].mxu0 %vm223_vm0, %v189_v45 }
  0x39   : > { %823 = vmatmul.mubr.msk.f32.gmra.mrb[14].mxu1 %vm223_vm0, %v205_v46 }
  0xef   : > { %v779_v48 = vpop.f32.mrb[0].mxu0 }
  0xf0   : > { %v803_v49 = vpop.f32.mrb[0].mxu1  ;;  %v396_v50 = vadd.f32 %v779_v48, %v1010_v47  ;;  %v390_v52 = vpop.f32.mrb[1].mxu0 }
  0xf1   : > { %v476_v51 = vadd.f32 %v803_v49, %v1010_v47  ;;  %v470_v53 = vpop.f32.mrb[1].mxu1  ;;  %v391_v54 = vadd.f32 %v1010_v47, %v390_v52 }
  0xf2   : > { %v471_v55 = vadd.f32 %v1010_v47, %v470_v53  ;;  %v550_v56 = vmax.f32 %v396_v50, 0.0 }
  0xf3   : > { %v566_v57 = vmax.f32 %v476_v51, 0.0  ;;  %v549_v58 = vmax.f32 %v391_v54, 0.0  ;;  %v782_v60 = vpop.f32.mrb[2].mxu0 }
  0xf4   : > { %v565_v59 = vmax.f32 %v471_v55, 0.0  ;;  %v806_v61 = vpop.f32.mrb[2].mxu1  ;;  %583 = vst.msk [vmem:[%s1019_s17 + $0x8] sm:$0xff] %vm581_vm4, %v550_v56  ;;  %v406_v62 = vadd.f32 %v782_v60, %v1010_v47  ;;  %v400_v0 = vpop.f32.mrb[3].mxu0 }
  0xf5   : > { %599 = vst.msk [vmem:[%s1019_s17 + $0x88] sm:$0xff] %vm581_vm4, %v566_v57  ;;  %v486_v63 = vadd.f32 %v806_v61, %v1010_v47  ;;  %v480_v1 = vpop.f32.mrb[3].mxu1  ;;  %582 = vst.msk [vmem:[%s1019_s17] sm:$0xff] %vm581_vm4, %v549_v58  ;;  %v401_v2 = vadd.f32 %v1010_v47, %v400_v0 }
  0xf6   : > { %598 = vst.msk [vmem:[%s1019_s17 + $0x80] sm:$0xff] %vm581_vm4, %v565_v59  ;;  %v481_v3 = vadd.f32 %v1010_v47, %v480_v1  ;;  %v552_v4 = vmax.f32 %v406_v62, 0.0 }
  0xf7   : > { %v568_v5 = vmax.f32 %v486_v63, 0.0  ;;  %v551_v6 = vmax.f32 %v401_v2, 0.0  ;;  %v785_v8 = vpop.f32.mrb[4].mxu0 }
  0xf8   : > { %v567_v7 = vmax.f32 %v481_v3, 0.0  ;;  %v809_v9 = vpop.f32.mrb[4].mxu1  ;;  %585 = vst.msk [vmem:[%s1019_s17 + $0x18] sm:$0xff] %vm581_vm4, %v552_v4  ;;  %v416_v10 = vadd.f32 %v785_v8, %v1010_v47  ;;  %v410_v12 = vpop.f32.mrb[5].mxu0 }
  0xf9   : > { %601 = vst.msk [vmem:[%s1019_s17 + $0x98] sm:$0xff] %vm581_vm4, %v568_v5  ;;  %v496_v11 = vadd.f32 %v809_v9, %v1010_v47  ;;  %v490_v13 = vpop.f32.mrb[5].mxu1  ;;  %584 = vst.msk [vmem:[%s1019_s17 + $0x10] sm:$0xff] %vm581_vm4, %v551_v6  ;;  %v411_v14 = vadd.f32 %v1010_v47, %v410_v12 }
  0xfa   : > { %600 = vst.msk [vmem:[%s1019_s17 + $0x90] sm:$0xff] %vm581_vm4, %v567_v7  ;;  %v491_v15 = vadd.f32 %v1010_v47, %v490_v13  ;;  %v554_v16 = vmax.f32 %v416_v10, 0.0 }
  0xfb   : > { %v570_v17 = vmax.f32 %v496_v11, 0.0  ;;  %v553_v18 = vmax.f32 %v411_v14, 0.0  ;;  %v788_v20 = vpop.f32.mrb[6].mxu0 }
  0xfc   : > { %v569_v19 = vmax.f32 %v491_v15, 0.0  ;;  %v812_v21 = vpop.f32.mrb[6].mxu1  ;;  %587 = vst.msk [vmem:[%s1019_s17 + $0x28] sm:$0xff] %vm581_vm4, %v554_v16  ;;  %v426_v22 = vadd.f32 %v788_v20, %v1010_v47  ;;  %v420_v24 = vpop.f32.mrb[7].mxu0 }
  0xfd   : > { %603 = vst.msk [vmem:[%s1019_s17 + $0xa8] sm:$0xff] %vm581_vm4, %v570_v17  ;;  %v506_v23 = vadd.f32 %v812_v21, %v1010_v47  ;;  %v500_v25 = vpop.f32.mrb[7].mxu1  ;;  %586 = vst.msk [vmem:[%s1019_s17 + $0x20] sm:$0xff] %vm581_vm4, %v553_v18  ;;  %v421_v26 = vadd.f32 %v1010_v47, %v420_v24 }
  0xfe   : > { %602 = vst.msk [vmem:[%s1019_s17 + $0xa0] sm:$0xff] %vm581_vm4, %v569_v19  ;;  %v501_v27 = vadd.f32 %v1010_v47, %v500_v25  ;;  %v556_v28 = vmax.f32 %v426_v22, 0.0 }
  0xff   : > { %v572_v29 = vmax.f32 %v506_v23, 0.0  ;;  %v555_v30 = vmax.f32 %v421_v26, 0.0  ;;  %v791_v32 = vpop.f32.mrb[8].mxu0 }
 0x100   : > { %v571_v31 = vmax.f32 %v501_v27, 0.0  ;;  %v815_v33 = vpop.f32.mrb[8].mxu1  ;;  %589 = vst.msk [vmem:[%s1019_s17 + $0x38] sm:$0xff] %vm581_vm4, %v556_v28  ;;  %v436_v34 = vadd.f32 %v791_v32, %v1010_v47  ;;  %v430_v36 = vpop.f32.mrb[9].mxu0 }
 0x101   : > { %605 = vst.msk [vmem:[%s1019_s17 + $0xb8] sm:$0xff] %vm581_vm4, %v572_v29  ;;  %v516_v35 = vadd.f32 %v815_v33, %v1010_v47  ;;  %v510_v37 = vpop.f32.mrb[9].mxu1  ;;  %588 = vst.msk [vmem:[%s1019_s17 + $0x30] sm:$0xff] %vm581_vm4, %v555_v30  ;;  %v431_v38 = vadd.f32 %v1010_v47, %v430_v36 }
 0x102   : > { %604 = vst.msk [vmem:[%s1019_s17 + $0xb0] sm:$0xff] %vm581_vm4, %v571_v31  ;;  %v511_v39 = vadd.f32 %v1010_v47, %v510_v37  ;;  %v558_v40 = vmax.f32 %v436_v34, 0.0 }
 0x103   : > { %v574_v41 = vmax.f32 %v516_v35, 0.0  ;;  %v557_v42 = vmax.f32 %v431_v38, 0.0  ;;  %v794_v44 = vpop.f32.mrb[10].mxu0 }
 0x104   : > { %v573_v43 = vmax.f32 %v511_v39, 0.0  ;;  %v818_v45 = vpop.f32.mrb[10].mxu1  ;;  %591 = vst.msk [vmem:[%s1019_s17 + $0x48] sm:$0xff] %vm581_vm4, %v558_v40  ;;  %v446_v46 = vadd.f32 %v794_v44, %v1010_v47  ;;  %v440_v49 = vpop.f32.mrb[11].mxu0 }
 0x105   : > { %607 = vst.msk [vmem:[%s1019_s17 + $0xc8] sm:$0xff] %vm581_vm4, %v574_v41  ;;  %v526_v48 = vadd.f32 %v818_v45, %v1010_v47  ;;  %v520_v50 = vpop.f32.mrb[11].mxu1  ;;  %590 = vst.msk [vmem:[%s1019_s17 + $0x40] sm:$0xff] %vm581_vm4, %v557_v42  ;;  %v441_v51 = vadd.f32 %v1010_v47, %v440_v49 }
 0x106   : > { %606 = vst.msk [vmem:[%s1019_s17 + $0xc0] sm:$0xff] %vm581_vm4, %v573_v43  ;;  %v521_v52 = vadd.f32 %v1010_v47, %v520_v50  ;;  %v560_v53 = vmax.f32 %v446_v46, 0.0 }
 0x107   : > { %v576_v54 = vmax.f32 %v526_v48, 0.0  ;;  %v559_v55 = vmax.f32 %v441_v51, 0.0  ;;  %v797_v57 = vpop.f32.mrb[12].mxu0 }
 0x108   : > { %v575_v56 = vmax.f32 %v521_v52, 0.0  ;;  %v821_v58 = vpop.f32.mrb[12].mxu1  ;;  %593 = vst.msk [vmem:[%s1019_s17 + $0x58] sm:$0xff] %vm581_vm4, %v560_v53  ;;  %v456_v59 = vadd.f32 %v797_v57, %v1010_v47  ;;  %v450_v61 = vpop.f32.mrb[13].mxu0 }
 0x109   : > { %609 = vst.msk [vmem:[%s1019_s17 + $0xd8] sm:$0xff] %vm581_vm4, %v576_v54  ;;  %v536_v60 = vadd.f32 %v821_v58, %v1010_v47  ;;  %v530_v62 = vpop.f32.mrb[13].mxu1  ;;  %592 = vst.msk [vmem:[%s1019_s17 + $0x50] sm:$0xff] %vm581_vm4, %v559_v55  ;;  %v451_v63 = vadd.f32 %v1010_v47, %v450_v61 }
 0x10a   : > { %608 = vst.msk [vmem:[%s1019_s17 + $0xd0] sm:$0xff] %vm581_vm4, %v575_v56  ;;  %v531_v0 = vadd.f32 %v1010_v47, %v530_v62  ;;  %v562_v1 = vmax.f32 %v456_v59, 0.0 }
 0x10b   : > { %v578_v2 = vmax.f32 %v536_v60, 0.0  ;;  %v561_v3 = vmax.f32 %v451_v63, 0.0  ;;  %v800_v5 = vpop.f32.mrb[14].mxu0 }
 0x10c   : > { %v577_v4 = vmax.f32 %v531_v0, 0.0  ;;  %v824_v6 = vpop.f32.mrb[14].mxu1  ;;  %595 = vst.msk [vmem:[%s1019_s17 + $0x68] sm:$0xff] %vm581_vm4, %v562_v1  ;;  %v466_v7 = vadd.f32 %v800_v5, %v1010_v47  ;;  %v460_v9 = vpop.f32.mrb[15].mxu0 }
 0x10d   : > { %611 = vst.msk [vmem:[%s1019_s17 + $0xe8] sm:$0xff] %vm581_vm4, %v578_v2  ;;  %v546_v8 = vadd.f32 %v824_v6, %v1010_v47  ;;  %v540_v10 = vpop.f32.mrb[15].mxu1  ;;  %594 = vst.msk [vmem:[%s1019_s17 + $0x60] sm:$0xff] %vm581_vm4, %v561_v3  ;;  %v461_v11 = vadd.f32 %v1010_v47, %v460_v9 }
 0x10e   : > { %610 = vst.msk [vmem:[%s1019_s17 + $0xe0] sm:$0xff] %vm581_vm4, %v577_v4  ;;  %v541_v12 = vadd.f32 %v1010_v47, %v540_v10  ;;  %v564_v13 = vmax.f32 %v466_v7, 0.0 }
 0x10f   : > { %v580_v14 = vmax.f32 %v546_v8, 0.0  ;;  %v563_v15 = vmax.f32 %v461_v11, 0.0 }
 0x110   : > { %v579_v16 = vmax.f32 %v541_v12, 0.0  ;;  %597 = vst.msk [vmem:[%s1019_s17 + $0x78] sm:$0xff] %vm581_vm4, %v564_v13 }
 0x111   : > { %613 = vst.msk [vmem:[%s1019_s17 + $0xf8] sm:$0xff] %vm581_vm4, %v580_v14  ;;  %596 = vst.msk [vmem:[%s1019_s17 + $0x70] sm:$0xff] %vm581_vm4, %v563_v15 }
 0x112   : > { %612 = vst.msk [vmem:[%s1019_s17 + $0xf0] sm:$0xff] %vm581_vm4, %v579_v16 }
 0x113 PF: > { %s13_s12 = sadd.s32 1, %s872_s12  }
 0x114   : > { %p10_p4 = scmp.ge.s32.totalorder %s13_s12, 9  }
 0x116   :  { %12 = sbr.rel (!%p10_p4) target bundleno = 1 (0x1), region = 62 }

// kernel: cnnleaf_forward.6
= control target key start
LH: loop header
LB: loop body
LE: loop exit
PB: predicated region body
PF: predicated region fallthrough
CT: control target
= control target key end

     0   :  { %vm360_vm0 = vcmask 261120   ;;  %s1223_s0 = inlined_call_operand.vmem [shape: f32[392,32], index: 0, kind: input, shape index: {}]   ;;  %s1224_s1 = inlined_call_operand.vmem [shape: f32[392,32], index: 1, kind: input, shape index: {}]   ;;  %s1225_s2 = inlined_call_operand.vmem [shape: f32[392,32], index: 2, kind: input, shape index: {}]   ;;  %s1226_s3 = inlined_call_operand.vmem [shape: f32[392,32], index: 3, kind: input, shape index: {}]   ;;  %s1227_s4 = inlined_call_operand.vmem [shape: f32[392,32], index: 4, kind: output, shape index: {}]  }
   0x1   :  { %v17_v0 = vld [vmem:[%s1223_s0] sm:$0xff]  ;;  %v18_v5 = vld [vmem:[%s1223_s0 + $0x8] sm:$0xff]  ;;  %v19_v11 = vld [vmem:[%s1223_s0 + $0x10] sm:$0xff] }
   0x2   :  { %v66_v1 = vld [vmem:[%s1224_s1] sm:$0xff]  ;;  %v67_v6 = vld [vmem:[%s1224_s1 + $0x8] sm:$0xff]  ;;  %v68_v13 = vld [vmem:[%s1224_s1 + $0x10] sm:$0xff] }
   0x3   :  { %v164_v2 = vld [vmem:[%s1225_s2] sm:$0xff]  ;;  %v115_v3 = vmax.f32 %v17_v0, %v66_v1  ;;  %v116_v8 = vmax.f32 %v18_v5, %v67_v6  ;;  %v165_v9 = vld [vmem:[%s1225_s2 + $0x8] sm:$0xff]  ;;  %v166_v14 = vld [vmem:[%s1225_s2 + $0x10] sm:$0xff]  ;;  %v117_v17 = vmax.f32 %v19_v11, %v68_v13 }
   0x4   :  { %v213_v4 = vld [vmem:[%s1226_s3] sm:$0xff]  ;;  %v214_v10 = vld [vmem:[%s1226_s3 + $0x8] sm:$0xff]  ;;  %v215_v15 = vld [vmem:[%s1226_s3 + $0x10] sm:$0xff] }
   0x5   :  { %v262_v7 = vmax.f32 %v164_v2, %v213_v4  ;;  %v263_v12 = vmax.f32 %v165_v9, %v214_v10  ;;  %v264_v18 = vmax.f32 %v166_v14, %v215_v15  ;;  %v20_v19 = vld [vmem:[%s1223_s0 + $0x18] sm:$0xff]  ;;  %v21_v25 = vld [vmem:[%s1223_s0 + $0x20] sm:$0xff]  ;;  %v22_v32 = vld [vmem:[%s1223_s0 + $0x28] sm:$0xff] }
   0x6   :  { %v69_v20 = vld [vmem:[%s1224_s1 + $0x18] sm:$0xff]  ;;  %v70_v26 = vld [vmem:[%s1224_s1 + $0x20] sm:$0xff]  ;;  %v71_v34 = vld [vmem:[%s1224_s1 + $0x28] sm:$0xff] }
   0x7   :  { %v311_v16 = vmax.f32 %v115_v3, %v262_v7  ;;  %v167_v21 = vld [vmem:[%s1225_s2 + $0x18] sm:$0xff]  ;;  %v312_v22 = vmax.f32 %v116_v8, %v263_v12  ;;  %v118_v23 = vmax.f32 %v20_v19, %v69_v20  ;;  %v313_v27 = vmax.f32 %v117_v17, %v264_v18  ;;  %v168_v30 = vld [vmem:[%s1225_s2 + $0x20] sm:$0xff]  ;;  %v169_v35 = vld [vmem:[%s1225_s2 + $0x28] sm:$0xff] }
   0x8   :  { %v216_v24 = vld [vmem:[%s1226_s3 + $0x18] sm:$0xff]  ;;  %v119_v29 = vmax.f32 %v21_v25, %v70_v26  ;;  %v217_v31 = vld [vmem:[%s1226_s3 + $0x20] sm:$0xff]  ;;  %v218_v36 = vld [vmem:[%s1226_s3 + $0x28] sm:$0xff]  ;;  %v120_v38 = vmax.f32 %v22_v32, %v71_v34 }
   0x9   :  { %361 = vst.msk [vmem:[%s1227_s4] sm:$0xff] %vm360_vm0, %v311_v16  ;;  %v265_v28 = vmax.f32 %v167_v21, %v216_v24  ;;  %362 = vst.msk [vmem:[%s1227_s4 + $0x8] sm:$0xff] %vm360_vm0, %v312_v22  ;;  %v266_v33 = vmax.f32 %v168_v30, %v217_v31  ;;  %v267_v39 = vmax.f32 %v169_v35, %v218_v36  ;;  %v23_v40 = vld [vmem:[%s1223_s0 + $0x30] sm:$0xff]  ;;  %v24_v46 = vld [vmem:[%s1223_s0 + $0x38] sm:$0xff] }
   0xa   :  { %363 = vst.msk [vmem:[%s1227_s4 + $0x10] sm:$0xff] %vm360_vm0, %v313_v27  ;;  %v72_v41 = vld [vmem:[%s1224_s1 + $0x30] sm:$0xff]  ;;  %v73_v47 = vld [vmem:[%s1224_s1 + $0x38] sm:$0xff]  ;;  %v25_v53 = vld [vmem:[%s1223_s0 + $0x40] sm:$0xff] }
   0xb   :  { %v314_v37 = vmax.f32 %v118_v23, %v265_v28  ;;  %v170_v42 = vld [vmem:[%s1225_s2 + $0x30] sm:$0xff]  ;;  %v315_v43 = vmax.f32 %v119_v29, %v266_v33  ;;  %v121_v44 = vmax.f32 %v23_v40, %v72_v41  ;;  %v316_v48 = vmax.f32 %v120_v38, %v267_v39  ;;  %v171_v51 = vld [vmem:[%s1225_s2 + $0x38] sm:$0xff]  ;;  %v74_v55 = vld [vmem:[%s1224_s1 + $0x40] sm:$0xff] }
   0xc   :  { %v219_v45 = vld [vmem:[%s1226_s3 + $0x30] sm:$0xff]  ;;  %v122_v50 = vmax.f32 %v24_v46, %v73_v47  ;;  %v220_v52 = vld [vmem:[%s1226_s3 + $0x38] sm:$0xff]  ;;  %v172_v56 = vld [vmem:[%s1225_s2 + $0x40] sm:$0xff]  ;;  %v123_v59 = vmax.f32 %v25_v53, %v74_v55 }
   0xd   :  { %364 = vst.msk [vmem:[%s1227_s4 + $0x18] sm:$0xff] %vm360_vm0, %v314_v37  ;;  %v268_v49 = vmax.f32 %v170_v42, %v219_v45  ;;  %365 = vst.msk [vmem:[%s1227_s4 + $0x20] sm:$0xff] %vm360_vm0, %v315_v43  ;;  %v269_v54 = vmax.f32 %v171_v51, %v220_v52  ;;  %v221_v57 = vld [vmem:[%s1226_s3 + $0x40] sm:$0xff]  ;;  %v26_v61 = vld [vmem:[%s1223_s0 + $0x48] sm:$0xff] }
   0xe   :  { %366 = vst.msk [vmem:[%s1227_s4 + $0x28] sm:$0xff] %vm360_vm0, %v316_v48  ;;  %v270_v60 = vmax.f32 %v172_v56, %v221_v57  ;;  %v75_v62 = vld [vmem:[%s1224_s1 + $0x48] sm:$0xff]  ;;  %v27_v3 = vld [vmem:[%s1223_s0 + $0x50] sm:$0xff]  ;;  %v28_v10 = vld [vmem:[%s1223_s0 + $0x58] sm:$0xff] }
   0xf   :  { %v317_v58 = vmax.f32 %v121_v44, %v268_v49  ;;  %v173_v63 = vld [vmem:[%s1225_s2 + $0x48] sm:$0xff]  ;;  %v318_v0 = vmax.f32 %v122_v50, %v269_v54  ;;  %v124_v1 = vmax.f32 %v26_v61, %v75_v62  ;;  %v76_v4 = vld [vmem:[%s1224_s1 + $0x50] sm:$0xff]  ;;  %v77_v12 = vld [vmem:[%s1224_s1 + $0x58] sm:$0xff] }
  0x10   :  { %v222_v2 = vld [vmem:[%s1226_s3 + $0x48] sm:$0xff]  ;;  %v319_v5 = vmax.f32 %v123_v59, %v270_v60  ;;  %v125_v7 = vmax.f32 %v27_v3, %v76_v4  ;;  %v174_v8 = vld [vmem:[%s1225_s2 + $0x50] sm:$0xff]  ;;  %v175_v13 = vld [vmem:[%s1225_s2 + $0x58] sm:$0xff]  ;;  %v126_v16 = vmax.f32 %v28_v10, %v77_v12 }
  0x11   :  { %367 = vst.msk [vmem:[%s1227_s4 + $0x30] sm:$0xff] %vm360_vm0, %v317_v58  ;;  %v271_v6 = vmax.f32 %v173_v63, %v222_v2  ;;  %v223_v9 = vld [vmem:[%s1226_s3 + $0x50] sm:$0xff]  ;;  %368 = vst.msk [vmem:[%s1227_s4 + $0x38] sm:$0xff] %vm360_vm0, %v318_v0  ;;  %v224_v14 = vld [vmem:[%s1226_s3 + $0x58] sm:$0xff] }
  0x12   :  { %v272_v11 = vmax.f32 %v174_v8, %v223_v9  ;;  %369 = vst.msk [vmem:[%s1227_s4 + $0x40] sm:$0xff] %vm360_vm0, %v319_v5  ;;  %v273_v17 = vmax.f32 %v175_v13, %v224_v14  ;;  %v29_v18 = vld [vmem:[%s1223_s0 + $0x60] sm:$0xff]  ;;  %v30_v24 = vld [vmem:[%s1223_s0 + $0x68] sm:$0xff]  ;;  %v31_v31 = vld [vmem:[%s1223_s0 + $0x70] sm:$0xff] }
  0x13   :  { %v320_v15 = vmax.f32 %v124_v1, %v271_v6  ;;  %v78_v19 = vld [vmem:[%s1224_s1 + $0x60] sm:$0xff]  ;;  %v79_v25 = vld [vmem:[%s1224_s1 + $0x68] sm:$0xff]  ;;  %v80_v33 = vld [vmem:[%s1224_s1 + $0x70] sm:$0xff] }
  0x14   :  { %v176_v20 = vld [vmem:[%s1225_s2 + $0x60] sm:$0xff]  ;;  %v321_v21 = vmax.f32 %v125_v7, %v272_v11  ;;  %v127_v22 = vmax.f32 %v29_v18, %v78_v19  ;;  %v322_v26 = vmax.f32 %v126_v16, %v273_v17  ;;  %v128_v28 = vmax.f32 %v30_v24, %v79_v25  ;;  %v177_v29 = vld [vmem:[%s1225_s2 + $0x68] sm:$0xff]  ;;  %v178_v34 = vld [vmem:[%s1225_s2 + $0x70] sm:$0xff] }
  0x15   :  { %v225_v23 = vld [vmem:[%s1226_s3 + $0x60] sm:$0xff]  ;;  %370 = vst.msk [vmem:[%s1227_s4 + $0x48] sm:$0xff] %vm360_vm0, %v320_v15  ;;  %v226_v30 = vld [vmem:[%s1226_s3 + $0x68] sm:$0xff]  ;;  %v227_v35 = vld [vmem:[%s1226_s3 + $0x70] sm:$0xff]  ;;  %v129_v37 = vmax.f32 %v31_v31, %v80_v33 }
  0x16   :  { %v274_v27 = vmax.f32 %v176_v20, %v225_v23  ;;  %371 = vst.msk [vmem:[%s1227_s4 + $0x50] sm:$0xff] %vm360_vm0, %v321_v21  ;;  %v275_v32 = vmax.f32 %v177_v29, %v226_v30  ;;  %372 = vst.msk [vmem:[%s1227_s4 + $0x58] sm:$0xff] %vm360_vm0, %v322_v26  ;;  %v276_v38 = vmax.f32 %v178_v34, %v227_v35  ;;  %v32_v39 = vld [vmem:[%s1223_s0 + $0x78] sm:$0xff]  ;;  %v33_v45 = vld [vmem:[%s1223_s0 + $0x80] sm:$0xff] }
  0x17   :  { %v81_v40 = vld [vmem:[%s1224_s1 + $0x78] sm:$0xff]  ;;  %v82_v46 = vld [vmem:[%s1224_s1 + $0x80] sm:$0xff]  ;;  %v34_v52 = vld [vmem:[%s1223_s0 + $0x88] sm:$0xff] }
  0x18   :  { %v323_v36 = vmax.f32 %v127_v22, %v274_v27  ;;  %v179_v41 = vld [vmem:[%s1225_s2 + $0x78] sm:$0xff]  ;;  %v324_v42 = vmax.f32 %v128_v28, %v275_v32  ;;  %v130_v43 = vmax.f32 %v32_v39, %v81_v40  ;;  %v325_v47 = vmax.f32 %v129_v37, %v276_v38  ;;  %v180_v50 = vld [vmem:[%s1225_s2 + $0x80] sm:$0xff]  ;;  %v83_v54 = vld [vmem:[%s1224_s1 + $0x88] sm:$0xff] }
  0x19   :  { %v228_v44 = vld [vmem:[%s1226_s3 + $0x78] sm:$0xff]  ;;  %v131_v49 = vmax.f32 %v33_v45, %v82_v46  ;;  %v229_v51 = vld [vmem:[%s1226_s3 + $0x80] sm:$0xff]  ;;  %v181_v55 = vld [vmem:[%s1225_s2 + $0x88] sm:$0xff]  ;;  %v132_v58 = vmax.f32 %v34_v52, %v83_v54 }
  0x1a   :  { %373 = vst.msk [vmem:[%s1227_s4 + $0x60] sm:$0xff] %vm360_vm0, %v323_v36  ;;  %v277_v48 = vmax.f32 %v179_v41, %v228_v44  ;;  %374 = vst.msk [vmem:[%s1227_s4 + $0x68] sm:$0xff] %vm360_vm0, %v324_v42  ;;  %v278_v53 = vmax.f32 %v180_v50, %v229_v51  ;;  %v230_v56 = vld [vmem:[%s1226_s3 + $0x88] sm:$0xff]  ;;  %v35_v60 = vld [vmem:[%s1223_s0 + $0x90] sm:$0xff] }
  0x1b   :  { %375 = vst.msk [vmem:[%s1227_s4 + $0x70] sm:$0xff] %vm360_vm0, %v325_v47  ;;  %v279_v59 = vmax.f32 %v181_v55, %v230_v56  ;;  %v84_v61 = vld [vmem:[%s1224_s1 + $0x90] sm:$0xff]  ;;  %v36_v2 = vld [vmem:[%s1223_s0 + $0x98] sm:$0xff]  ;;  %v37_v9 = vld [vmem:[%s1223_s0 + $0xa0] sm:$0xff] }
  0x1c   :  { %v326_v57 = vmax.f32 %v130_v43, %v277_v48  ;;  %v182_v62 = vld [vmem:[%s1225_s2 + $0x90] sm:$0xff]  ;;  %v327_v63 = vmax.f32 %v131_v49, %v278_v53  ;;  %v133_v0 = vmax.f32 %v35_v60, %v84_v61  ;;  %v85_v3 = vld [vmem:[%s1224_s1 + $0x98] sm:$0xff]  ;;  %v86_v11 = vld [vmem:[%s1224_s1 + $0xa0] sm:$0xff] }
  0x1d   :  { %v231_v1 = vld [vmem:[%s1226_s3 + $0x90] sm:$0xff]  ;;  %v328_v4 = vmax.f32 %v132_v58, %v279_v59  ;;  %v134_v6 = vmax.f32 %v36_v2, %v85_v3  ;;  %v183_v7 = vld [vmem:[%s1225_s2 + $0x98] sm:$0xff]  ;;  %v184_v12 = vld [vmem:[%s1225_s2 + $0xa0] sm:$0xff]  ;;  %v135_v15 = vmax.f32 %v37_v9, %v86_v11 }
  0x1e   :  { %376 = vst.msk [vmem:[%s1227_s4 + $0x78] sm:$0xff] %vm360_vm0, %v326_v57  ;;  %v280_v5 = vmax.f32 %v182_v62, %v231_v1  ;;  %v232_v8 = vld [vmem:[%s1226_s3 + $0x98] sm:$0xff]  ;;  %377 = vst.msk [vmem:[%s1227_s4 + $0x80] sm:$0xff] %vm360_vm0, %v327_v63  ;;  %v233_v13 = vld [vmem:[%s1226_s3 + $0xa0] sm:$0xff] }
  0x1f   :  { %v281_v10 = vmax.f32 %v183_v7, %v232_v8  ;;  %378 = vst.msk [vmem:[%s1227_s4 + $0x88] sm:$0xff] %vm360_vm0, %v328_v4  ;;  %v282_v16 = vmax.f32 %v184_v12, %v233_v13  ;;  %v38_v17 = vld [vmem:[%s1223_s0 + $0xa8] sm:$0xff]  ;;  %v39_v23 = vld [vmem:[%s1223_s0 + $0xb0] sm:$0xff]  ;;  %v40_v30 = vld [vmem:[%s1223_s0 + $0xb8] sm:$0xff] }
  0x20   :  { %v329_v14 = vmax.f32 %v133_v0, %v280_v5  ;;  %v87_v18 = vld [vmem:[%s1224_s1 + $0xa8] sm:$0xff]  ;;  %v88_v24 = vld [vmem:[%s1224_s1 + $0xb0] sm:$0xff]  ;;  %v89_v32 = vld [vmem:[%s1224_s1 + $0xb8] sm:$0xff] }
  0x21   :  { %v185_v19 = vld [vmem:[%s1225_s2 + $0xa8] sm:$0xff]  ;;  %v330_v20 = vmax.f32 %v134_v6, %v281_v10  ;;  %v136_v21 = vmax.f32 %v38_v17, %v87_v18  ;;  %v331_v25 = vmax.f32 %v135_v15, %v282_v16  ;;  %v137_v27 = vmax.f32 %v39_v23, %v88_v24  ;;  %v186_v28 = vld [vmem:[%s1225_s2 + $0xb0] sm:$0xff]  ;;  %v187_v33 = vld [vmem:[%s1225_s2 + $0xb8] sm:$0xff] }
  0x22   :  { %v234_v22 = vld [vmem:[%s1226_s3 + $0xa8] sm:$0xff]  ;;  %379 = vst.msk [vmem:[%s1227_s4 + $0x90] sm:$0xff] %vm360_vm0, %v329_v14  ;;  %v235_v29 = vld [vmem:[%s1226_s3 + $0xb0] sm:$0xff]  ;;  %v236_v34 = vld [vmem:[%s1226_s3 + $0xb8] sm:$0xff]  ;;  %v138_v36 = vmax.f32 %v40_v30, %v89_v32 }
  0x23   :  { %v283_v26 = vmax.f32 %v185_v19, %v234_v22  ;;  %380 = vst.msk [vmem:[%s1227_s4 + $0x98] sm:$0xff] %vm360_vm0, %v330_v20  ;;  %v284_v31 = vmax.f32 %v186_v28, %v235_v29  ;;  %381 = vst.msk [vmem:[%s1227_s4 + $0xa0] sm:$0xff] %vm360_vm0, %v331_v25  ;;  %v285_v37 = vmax.f32 %v187_v33, %v236_v34  ;;  %v41_v38 = vld [vmem:[%s1223_s0 + $0xc0] sm:$0xff]  ;;  %v42_v44 = vld [vmem:[%s1223_s0 + $0xc8] sm:$0xff] }
  0x24   :  { %v90_v39 = vld [vmem:[%s1224_s1 + $0xc0] sm:$0xff]  ;;  %v91_v45 = vld [vmem:[%s1224_s1 + $0xc8] sm:$0xff]  ;;  %v43_v51 = vld [vmem:[%s1223_s0 + $0xd0] sm:$0xff] }
  0x25   :  { %v332_v35 = vmax.f32 %v136_v21, %v283_v26  ;;  %v188_v40 = vld [vmem:[%s1225_s2 + $0xc0] sm:$0xff]  ;;  %v333_v41 = vmax.f32 %v137_v27, %v284_v31  ;;  %v139_v42 = vmax.f32 %v41_v38, %v90_v39  ;;  %v334_v46 = vmax.f32 %v138_v36, %v285_v37  ;;  %v189_v49 = vld [vmem:[%s1225_s2 + $0xc8] sm:$0xff]  ;;  %v92_v53 = vld [vmem:[%s1224_s1 + $0xd0] sm:$0xff] }
  0x26   :  { %v237_v43 = vld [vmem:[%s1226_s3 + $0xc0] sm:$0xff]  ;;  %v140_v48 = vmax.f32 %v42_v44, %v91_v45  ;;  %v238_v50 = vld [vmem:[%s1226_s3 + $0xc8] sm:$0xff]  ;;  %v190_v54 = vld [vmem:[%s1225_s2 + $0xd0] sm:$0xff]  ;;  %v141_v57 = vmax.f32 %v43_v51, %v92_v53 }
  0x27   :  { %382 = vst.msk [vmem:[%s1227_s4 + $0xa8] sm:$0xff] %vm360_vm0, %v332_v35  ;;  %v286_v47 = vmax.f32 %v188_v40, %v237_v43  ;;  %383 = vst.msk [vmem:[%s1227_s4 + $0xb0] sm:$0xff] %vm360_vm0, %v333_v41  ;;  %v287_v52 = vmax.f32 %v189_v49, %v238_v50  ;;  %v239_v55 = vld [vmem:[%s1226_s3 + $0xd0] sm:$0xff]  ;;  %v44_v59 = vld [vmem:[%s1223_s0 + $0xd8] sm:$0xff] }
  0x28   :  { %384 = vst.msk [vmem:[%s1227_s4 + $0xb8] sm:$0xff] %vm360_vm0, %v334_v46  ;;  %v288_v58 = vmax.f32 %v190_v54, %v239_v55  ;;  %v93_v60 = vld [vmem:[%s1224_s1 + $0xd8] sm:$0xff]  ;;  %v45_v1 = vld [vmem:[%s1223_s0 + $0xe0] sm:$0xff]  ;;  %v46_v8 = vld [vmem:[%s1223_s0 + $0xe8] sm:$0xff] }
  0x29   :  { %v335_v56 = vmax.f32 %v139_v42, %v286_v47  ;;  %v191_v61 = vld [vmem:[%s1225_s2 + $0xd8] sm:$0xff]  ;;  %v336_v62 = vmax.f32 %v140_v48, %v287_v52  ;;  %v142_v63 = vmax.f32 %v44_v59, %v93_v60  ;;  %v94_v2 = vld [vmem:[%s1224_s1 + $0xe0] sm:$0xff]  ;;  %v95_v10 = vld [vmem:[%s1224_s1 + $0xe8] sm:$0xff] }
  0x2a   :  { %v240_v0 = vld [vmem:[%s1226_s3 + $0xd8] sm:$0xff]  ;;  %v337_v3 = vmax.f32 %v141_v57, %v288_v58  ;;  %v143_v5 = vmax.f32 %v45_v1, %v94_v2  ;;  %v192_v6 = vld [vmem:[%s1225_s2 + $0xe0] sm:$0xff]  ;;  %v193_v11 = vld [vmem:[%s1225_s2 + $0xe8] sm:$0xff]  ;;  %v144_v14 = vmax.f32 %v46_v8, %v95_v10 }
  0x2b   :  { %385 = vst.msk [vmem:[%s1227_s4 + $0xc0] sm:$0xff] %vm360_vm0, %v335_v56  ;;  %v289_v4 = vmax.f32 %v191_v61, %v240_v0  ;;  %v241_v7 = vld [vmem:[%s1226_s3 + $0xe0] sm:$0xff]  ;;  %386 = vst.msk [vmem:[%s1227_s4 + $0xc8] sm:$0xff] %vm360_vm0, %v336_v62  ;;  %v242_v12 = vld [vmem:[%s1226_s3 + $0xe8] sm:$0xff] }
  0x2c   :  { %v290_v9 = vmax.f32 %v192_v6, %v241_v7  ;;  %387 = vst.msk [vmem:[%s1227_s4 + $0xd0] sm:$0xff] %vm360_vm0, %v337_v3  ;;  %v291_v15 = vmax.f32 %v193_v11, %v242_v12  ;;  %v47_v16 = vld [vmem:[%s1223_s0 + $0xf0] sm:$0xff]  ;;  %v48_v22 = vld [vmem:[%s1223_s0 + $0xf8] sm:$0xff]  ;;  %v49_v29 = vld [vmem:[%s1223_s0 + $0x100] sm:$0xff] }
  0x2d   :  { %v338_v13 = vmax.f32 %v142_v63, %v289_v4  ;;  %v96_v17 = vld [vmem:[%s1224_s1 + $0xf0] sm:$0xff]  ;;  %v97_v23 = vld [vmem:[%s1224_s1 + $0xf8] sm:$0xff]  ;;  %v98_v31 = vld [vmem:[%s1224_s1 + $0x100] sm:$0xff] }
  0x2e   :  { %v194_v18 = vld [vmem:[%s1225_s2 + $0xf0] sm:$0xff]  ;;  %v339_v19 = vmax.f32 %v143_v5, %v290_v9  ;;  %v145_v20 = vmax.f32 %v47_v16, %v96_v17  ;;  %v340_v24 = vmax.f32 %v144_v14, %v291_v15  ;;  %v146_v26 = vmax.f32 %v48_v22, %v97_v23  ;;  %v195_v27 = vld [vmem:[%s1225_s2 + $0xf8] sm:$0xff]  ;;  %v196_v32 = vld [vmem:[%s1225_s2 + $0x100] sm:$0xff] }
  0x2f   :  { %v243_v21 = vld [vmem:[%s1226_s3 + $0xf0] sm:$0xff]  ;;  %388 = vst.msk [vmem:[%s1227_s4 + $0xd8] sm:$0xff] %vm360_vm0, %v338_v13  ;;  %v244_v28 = vld [vmem:[%s1226_s3 + $0xf8] sm:$0xff]  ;;  %v245_v33 = vld [vmem:[%s1226_s3 + $0x100] sm:$0xff]  ;;  %v147_v35 = vmax.f32 %v49_v29, %v98_v31 }
  0x30   :  { %v292_v25 = vmax.f32 %v194_v18, %v243_v21  ;;  %389 = vst.msk [vmem:[%s1227_s4 + $0xe0] sm:$0xff] %vm360_vm0, %v339_v19  ;;  %v293_v30 = vmax.f32 %v195_v27, %v244_v28  ;;  %390 = vst.msk [vmem:[%s1227_s4 + $0xe8] sm:$0xff] %vm360_vm0, %v340_v24  ;;  %v294_v36 = vmax.f32 %v196_v32, %v245_v33  ;;  %v50_v37 = vld [vmem:[%s1223_s0 + $0x108] sm:$0xff]  ;;  %v51_v43 = vld [vmem:[%s1223_s0 + $0x110] sm:$0xff] }
  0x31   :  { %v99_v38 = vld [vmem:[%s1224_s1 + $0x108] sm:$0xff]  ;;  %v100_v44 = vld [vmem:[%s1224_s1 + $0x110] sm:$0xff]  ;;  %v52_v50 = vld [vmem:[%s1223_s0 + $0x118] sm:$0xff] }
  0x32   :  { %v341_v34 = vmax.f32 %v145_v20, %v292_v25  ;;  %v197_v39 = vld [vmem:[%s1225_s2 + $0x108] sm:$0xff]  ;;  %v342_v40 = vmax.f32 %v146_v26, %v293_v30  ;;  %v148_v41 = vmax.f32 %v50_v37, %v99_v38  ;;  %v343_v45 = vmax.f32 %v147_v35, %v294_v36  ;;  %v198_v48 = vld [vmem:[%s1225_s2 + $0x110] sm:$0xff]  ;;  %v101_v52 = vld [vmem:[%s1224_s1 + $0x118] sm:$0xff] }
  0x33   :  { %v246_v42 = vld [vmem:[%s1226_s3 + $0x108] sm:$0xff]  ;;  %v149_v47 = vmax.f32 %v51_v43, %v100_v44  ;;  %v247_v49 = vld [vmem:[%s1226_s3 + $0x110] sm:$0xff]  ;;  %v199_v53 = vld [vmem:[%s1225_s2 + $0x118] sm:$0xff]  ;;  %v150_v56 = vmax.f32 %v52_v50, %v101_v52 }
  0x34   :  { %391 = vst.msk [vmem:[%s1227_s4 + $0xf0] sm:$0xff] %vm360_vm0, %v341_v34  ;;  %v295_v46 = vmax.f32 %v197_v39, %v246_v42  ;;  %392 = vst.msk [vmem:[%s1227_s4 + $0xf8] sm:$0xff] %vm360_vm0, %v342_v40  ;;  %v296_v51 = vmax.f32 %v198_v48, %v247_v49  ;;  %v248_v54 = vld [vmem:[%s1226_s3 + $0x118] sm:$0xff]  ;;  %v53_v58 = vld [vmem:[%s1223_s0 + $0x120] sm:$0xff] }
  0x35   :  { %393 = vst.msk [vmem:[%s1227_s4 + $0x100] sm:$0xff] %vm360_vm0, %v343_v45  ;;  %v297_v57 = vmax.f32 %v199_v53, %v248_v54  ;;  %v102_v59 = vld [vmem:[%s1224_s1 + $0x120] sm:$0xff]  ;;  %v54_v0 = vld [vmem:[%s1223_s0 + $0x128] sm:$0xff]  ;;  %v55_v7 = vld [vmem:[%s1223_s0 + $0x130] sm:$0xff] }
  0x36   :  { %v344_v55 = vmax.f32 %v148_v41, %v295_v46  ;;  %v200_v60 = vld [vmem:[%s1225_s2 + $0x120] sm:$0xff]  ;;  %v345_v61 = vmax.f32 %v149_v47, %v296_v51  ;;  %v151_v62 = vmax.f32 %v53_v58, %v102_v59  ;;  %v103_v1 = vld [vmem:[%s1224_s1 + $0x128] sm:$0xff]  ;;  %v104_v9 = vld [vmem:[%s1224_s1 + $0x130] sm:$0xff] }
  0x37   :  { %v249_v63 = vld [vmem:[%s1226_s3 + $0x120] sm:$0xff]  ;;  %v346_v2 = vmax.f32 %v150_v56, %v297_v57  ;;  %v152_v4 = vmax.f32 %v54_v0, %v103_v1  ;;  %v201_v5 = vld [vmem:[%s1225_s2 + $0x128] sm:$0xff]  ;;  %v202_v10 = vld [vmem:[%s1225_s2 + $0x130] sm:$0xff]  ;;  %v153_v13 = vmax.f32 %v55_v7, %v104_v9 }
  0x38   :  { %394 = vst.msk [vmem:[%s1227_s4 + $0x108] sm:$0xff] %vm360_vm0, %v344_v55  ;;  %v298_v3 = vmax.f32 %v200_v60, %v249_v63  ;;  %v250_v6 = vld [vmem:[%s1226_s3 + $0x128] sm:$0xff]  ;;  %395 = vst.msk [vmem:[%s1227_s4 + $0x110] sm:$0xff] %vm360_vm0, %v345_v61  ;;  %v251_v11 = vld [vmem:[%s1226_s3 + $0x130] sm:$0xff] }
  0x39   :  { %v299_v8 = vmax.f32 %v201_v5, %v250_v6  ;;  %396 = vst.msk [vmem:[%s1227_s4 + $0x118] sm:$0xff] %vm360_vm0, %v346_v2  ;;  %v300_v14 = vmax.f32 %v202_v10, %v251_v11  ;;  %v56_v15 = vld [vmem:[%s1223_s0 + $0x138] sm:$0xff]  ;;  %v57_v21 = vld [vmem:[%s1223_s0 + $0x140] sm:$0xff]  ;;  %v58_v28 = vld [vmem:[%s1223_s0 + $0x148] sm:$0xff] }
  0x3a   :  { %v347_v12 = vmax.f32 %v151_v62, %v298_v3  ;;  %v105_v16 = vld [vmem:[%s1224_s1 + $0x138] sm:$0xff]  ;;  %v106_v22 = vld [vmem:[%s1224_s1 + $0x140] sm:$0xff]  ;;  %v107_v30 = vld [vmem:[%s1224_s1 + $0x148] sm:$0xff] }
  0x3b   :  { %v203_v17 = vld [vmem:[%s1225_s2 + $0x138] sm:$0xff]  ;;  %v348_v18 = vmax.f32 %v152_v4, %v299_v8  ;;  %v154_v19 = vmax.f32 %v56_v15, %v105_v16  ;;  %v349_v23 = vmax.f32 %v153_v13, %v300_v14  ;;  %v155_v25 = vmax.f32 %v57_v21, %v106_v22  ;;  %v204_v26 = vld [vmem:[%s1225_s2 + $0x140] sm:$0xff]  ;;  %v205_v31 = vld [vmem:[%s1225_s2 + $0x148] sm:$0xff] }
  0x3c   :  { %v252_v20 = vld [vmem:[%s1226_s3 + $0x138] sm:$0xff]  ;;  %397 = vst.msk [vmem:[%s1227_s4 + $0x120] sm:$0xff] %vm360_vm0, %v347_v12  ;;  %v253_v27 = vld [vmem:[%s1226_s3 + $0x140] sm:$0xff]  ;;  %v254_v32 = vld [vmem:[%s1226_s3 + $0x148] sm:$0xff]  ;;  %v156_v34 = vmax.f32 %v58_v28, %v107_v30 }
  0x3d   :  { %v301_v24 = vmax.f32 %v203_v17, %v252_v20  ;;  %398 = vst.msk [vmem:[%s1227_s4 + $0x128] sm:$0xff] %vm360_vm0, %v348_v18  ;;  %v302_v29 = vmax.f32 %v204_v26, %v253_v27  ;;  %399 = vst.msk [vmem:[%s1227_s4 + $0x130] sm:$0xff] %vm360_vm0, %v349_v23  ;;  %v303_v35 = vmax.f32 %v205_v31, %v254_v32  ;;  %v59_v36 = vld [vmem:[%s1223_s0 + $0x150] sm:$0xff]  ;;  %v60_v42 = vld [vmem:[%s1223_s0 + $0x158] sm:$0xff] }
  0x3e   :  { %v108_v37 = vld [vmem:[%s1224_s1 + $0x150] sm:$0xff]  ;;  %v109_v43 = vld [vmem:[%s1224_s1 + $0x158] sm:$0xff]  ;;  %v61_v49 = vld [vmem:[%s1223_s0 + $0x160] sm:$0xff] }
  0x3f   :  { %v350_v33 = vmax.f32 %v154_v19, %v301_v24  ;;  %v206_v38 = vld [vmem:[%s1225_s2 + $0x150] sm:$0xff]  ;;  %v351_v39 = vmax.f32 %v155_v25, %v302_v29  ;;  %v157_v40 = vmax.f32 %v59_v36, %v108_v37  ;;  %v352_v44 = vmax.f32 %v156_v34, %v303_v35  ;;  %v207_v47 = vld [vmem:[%s1225_s2 + $0x158] sm:$0xff]  ;;  %v110_v51 = vld [vmem:[%s1224_s1 + $0x160] sm:$0xff] }
  0x40   :  { %v255_v41 = vld [vmem:[%s1226_s3 + $0x150] sm:$0xff]  ;;  %v158_v46 = vmax.f32 %v60_v42, %v109_v43  ;;  %v256_v48 = vld [vmem:[%s1226_s3 + $0x158] sm:$0xff]  ;;  %v208_v52 = vld [vmem:[%s1225_s2 + $0x160] sm:$0xff]  ;;  %v159_v55 = vmax.f32 %v61_v49, %v110_v51 }
  0x41   :  { %400 = vst.msk [vmem:[%s1227_s4 + $0x138] sm:$0xff] %vm360_vm0, %v350_v33  ;;  %v304_v45 = vmax.f32 %v206_v38, %v255_v41  ;;  %401 = vst.msk [vmem:[%s1227_s4 + $0x140] sm:$0xff] %vm360_vm0, %v351_v39  ;;  %v305_v50 = vmax.f32 %v207_v47, %v256_v48  ;;  %v257_v53 = vld [vmem:[%s1226_s3 + $0x160] sm:$0xff]  ;;  %v62_v57 = vld [vmem:[%s1223_s0 + $0x168] sm:$0xff] }
  0x42   :  { %402 = vst.msk [vmem:[%s1227_s4 + $0x148] sm:$0xff] %vm360_vm0, %v352_v44  ;;  %v306_v56 = vmax.f32 %v208_v52, %v257_v53  ;;  %v111_v58 = vld [vmem:[%s1224_s1 + $0x168] sm:$0xff]  ;;  %v63_v63 = vld [vmem:[%s1223_s0 + $0x170] sm:$0xff]  ;;  %v64_v6 = vld [vmem:[%s1223_s0 + $0x178] sm:$0xff] }
  0x43   :  { %v353_v54 = vmax.f32 %v157_v40, %v304_v45  ;;  %v209_v59 = vld [vmem:[%s1225_s2 + $0x168] sm:$0xff]  ;;  %v354_v60 = vmax.f32 %v158_v46, %v305_v50  ;;  %v160_v61 = vmax.f32 %v62_v57, %v111_v58  ;;  %v112_v0 = vld [vmem:[%s1224_s1 + $0x170] sm:$0xff]  ;;  %v113_v8 = vld [vmem:[%s1224_s1 + $0x178] sm:$0xff] }
  0x44   :  { %v258_v62 = vld [vmem:[%s1226_s3 + $0x168] sm:$0xff]  ;;  %v355_v1 = vmax.f32 %v159_v55, %v306_v56  ;;  %v161_v3 = vmax.f32 %v63_v63, %v112_v0  ;;  %v210_v4 = vld [vmem:[%s1225_s2 + $0x170] sm:$0xff]  ;;  %v211_v9 = vld [vmem:[%s1225_s2 + $0x178] sm:$0xff]  ;;  %v162_v12 = vmax.f32 %v64_v6, %v113_v8 }
  0x45   :  { %403 = vst.msk [vmem:[%s1227_s4 + $0x150] sm:$0xff] %vm360_vm0, %v353_v54  ;;  %v307_v2 = vmax.f32 %v209_v59, %v258_v62  ;;  %v259_v5 = vld [vmem:[%s1226_s3 + $0x170] sm:$0xff]  ;;  %404 = vst.msk [vmem:[%s1227_s4 + $0x158] sm:$0xff] %vm360_vm0, %v354_v60  ;;  %v260_v10 = vld [vmem:[%s1226_s3 + $0x178] sm:$0xff] }
  0x46   :  { %v308_v7 = vmax.f32 %v210_v4, %v259_v5  ;;  %405 = vst.msk [vmem:[%s1227_s4 + $0x160] sm:$0xff] %vm360_vm0, %v355_v1  ;;  %v309_v13 = vmax.f32 %v211_v9, %v260_v10  ;;  %v65_v14 = vld [vmem:[%s1223_s0 + $0x180] sm:$0xff] }
  0x47   :  { %v356_v11 = vmax.f32 %v160_v61, %v307_v2  ;;  %v114_v15 = vld [vmem:[%s1224_s1 + $0x180] sm:$0xff] }
  0x48   :  { %v212_v16 = vld [vmem:[%s1225_s2 + $0x180] sm:$0xff]  ;;  %v357_v17 = vmax.f32 %v161_v3, %v308_v7  ;;  %v163_v18 = vmax.f32 %v65_v14, %v114_v15  ;;  %v358_v20 = vmax.f32 %v162_v12, %v309_v13 }
  0x49   :  { %v261_v19 = vld [vmem:[%s1226_s3 + $0x180] sm:$0xff]  ;;  %406 = vst.msk [vmem:[%s1227_s4 + $0x168] sm:$0xff] %vm360_vm0, %v356_v11 }
  0x4a   :  { %v310_v21 = vmax.f32 %v212_v16, %v261_v19  ;;  %407 = vst.msk [vmem:[%s1227_s4 + $0x170] sm:$0xff] %vm360_vm0, %v357_v17  ;;  %408 = vst.msk [vmem:[%s1227_s4 + $0x178] sm:$0xff] %vm360_vm0, %v358_v20 }
  0x4c   :  { %v359_v22 = vmax.f32 %v163_v18, %v310_v21 }
  0x4e   :  { %409 = vst.msk [vmem:[%s1227_s4 + $0x180] sm:$0xff] %vm360_vm0, %v359_v22 }

// kernel: cnnleaf_forward.7
= control target key start
LH: loop header
LB: loop body
LE: loop exit
PB: predicated region body
PF: predicated region fallthrough
CT: control target
= control target key end

     0   :  { %v1849_v0 = vmov 0.0|0.0   ;;  %vm345_vm0 = vcmask 261120   ;;  %vm1374_vm1 = vcmask 523264   ;;  %s3312_s1 = inlined_call_operand.vmem [shape: f32[800,64], index: 1, kind: input, shape index: {}]   ;;  %s3313_s0 = inlined_call_operand.vmem [shape: f32[256,800], index: 0, kind: input, shape index: {}]   ;;  %s3314_s2 = inlined_call_operand.vmem [shape: f32[1,64], index: 2, kind: input, shape index: {}]   ;;  %s3315_s3 = inlined_call_operand.vmem [shape: f32[256,64], index: 3, kind: output, shape index: {}]  }
   0x1   :  { %1536 = vmatprep.subr.bf16.mxu1 %v1849_v0  ;;  %1584 = vmatprep.subr.bf16.mxu0 %v1849_v0  ;;  %v238_v1 = vld [vmem:[%s3312_s1] sm:$0xff]  ;;  %v239_v2 = vld [vmem:[%s3312_s1 + $0x8] sm:$0xff]  ;;  %v240_v6 = vld [vmem:[%s3312_s1 + $0x10] sm:$0xff] }
   0x2   :  { %v270_v3 = vld [vmem:[%s3312_s1 + $0x100] sm:$0xff]  ;;  %v1537_v4 = vpack.c.bf16 %v239_v2, %v238_v1  ;;  %v271_v5 = vld [vmem:[%s3312_s1 + $0x108] sm:$0xff]  ;;  %v241_v7 = vld [vmem:[%s3312_s1 + $0x18] sm:$0xff] }
   0x3   :  { %v1890_v8 = vpack.c.bf16 %v271_v5, %v270_v3  ;;  %v272_v9 = vld [vmem:[%s3312_s1 + $0x110] sm:$0xff]  ;;  %v273_v10 = vld [vmem:[%s3312_s1 + $0x118] sm:$0xff]  ;;  %v1540_v11 = vpack.c.bf16 %v241_v7, %v240_v6  ;;  %v242_v13 = vld [vmem:[%s3312_s1 + $0x20] sm:$0xff] }
   0x4   :  { %1538 = vmatpush1.bf16.msra.mxu1 %v1537_v4  ;;  %v1900_v12 = vpack.c.bf16 %v273_v10, %v272_v9  ;;  %v243_v14 = vld [vmem:[%s3312_s1 + $0x28] sm:$0xff]  ;;  %v274_v15 = vld [vmem:[%s3312_s1 + $0x120] sm:$0xff]  ;;  %v244_v19 = vld [vmem:[%s3312_s1 + $0x30] sm:$0xff] }
   0x5   :  { %1586 = vmatpush1.bf16.msra.mxu0 %v1890_v8  ;;  %1539 = vmatprep.subr.bf16.mxu1 %v1849_v0  ;;  %v275_v16 = vld [vmem:[%s3312_s1 + $0x128] sm:$0xff]  ;;  %v1543_v17 = vpack.c.bf16 %v243_v14, %v242_v13  ;;  %v245_v20 = vld [vmem:[%s3312_s1 + $0x38] sm:$0xff]  ;;  %v276_v21 = vld [vmem:[%s3312_s1 + $0x130] sm:$0xff] }
   0x6   :  { %1587 = vmatprep.subr.bf16.mxu0 %v1849_v0  ;;  %v1917_v18 = vpack.c.bf16 %v275_v16, %v274_v15  ;;  %v277_v22 = vld [vmem:[%s3312_s1 + $0x138] sm:$0xff]  ;;  %v1546_v23 = vpack.c.bf16 %v245_v20, %v244_v19  ;;  %v246_v25 = vld [vmem:[%s3312_s1 + $0x40] sm:$0xff]  ;;  %v247_v26 = vld [vmem:[%s3312_s1 + $0x48] sm:$0xff] }
   0x7   :  { %v1934_v24 = vpack.c.bf16 %v277_v22, %v276_v21  ;;  %v278_v27 = vld [vmem:[%s3312_s1 + $0x140] sm:$0xff]  ;;  %v279_v28 = vld [vmem:[%s3312_s1 + $0x148] sm:$0xff]  ;;  %v1549_v29 = vpack.c.bf16 %v247_v26, %v246_v25  ;;  %v248_v31 = vld [vmem:[%s3312_s1 + $0x50] sm:$0xff] }
   0x8   :  { %1541 = vmatpush1.bf16.msra.mxu1 %v1540_v11  ;;  %v1951_v30 = vpack.c.bf16 %v279_v28, %v278_v27  ;;  %v249_v32 = vld [vmem:[%s3312_s1 + $0x58] sm:$0xff]  ;;  %v280_v33 = vld [vmem:[%s3312_s1 + $0x150] sm:$0xff]  ;;  %v250_v37 = vld [vmem:[%s3312_s1 + $0x60] sm:$0xff] }
   0x9   :  { %1589 = vmatpush1.bf16.msra.mxu0 %v1900_v12  ;;  %1542 = vmatprep.subr.bf16.mxu1 %v1849_v0  ;;  %v281_v34 = vld [vmem:[%s3312_s1 + $0x158] sm:$0xff]  ;;  %v1552_v35 = vpack.c.bf16 %v249_v32, %v248_v31  ;;  %v251_v38 = vld [vmem:[%s3312_s1 + $0x68] sm:$0xff]  ;;  %v282_v39 = vld [vmem:[%s3312_s1 + $0x160] sm:$0xff] }
   0xa   :  { %1590 = vmatprep.subr.bf16.mxu0 %v1849_v0  ;;  %v1968_v36 = vpack.c.bf16 %v281_v34, %v280_v33  ;;  %v283_v40 = vld [vmem:[%s3312_s1 + $0x168] sm:$0xff]  ;;  %v17_v42 = vld [vmem:[%s3313_s0 + $0x18] sm:$0xff]  ;;  %v1555_v43 = vpack.c.bf16 %v251_v38, %v250_v37  ;;  %v252_v45 = vld [vmem:[%s3312_s1 + $0x70] sm:$0xff] }
   0xb   :  { %v15_v41 = vld [vmem:[%s3313_s0 + $0x8] sm:$0xff]  ;;  %731 = vmatprep.mubr.f32.mxu0 %v17_v42  ;;  %v1991_v44 = vpack.c.bf16 %v283_v40, %v282_v39  ;;  %v253_v46 = vld [vmem:[%s3312_s1 + $0x78] sm:$0xff]  ;;  %v284_v47 = vld [vmem:[%s3312_s1 + $0x170] sm:$0xff] }
   0xc   :  { %1544 = vmatpush1.bf16.msra.mxu1 %v1543_v17  ;;  %506 = vmatprep.mubr.f32.mxu1 %v15_v41  ;;  %v285_v48 = vld [vmem:[%s3312_s1 + $0x178] sm:$0xff]  ;;  %v1558_v49 = vpack.c.bf16 %v253_v46, %v252_v45  ;;  %v254_v51 = vld [vmem:[%s3312_s1 + $0x80] sm:$0xff]  ;;  %v255_v52 = vld [vmem:[%s3312_s1 + $0x88] sm:$0xff] }
   0xd   :  { %1592 = vmatpush1.bf16.msra.mxu0 %v1917_v18  ;;  %1545 = vmatprep.subr.bf16.mxu1 %v1849_v0  ;;  %v2008_v50 = vpack.c.bf16 %v285_v48, %v284_v47  ;;  %v286_v53 = vld [vmem:[%s3312_s1 + $0x180] sm:$0xff]  ;;  %v287_v54 = vld [vmem:[%s3312_s1 + $0x188] sm:$0xff]  ;;  %v1561_v55 = vpack.c.bf16 %v255_v52, %v254_v51  ;;  %v256_v57 = vld [vmem:[%s3312_s1 + $0x90] sm:$0xff] }
   0xe   :  { %1593 = vmatprep.subr.bf16.mxu0 %v1849_v0  ;;  %v2025_v56 = vpack.c.bf16 %v287_v54, %v286_v53  ;;  %v257_v58 = vld [vmem:[%s3312_s1 + $0x98] sm:$0xff]  ;;  %v288_v59 = vld [vmem:[%s3312_s1 + $0x190] sm:$0xff]  ;;  %v258_v63 = vld [vmem:[%s3312_s1 + $0xa0] sm:$0xff] }
   0xf   :  { %v289_v60 = vld [vmem:[%s3312_s1 + $0x198] sm:$0xff]  ;;  %v1564_v61 = vpack.c.bf16 %v257_v58, %v256_v57  ;;  %v259_v1 = vld [vmem:[%s3312_s1 + $0xa8] sm:$0xff]  ;;  %v290_v2 = vld [vmem:[%s3312_s1 + $0x1a0] sm:$0xff] }
  0x10   :  { %1547 = vmatpush1.bf16.msra.mxu1 %v1546_v23  ;;  %v2042_v62 = vpack.c.bf16 %v289_v60, %v288_v59  ;;  %v291_v3 = vld [vmem:[%s3312_s1 + $0x1a8] sm:$0xff]  ;;  %v1567_v4 = vpack.c.bf16 %v259_v1, %v258_v63  ;;  %v260_v6 = vld [vmem:[%s3312_s1 + $0xb0] sm:$0xff]  ;;  %v261_v7 = vld [vmem:[%s3312_s1 + $0xb8] sm:$0xff] }
  0x11   :  { %1595 = vmatpush1.bf16.msra.mxu0 %v1934_v24  ;;  %1548 = vmatprep.subr.bf16.mxu1 %v1849_v0  ;;  %v2059_v5 = vpack.c.bf16 %v291_v3, %v290_v2  ;;  %v292_v9 = vld [vmem:[%s3312_s1 + $0x1b0] sm:$0xff]  ;;  %v293_v10 = vld [vmem:[%s3312_s1 + $0x1b8] sm:$0xff]  ;;  %v1570_v11 = vpack.c.bf16 %v261_v7, %v260_v6  ;;  %v262_v14 = vld [vmem:[%s3312_s1 + $0xc0] sm:$0xff] }
  0x12   :  { %1596 = vmatprep.subr.bf16.mxu0 %v1849_v0  ;;  %v2076_v13 = vpack.c.bf16 %v293_v10, %v292_v9  ;;  %v263_v15 = vld [vmem:[%s3312_s1 + $0xc8] sm:$0xff]  ;;  %v294_v16 = vld [vmem:[%s3312_s1 + $0x1c0] sm:$0xff]  ;;  %v264_v21 = vld [vmem:[%s3312_s1 + $0xd0] sm:$0xff] }
  0x13   :  { %v295_v17 = vld [vmem:[%s3312_s1 + $0x1c8] sm:$0xff]  ;;  %v1573_v19 = vpack.c.bf16 %v263_v15, %v262_v14  ;;  %v265_v22 = vld [vmem:[%s3312_s1 + $0xd8] sm:$0xff]  ;;  %v296_v23 = vld [vmem:[%s3312_s1 + $0x1d0] sm:$0xff] }
  0x14   :  { %1550 = vmatpush1.bf16.msra.mxu1 %v1549_v29  ;;  %v2093_v20 = vpack.c.bf16 %v295_v17, %v294_v16  ;;  %v297_v25 = vld [vmem:[%s3312_s1 + $0x1d8] sm:$0xff]  ;;  %v1576_v26 = vpack.c.bf16 %v265_v22, %v264_v21  ;;  %v266_v28 = vld [vmem:[%s3312_s1 + $0xe0] sm:$0xff]  ;;  %v267_v29 = vld [vmem:[%s3312_s1 + $0xe8] sm:$0xff] }
  0x15   :  { %1598 = vmatpush1.bf16.msra.mxu0 %v1951_v30  ;;  %1551 = vmatprep.subr.bf16.mxu1 %v1849_v0  ;;  %v2110_v27 = vpack.c.bf16 %v297_v25, %v296_v23  ;;  %v298_v31 = vld [vmem:[%s3312_s1 + $0x1e0] sm:$0xff]  ;;  %v299_v32 = vld [vmem:[%s3312_s1 + $0x1e8] sm:$0xff]  ;;  %v1579_v33 = vpack.c.bf16 %v267_v29, %v266_v28  ;;  %v269_v37 = vld [vmem:[%s3312_s1 + $0xf8] sm:$0xff] }
  0x16   :  { %1599 = vmatprep.subr.bf16.mxu0 %v1849_v0  ;;  %v2127_v34 = vpack.c.bf16 %v299_v32, %v298_v31  ;;  %v300_v38 = vld [vmem:[%s3312_s1 + $0x1f0] sm:$0xff]  ;;  %v301_v39 = vld [vmem:[%s3312_s1 + $0x1f8] sm:$0xff]  ;;  %v302_v42 = vld [vmem:[%s3312_s1 + $0x200] sm:$0xff] }
  0x17   :  { %v2144_v41 = vpack.c.bf16 %v301_v39, %v300_v38  ;;  %v14_v45 = vld [vmem:[%s3313_s0] sm:$0xff]  ;;  %v16_v46 = vld [vmem:[%s3313_s0 + $0x10] sm:$0xff]  ;;  %v305_v51 = vld [vmem:[%s3312_s1 + $0x218] sm:$0xff] }
  0x18   :  { %1553 = vmatpush1.bf16.msra.mxu1 %v1552_v35  ;;  %v268_v35 = vld [vmem:[%s3312_s1 + $0xf0] sm:$0xff]  ;;  %v22_v48 = vld [vmem:[%s3313_s0 + $0x40] sm:$0xff]  ;;  %v21_v53 = vld [vmem:[%s3313_s0 + $0x38] sm:$0xff] }
  0x19   :  { %1601 = vmatpush1.bf16.msra.mxu0 %v1968_v36  ;;  %1554 = vmatprep.subr.bf16.mxu1 %v1849_v0  ;;  %v1582_v40 = vpack.c.bf16 %v269_v37, %v268_v35  ;;  %v24_v52 = vld [vmem:[%s3313_s0 + $0x50] sm:$0xff]  ;;  %v23_v54 = vld [vmem:[%s3313_s0 + $0x48] sm:$0xff]  ;;  %v306_v58 = vld [vmem:[%s3312_s1 + $0x220] sm:$0xff] }
  0x1a   :  { %1602 = vmatprep.subr.bf16.mxu0 %v1849_v0  ;;  %v307_v59 = vld [vmem:[%s3312_s1 + $0x228] sm:$0xff]  ;;  %v28_v60 = vld [vmem:[%s3313_s0 + $0x70] sm:$0xff]  ;;  %v38_v2 = vld [vmem:[%s3313_s0 + $0xc0] sm:$0xff] }
  0x1b   :  { %v36_v63 = vld [vmem:[%s3313_s0 + $0xb0] sm:$0xff]  ;;  %v1639_v1 = vpack.c.bf16 %v307_v59, %v306_v58  ;;  %v37_v6 = vld [vmem:[%s3313_s0 + $0xb8] sm:$0xff]  ;;  %v43_v7 = vld [vmem:[%s3313_s0 + $0xe8] sm:$0xff] }
  0x1c   :  { %1556 = vmatpush1.bf16.msra.mxu1 %v1555_v43  ;;  %v303_v43 = vld [vmem:[%s3312_s1 + $0x208] sm:$0xff]  ;;  %v308_v3 = vld [vmem:[%s3312_s1 + $0x230] sm:$0xff]  ;;  %v45_v10 = vld [vmem:[%s3313_s0 + $0xf8] sm:$0xff] }
  0x1d   :  { %1604 = vmatpush1.bf16.msra.mxu0 %v1991_v44  ;;  %1557 = vmatprep.subr.bf16.mxu1 %v1849_v0  ;;  %v1633_v47 = vpack.c.bf16 %v303_v43, %v302_v42  ;;  %v311_v14 = vld [vmem:[%s3312_s1 + $0x248] sm:$0xff]  ;;  %v42_v15 = vld [vmem:[%s3313_s0 + $0xe0] sm:$0xff]  ;;  %v312_v21 = vld [vmem:[%s3312_s1 + $0x250] sm:$0xff] }
  0x1e   :  { %1605 = vmatprep.subr.bf16.mxu0 %v1849_v0  ;;  %v50_v16 = vld [vmem:[%s3313_s0 + $0x120] sm:$0xff]  ;;  %v313_v22 = vld [vmem:[%s3312_s1 + $0x258] sm:$0xff]  ;;  %v59_v28 = vld [vmem:[%s3313_s0 + $0x168] sm:$0xff] }
  0x1f   :  { %v49_v23 = vld [vmem:[%s3313_s0 + $0x118] sm:$0xff]  ;;  %v314_v29 = vld [vmem:[%s3312_s1 + $0x260] sm:$0xff]  ;;  %v315_v31 = vld [vmem:[%s3312_s1 + $0x268] sm:$0xff] }
  0x20   :  { %1559 = vmatpush1.bf16.msra.mxu1 %v1558_v49  ;;  %v304_v49 = vld [vmem:[%s3312_s1 + $0x210] sm:$0xff]  ;;  %v57_v25 = vld [vmem:[%s3313_s0 + $0x158] sm:$0xff]  ;;  %v1651_v35 = vpack.c.bf16 %v315_v31, %v314_v29  ;;  %v66_v37 = vld [vmem:[%s3313_s0 + $0x1a0] sm:$0xff] }
  0x21   :  { %1607 = vmatpush1.bf16.msra.mxu0 %v2008_v50  ;;  %1560 = vmatprep.subr.bf16.mxu1 %v1849_v0  ;;  %v1636_v57 = vpack.c.bf16 %v305_v51, %v304_v49  ;;  %v56_v32 = vld [vmem:[%s3313_s0 + $0x150] sm:$0xff]  ;;  %v317_v39 = vld [vmem:[%s3312_s1 + $0x278] sm:$0xff]  ;;  %v71_v42 = vld [vmem:[%s3313_s0 + $0x1c8] sm:$0xff] }
  0x22   :  { %1608 = vmatprep.subr.bf16.mxu0 %v1849_v0  ;;  %v316_v38 = vld [vmem:[%s3312_s1 + $0x270] sm:$0xff]  ;;  %v78_v51 = vld [vmem:[%s3313_s0 + $0x200] sm:$0xff]  ;;  %v87_v58 = vld [vmem:[%s3313_s0 + $0x248] sm:$0xff] }
  0x23   :  { %v1654_v43 = vpack.c.bf16 %v317_v39, %v316_v38  ;;  %v72_v49 = vld [vmem:[%s3313_s0 + $0x1d0] sm:$0xff]  ;;  %v322_v59 = vld [vmem:[%s3312_s1 + $0x2a0] sm:$0xff]  ;;  %v335_v38 = vld [vmem:[%s3312_s1 + $0x308] sm:$0xff] }
  0x24   :  { %1562 = vmatpush1.bf16.msra.mxu1 %v1561_v55  ;;  %v29_v55 = vld [vmem:[%s3313_s0 + $0x78] sm:$0xff]  ;;  %v114_v29 = vld [vmem:[%s3313_s0 + $0x320] sm:$0xff]  ;;  %v120_v31 = vld [vmem:[%s3313_s0 + $0x350] sm:$0xff] }
  0x25   :  { %1610 = vmatpush1.bf16.msra.mxu0 %v2025_v56  ;;  %1563 = vmatprep.subr.bf16.mxu1 %v1849_v0  ;;  %v127_v39 = vld [vmem:[%s3313_s0 + $0x388] sm:$0xff] }
  0x26   :  { %1611 = vmatprep.subr.bf16.mxu0 %v1849_v0 }
  0x28   :  { %1565 = vmatpush1.bf16.msra.mxu1 %v1564_v61  ;;  %v30_v61 = vld [vmem:[%s3313_s0 + $0x80] sm:$0xff] }
  0x29   :  { %1613 = vmatpush1.bf16.msra.mxu0 %v2042_v62  ;;  %1566 = vmatprep.subr.bf16.mxu1 %v1849_v0 }
  0x2a   :  { %1614 = vmatprep.subr.bf16.mxu0 %v1849_v0 }
  0x2c   :  { %1568 = vmatpush1.bf16.msra.mxu1 %v1567_v4  ;;  %v309_v4 = vld [vmem:[%s3312_s1 + $0x238] sm:$0xff] }
  0x2d   :  { %1616 = vmatpush1.bf16.msra.mxu0 %v2059_v5  ;;  %1569 = vmatprep.subr.bf16.mxu1 %v1849_v0  ;;  %v1642_v9 = vpack.c.bf16 %v309_v4, %v308_v3  ;;  %v324_v3 = vld [vmem:[%s3312_s1 + $0x2b0] sm:$0xff]  ;;  %v325_v4 = vld [vmem:[%s3312_s1 + $0x2b8] sm:$0xff] }
  0x2e   :  { %1617 = vmatprep.subr.bf16.mxu0 %v1849_v0 }
  0x30   :  { %1571 = vmatpush1.bf16.msra.mxu1 %v1570_v11  ;;  %v310_v11 = vld [vmem:[%s3312_s1 + $0x240] sm:$0xff] }
  0x31   :  { %1619 = vmatpush1.bf16.msra.mxu0 %v2076_v13  ;;  %1572 = vmatprep.subr.bf16.mxu1 %v1849_v0  ;;  %v1645_v17 = vpack.c.bf16 %v311_v14, %v310_v11  ;;  %v327_v11 = vld [vmem:[%s3312_s1 + $0x2c8] sm:$0xff]  ;;  %v98_v14 = vld [vmem:[%s3313_s0 + $0x2a0] sm:$0xff] }
  0x32   :  { %1620 = vmatprep.subr.bf16.mxu0 %v1849_v0 }
  0x34   :  { %1574 = vmatpush1.bf16.msra.mxu1 %v1573_v19  ;;  %v52_v19 = vld [vmem:[%s3313_s0 + $0x130] sm:$0xff] }
  0x35   :  { %1622 = vmatpush1.bf16.msra.mxu0 %v2093_v20  ;;  %1575 = vmatprep.subr.bf16.mxu1 %v1849_v0 }
  0x36   :  { %1623 = vmatprep.subr.bf16.mxu0 %v1849_v0 }
  0x38   :  { %1577 = vmatpush1.bf16.msra.mxu1 %v1576_v26  ;;  %v1648_v26 = vpack.c.bf16 %v313_v22, %v312_v21  ;;  %v105_v21 = vld [vmem:[%s3313_s0 + $0x2d8] sm:$0xff]  ;;  %v107_v22 = vld [vmem:[%s3313_s0 + $0x2e8] sm:$0xff] }
  0x39   :  { %1625 = vmatpush1.bf16.msra.mxu0 %v2110_v27  ;;  %1578 = vmatprep.subr.bf16.mxu1 %v1849_v0 }
  0x3a   :  { %1626 = vmatprep.subr.bf16.mxu0 %v1849_v0 }
  0x3c   :  { %1580 = vmatpush1.bf16.msra.mxu1 %v1579_v33  ;;  %v64_v33 = vld [vmem:[%s3313_s0 + $0x190] sm:$0xff] }
  0x3d   :  { %1628 = vmatpush1.bf16.msra.mxu0 %v2127_v34  ;;  %1581 = vmatprep.subr.bf16.mxu1 %v1849_v0 }
  0x3e   :  { %1629 = vmatprep.subr.bf16.mxu0 %v1849_v0 }
  0x40   :  { %1583 = vmatpush1.bf16.msra.mxu1 %v1582_v40  ;;  %v63_v40 = vld [vmem:[%s3313_s0 + $0x188] sm:$0xff] }
  0x41   :  { %1631 = vmatpush1.bf16.msra.mxu0 %v2144_v41  ;;  %1688 = vmatprep.subr.bf16.mxu1 %v1849_v0 }
  0x42   :  { %1632 = vmatprep.subr.bf16.mxu0 %v1849_v0 }
  0x43   :  { %507 = vmatmul.mubr.f32.vlgmr.msra.gmra.mrb[0].mxu1 %v14_v45  ;;  %v73_v45 = vld [vmem:[%s3313_s0 + $0x1d8] sm:$0xff] }
  0x44   :  { %732 = vmatmul.mubr.f32.vlgmr.msra.gmra.mrb[0].mxu0 %v16_v46  ;;  %1704 = vmatpush1.bf16.msra.mxu1 %v1890_v8  ;;  %v31_v8 = vld [vmem:[%s3313_s0 + $0x88] sm:$0xff]  ;;  %v318_v46 = vld [vmem:[%s3312_s1 + $0x280] sm:$0xff] }
  0x45   :  { %1634 = vmatpush1.bf16.msra.mxu0 %v1633_v47  ;;  %511 = vmatprep.mubr.f32.mxu1 %v22_v48  ;;  %v319_v47 = vld [vmem:[%s3312_s1 + $0x288] sm:$0xff]  ;;  %v70_v48 = vld [vmem:[%s3313_s0 + $0x1c0] sm:$0xff] }
  0x46   :  { %736 = vmatprep.mubr.f32.mxu0 %v24_v52  ;;  %1635 = vmatprep.subr.bf16.mxu0 %v1849_v0  ;;  %v80_v52 = vld [vmem:[%s3313_s0 + $0x210] sm:$0xff] }
  0x47   :  { %512 = vmatmul.mubr.f32.gmra.mrb[2].mxu1 %v21_v53  ;;  %1689 = vmatprep.subr.bf16.mxu1 %v1849_v0  ;;  %v320_v53 = vld [vmem:[%s3312_s1 + $0x290] sm:$0xff] }
  0x48   :  { %737 = vmatmul.mubr.f32.gmra.mrb[2].mxu0 %v23_v54  ;;  %516 = vmatprep.mubr.f32.mxu1 %v29_v55  ;;  %v321_v54 = vld [vmem:[%s3312_s1 + $0x298] sm:$0xff] }
  0x49   :  { %741 = vmatprep.mubr.f32.mxu0 %v31_v8  ;;  %1637 = vmatpush1.bf16.msra.mxu0 %v1636_v57  ;;  %v77_v55 = vld [vmem:[%s3313_s0 + $0x1f8] sm:$0xff]  ;;  %v79_v57 = vld [vmem:[%s3313_s0 + $0x208] sm:$0xff] }
  0x4a   :  { %1705 = vmatpush1.bf16.msra.mxu1 %v1900_v12  ;;  %1638 = vmatprep.subr.bf16.mxu0 %v1849_v0  ;;  %v35_v12 = vld [vmem:[%s3313_s0 + $0xa8] sm:$0xff]  ;;  %v85_v8 = vld [vmem:[%s3313_s0 + $0x238] sm:$0xff] }
  0x4b   :  { %517 = vmatmul.mubr.f32.gmra.mrb[4].mxu1 %v28_v60  ;;  %1690 = vmatprep.subr.bf16.mxu1 %v1849_v0  ;;  %v323_v60 = vld [vmem:[%s3312_s1 + $0x2a8] sm:$0xff] }
  0x4c   :  { %742 = vmatmul.mubr.f32.gmra.mrb[4].mxu0 %v30_v61  ;;  %521 = vmatprep.mubr.f32.mxu1 %v36_v63  ;;  %v84_v61 = vld [vmem:[%s3313_s0 + $0x230] sm:$0xff]  ;;  %v86_v63 = vld [vmem:[%s3313_s0 + $0x240] sm:$0xff] }
  0x4d   :  { %746 = vmatprep.mubr.f32.mxu0 %v38_v2  ;;  %1640 = vmatpush1.bf16.msra.mxu0 %v1639_v1  ;;  %v92_v1 = vld [vmem:[%s3313_s0 + $0x270] sm:$0xff]  ;;  %v94_v2 = vld [vmem:[%s3313_s0 + $0x280] sm:$0xff] }
  0x4e   :  { %1706 = vmatpush1.bf16.msra.mxu1 %v1917_v18  ;;  %1641 = vmatprep.subr.bf16.mxu0 %v1849_v0  ;;  %v44_v18 = vld [vmem:[%s3313_s0 + $0xf0] sm:$0xff] }
  0x4f   :  { %522 = vmatmul.mubr.f32.gmra.mrb[6].mxu1 %v35_v12  ;;  %1691 = vmatprep.subr.bf16.mxu1 %v1849_v0  ;;  %v91_v12 = vld [vmem:[%s3313_s0 + $0x268] sm:$0xff] }
  0x50   :  { %747 = vmatmul.mubr.f32.gmra.mrb[6].mxu0 %v37_v6  ;;  %526 = vmatprep.mubr.f32.mxu1 %v43_v7  ;;  %v93_v6 = vld [vmem:[%s3313_s0 + $0x278] sm:$0xff]  ;;  %v99_v7 = vld [vmem:[%s3313_s0 + $0x2a8] sm:$0xff] }
  0x51   :  { %751 = vmatprep.mubr.f32.mxu0 %v45_v10  ;;  %1643 = vmatpush1.bf16.msra.mxu0 %v1642_v9  ;;  %v101_v9 = vld [vmem:[%s3313_s0 + $0x2b8] sm:$0xff]  ;;  %v326_v10 = vld [vmem:[%s3312_s1 + $0x2c0] sm:$0xff] }
  0x52   :  { %1644 = vmatprep.subr.bf16.mxu0 %v1849_v0  ;;  %1707 = vmatpush1.bf16.msra.mxu1 %v1934_v24  ;;  %v51_v24 = vld [vmem:[%s3313_s0 + $0x128] sm:$0xff] }
  0x53   :  { %527 = vmatmul.mubr.f32.gmra.mrb[8].mxu1 %v42_v15  ;;  %1692 = vmatprep.subr.bf16.mxu1 %v1849_v0  ;;  %v100_v15 = vld [vmem:[%s3313_s0 + $0x2b0] sm:$0xff] }
  0x54   :  { %752 = vmatmul.mubr.f32.gmra.mrb[8].mxu0 %v44_v18  ;;  %531 = vmatprep.mubr.f32.mxu1 %v50_v16  ;;  %v106_v18 = vld [vmem:[%s3313_s0 + $0x2e0] sm:$0xff]  ;;  %v108_v16 = vld [vmem:[%s3313_s0 + $0x2f0] sm:$0xff] }
  0x55   :  { %756 = vmatprep.mubr.f32.mxu0 %v52_v19  ;;  %1646 = vmatpush1.bf16.msra.mxu0 %v1645_v17  ;;  %v328_v17 = vld [vmem:[%s3312_s1 + $0x2d0] sm:$0xff]  ;;  %v329_v19 = vld [vmem:[%s3312_s1 + $0x2d8] sm:$0xff] }
  0x56   :  { %1647 = vmatprep.subr.bf16.mxu0 %v1849_v0  ;;  %1708 = vmatpush1.bf16.msra.mxu1 %v1951_v30  ;;  %v58_v30 = vld [vmem:[%s3313_s0 + $0x160] sm:$0xff] }
  0x57   :  { %532 = vmatmul.mubr.f32.gmra.mrb[10].mxu1 %v49_v23  ;;  %1693 = vmatprep.subr.bf16.mxu1 %v1849_v0  ;;  %v113_v23 = vld [vmem:[%s3313_s0 + $0x318] sm:$0xff] }
  0x58   :  { %757 = vmatmul.mubr.f32.gmra.mrb[10].mxu0 %v51_v24  ;;  %536 = vmatprep.mubr.f32.mxu1 %v57_v25  ;;  %v115_v24 = vld [vmem:[%s3313_s0 + $0x328] sm:$0xff]  ;;  %v330_v25 = vld [vmem:[%s3312_s1 + $0x2e0] sm:$0xff] }
  0x59   :  { %761 = vmatprep.mubr.f32.mxu0 %v59_v28  ;;  %1649 = vmatpush1.bf16.msra.mxu0 %v1648_v26  ;;  %v331_v26 = vld [vmem:[%s3312_s1 + $0x2e8] sm:$0xff]  ;;  %v112_v28 = vld [vmem:[%s3313_s0 + $0x310] sm:$0xff] }
  0x5a   :  { %1650 = vmatprep.subr.bf16.mxu0 %v1849_v0  ;;  %1709 = vmatpush1.bf16.msra.mxu1 %v1968_v36  ;;  %v65_v36 = vld [vmem:[%s3313_s0 + $0x198] sm:$0xff] }
  0x5b   :  { %537 = vmatmul.mubr.f32.gmra.mrb[12].mxu1 %v56_v32  ;;  %1694 = vmatprep.subr.bf16.mxu1 %v1849_v0  ;;  %v122_v32 = vld [vmem:[%s3313_s0 + $0x360] sm:$0xff] }
  0x5c   :  { %762 = vmatmul.mubr.f32.gmra.mrb[12].mxu0 %v58_v30  ;;  %541 = vmatprep.mubr.f32.mxu1 %v64_v33  ;;  %v332_v30 = vld [vmem:[%s3312_s1 + $0x2f0] sm:$0xff]  ;;  %v333_v33 = vld [vmem:[%s3312_s1 + $0x2f8] sm:$0xff] }
  0x5d   :  { %766 = vmatprep.mubr.f32.mxu0 %v66_v37  ;;  %1652 = vmatpush1.bf16.msra.mxu0 %v1651_v35  ;;  %v119_v35 = vld [vmem:[%s3313_s0 + $0x348] sm:$0xff]  ;;  %v334_v37 = vld [vmem:[%s3312_s1 + $0x300] sm:$0xff] }
  0x5e   :  { %1653 = vmatprep.subr.bf16.mxu0 %v1849_v0  ;;  %1710 = vmatpush1.bf16.msra.mxu1 %v1991_v44  ;;  %v1657_v44 = vpack.c.bf16 %v319_v47, %v318_v46  ;;  %v133_v46 = vld [vmem:[%s3313_s0 + $0x3b8] sm:$0xff]  ;;  %v135_v47 = vld [vmem:[%s3313_s0 + $0x3c8] sm:$0xff] }
  0x5f   :  { %542 = vmatmul.mubr.f32.gmra.mrb[14].mxu1 %v63_v40  ;;  %1695 = vmatprep.subr.bf16.mxu1 %v1849_v0  ;;  %v1678_v40 = vpack.c.bf16 %v333_v33, %v332_v30  ;;  %v225_v30 = vld [vmem:[%s3313_s0 + $0x698] sm:$0xff] }
  0x60   :  { %767 = vmatmul.mubr.f32.gmra.mrb[14].mxu0 %v65_v36  ;;  %546 = vmatprep.mubr.f32.mxu1 %v71_v42  ;;  %v129_v36 = vld [vmem:[%s3313_s0 + $0x398] sm:$0xff]  ;;  %v2489_v42 = vpack.c.bf16 %v335_v38, %v334_v37  ;;  %v60_v37 = vld [vmem:[%s3313_s0 + $0x170] sm:$0xff] }
  0x61   :  { %771 = vmatprep.mubr.f32.mxu0 %v73_v45  ;;  %1655 = vmatpush1.bf16.msra.mxu0 %v1654_v43  ;;  %v126_v43 = vld [vmem:[%s3313_s0 + $0x380] sm:$0xff]  ;;  %v128_v45 = vld [vmem:[%s3313_s0 + $0x390] sm:$0xff]  ;;  %v61_v33 = vld [vmem:[%s3313_s0 + $0x178] sm:$0xff] }
  0x62   :  { %1656 = vmatprep.subr.bf16.mxu0 %v1849_v0  ;;  %1711 = vmatpush1.bf16.msra.mxu1 %v2008_v50  ;;  %v1660_v50 = vpack.c.bf16 %v321_v54, %v320_v53  ;;  %v147_v53 = vld [vmem:[%s3313_s0 + $0x428] sm:$0xff]  ;;  %v149_v54 = vld [vmem:[%s3313_s0 + $0x438] sm:$0xff]  ;;  %v232_v38 = vld [vmem:[%s3313_s0 + $0x6d0] sm:$0xff] }
  0x63   :  { %547 = vmatmul.mubr.f32.gmra.mrb[16].mxu1 %v70_v48  ;;  %1696 = vmatprep.subr.bf16.mxu1 %v1849_v0  ;;  %v141_v48 = vld [vmem:[%s3313_s0 + $0x3f8] sm:$0xff] }
  0x64   :  { %772 = vmatmul.mubr.f32.gmra.mrb[16].mxu0 %v72_v49  ;;  %551 = vmatprep.mubr.f32.mxu1 %v78_v51  ;;  %v140_v49 = vld [vmem:[%s3313_s0 + $0x3f0] sm:$0xff]  ;;  %v142_v51 = vld [vmem:[%s3313_s0 + $0x400] sm:$0xff] }
  0x65   :  { %776 = vmatprep.mubr.f32.mxu0 %v80_v52  ;;  %1658 = vmatpush1.bf16.msra.mxu0 %v1657_v44  ;;  %v148_v44 = vld [vmem:[%s3313_s0 + $0x430] sm:$0xff]  ;;  %v150_v52 = vld [vmem:[%s3313_s0 + $0x440] sm:$0xff] }
  0x66   :  { %1659 = vmatprep.subr.bf16.mxu0 %v1849_v0  ;;  %1712 = vmatpush1.bf16.msra.mxu1 %v2025_v56  ;;  %v1663_v56 = vpack.c.bf16 %v323_v60, %v322_v59  ;;  %v164_v59 = vld [vmem:[%s3313_s0 + $0x4b0] sm:$0xff]  ;;  %v161_v60 = vld [vmem:[%s3313_s0 + $0x498] sm:$0xff] }
  0x67   :  { %552 = vmatmul.mubr.f32.gmra.mrb[18].mxu1 %v77_v55  ;;  %1697 = vmatprep.subr.bf16.mxu1 %v1849_v0  ;;  %v155_v55 = vld [vmem:[%s3313_s0 + $0x468] sm:$0xff] }
  0x68   :  { %777 = vmatmul.mubr.f32.gmra.mrb[18].mxu0 %v79_v57  ;;  %556 = vmatprep.mubr.f32.mxu1 %v85_v8  ;;  %v157_v57 = vld [vmem:[%s3313_s0 + $0x478] sm:$0xff]  ;;  %v154_v8 = vld [vmem:[%s3313_s0 + $0x460] sm:$0xff] }
  0x69   :  { %781 = vmatprep.mubr.f32.mxu0 %v87_v58  ;;  %1661 = vmatpush1.bf16.msra.mxu0 %v1660_v50  ;;  %v156_v50 = vld [vmem:[%s3313_s0 + $0x470] sm:$0xff]  ;;  %v162_v58 = vld [vmem:[%s3313_s0 + $0x4a0] sm:$0xff] }
  0x6a   :  { %1662 = vmatprep.subr.bf16.mxu0 %v1849_v0  ;;  %1713 = vmatpush1.bf16.msra.mxu1 %v2042_v62  ;;  %v1666_v62 = vpack.c.bf16 %v325_v4, %v324_v3  ;;  %v176_v3 = vld [vmem:[%s3313_s0 + $0x510] sm:$0xff]  ;;  %v178_v4 = vld [vmem:[%s3313_s0 + $0x520] sm:$0xff] }
  0x6b   :  { %557 = vmatmul.mubr.f32.gmra.mrb[20].mxu1 %v84_v61  ;;  %1698 = vmatprep.subr.bf16.mxu1 %v1849_v0  ;;  %v163_v61 = vld [vmem:[%s3313_s0 + $0x4a8] sm:$0xff] }
  0x6c   :  { %782 = vmatmul.mubr.f32.gmra.mrb[20].mxu0 %v86_v63  ;;  %561 = vmatprep.mubr.f32.mxu1 %v92_v1  ;;  %v169_v63 = vld [vmem:[%s3313_s0 + $0x4d8] sm:$0xff]  ;;  %v171_v1 = vld [vmem:[%s3313_s0 + $0x4e8] sm:$0xff] }
  0x6d   :  { %786 = vmatprep.mubr.f32.mxu0 %v94_v2  ;;  %1664 = vmatpush1.bf16.msra.mxu0 %v1663_v56  ;;  %v168_v56 = vld [vmem:[%s3313_s0 + $0x4d0] sm:$0xff]  ;;  %v170_v2 = vld [vmem:[%s3313_s0 + $0x4e0] sm:$0xff] }
  0x6e   :  { %1665 = vmatprep.subr.bf16.mxu0 %v1849_v0  ;;  %1714 = vmatpush1.bf16.msra.mxu1 %v2059_v5  ;;  %v1669_v5 = vpack.c.bf16 %v327_v11, %v326_v10  ;;  %v18_v10 = vld [vmem:[%s3313_s0 + $0x20] sm:$0xff] }
  0x6f   :  { %562 = vmatmul.mubr.f32.gmra.mrb[22].mxu1 %v91_v12  ;;  %1699 = vmatprep.subr.bf16.mxu1 %v1849_v0  ;;  %v175_v12 = vld [vmem:[%s3313_s0 + $0x508] sm:$0xff]  ;;  %v190_v11 = vld [vmem:[%s3313_s0 + $0x580] sm:$0xff] }
  0x70   :  { %787 = vmatmul.mubr.f32.gmra.mrb[22].mxu0 %v93_v6  ;;  %566 = vmatprep.mubr.f32.mxu1 %v99_v7  ;;  %v177_v6 = vld [vmem:[%s3313_s0 + $0x518] sm:$0xff]  ;;  %v183_v7 = vld [vmem:[%s3313_s0 + $0x548] sm:$0xff] }
  0x71   :  { %791 = vmatprep.mubr.f32.mxu0 %v101_v9  ;;  %1667 = vmatpush1.bf16.msra.mxu0 %v1666_v62  ;;  %v19_v62 = vld [vmem:[%s3313_s0 + $0x28] sm:$0xff]  ;;  %v182_v9 = vld [vmem:[%s3313_s0 + $0x540] sm:$0xff] }
  0x72   :  { %1668 = vmatprep.subr.bf16.mxu0 %v1849_v0  ;;  %1715 = vmatpush1.bf16.msra.mxu1 %v2076_v13  ;;  %v1672_v13 = vpack.c.bf16 %v329_v19, %v328_v17  ;;  %v196_v17 = vld [vmem:[%s3313_s0 + $0x5b0] sm:$0xff] }
  0x73   :  { %567 = vmatmul.mubr.f32.gmra.mrb[24].mxu1 %v98_v14  ;;  %1700 = vmatprep.subr.bf16.mxu1 %v1849_v0  ;;  %v26_v14 = vld [vmem:[%s3313_s0 + $0x60] sm:$0xff]  ;;  %v32_v19 = vld [vmem:[%s3313_s0 + $0x90] sm:$0xff] }
  0x74   :  { %792 = vmatmul.mubr.f32.gmra.mrb[24].mxu0 %v100_v15  ;;  %571 = vmatprep.mubr.f32.mxu1 %v106_v18  ;;  %v189_v15 = vld [vmem:[%s3313_s0 + $0x578] sm:$0xff] }
  0x75   :  { %796 = vmatprep.mubr.f32.mxu0 %v108_v16  ;;  %1670 = vmatpush1.bf16.msra.mxu0 %v1669_v5  ;;  %v25_v18 = vld [vmem:[%s3313_s0 + $0x58] sm:$0xff] }
  0x76   :  { %1671 = vmatprep.subr.bf16.mxu0 %v1849_v0  ;;  %1716 = vmatpush1.bf16.msra.mxu1 %v2093_v20  ;;  %v1675_v20 = vpack.c.bf16 %v331_v26, %v330_v25  ;;  %v197_v5 = vld [vmem:[%s3313_s0 + $0x5b8] sm:$0xff]  ;;  %v47_v25 = vld [vmem:[%s3313_s0 + $0x108] sm:$0xff]  ;;  %v210_v26 = vld [vmem:[%s3313_s0 + $0x620] sm:$0xff] }
  0x77   :  { %572 = vmatmul.mubr.f32.gmra.mrb[26].mxu1 %v105_v21  ;;  %1701 = vmatprep.subr.bf16.mxu1 %v1849_v0  ;;  %v33_v16 = vld [vmem:[%s3313_s0 + $0x98] sm:$0xff]  ;;  %v204_v21 = vld [vmem:[%s3313_s0 + $0x5f0] sm:$0xff] }
  0x78   :  { %797 = vmatmul.mubr.f32.gmra.mrb[26].mxu0 %v107_v22  ;;  %576 = vmatprep.mubr.f32.mxu1 %v113_v23  ;;  %v40_v22 = vld [vmem:[%s3313_s0 + $0xd0] sm:$0xff]  ;;  %v203_v23 = vld [vmem:[%s3313_s0 + $0x5e8] sm:$0xff] }
  0x79   :  { %801 = vmatprep.mubr.f32.mxu0 %v115_v24  ;;  %1673 = vmatpush1.bf16.msra.mxu0 %v1672_v13  ;;  %v39_v13 = vld [vmem:[%s3313_s0 + $0xc8] sm:$0xff] }
  0x7a   :  { %1674 = vmatprep.subr.bf16.mxu0 %v1849_v0  ;;  %1717 = vmatpush1.bf16.msra.mxu1 %v2110_v27  ;;  %v121_v27 = vld [vmem:[%s3313_s0 + $0x358] sm:$0xff]  ;;  %v211_v24 = vld [vmem:[%s3313_s0 + $0x628] sm:$0xff] }
  0x7b   :  { %577 = vmatmul.mubr.f32.gmra.mrb[28].mxu1 %v112_v28  ;;  %1702 = vmatprep.subr.bf16.mxu1 %v1849_v0  ;;  %v46_v28 = vld [vmem:[%s3313_s0 + $0x100] sm:$0xff] }
  0x7c   :  { %802 = vmatmul.mubr.f32.gmra.mrb[28].mxu0 %v114_v29  ;;  %581 = vmatprep.mubr.f32.mxu1 %v120_v31  ;;  %v218_v29 = vld [vmem:[%s3313_s0 + $0x660] sm:$0xff] }
  0x7d   :  { %806 = vmatprep.mubr.f32.mxu0 %v122_v32  ;;  %1676 = vmatpush1.bf16.msra.mxu0 %v1675_v20  ;;  %v54_v31 = vld [vmem:[%s3313_s0 + $0x140] sm:$0xff]  ;;  %v217_v20 = vld [vmem:[%s3313_s0 + $0x658] sm:$0xff] }
  0x7e   :  { %1677 = vmatprep.subr.bf16.mxu0 %v1849_v0  ;;  %1718 = vmatpush1.bf16.msra.mxu1 %v2127_v34  ;;  %v134_v34 = vld [vmem:[%s3313_s0 + $0x3c0] sm:$0xff]  ;;  %v53_v32 = vld [vmem:[%s3313_s0 + $0x138] sm:$0xff] }
  0x7f   :  { %582 = vmatmul.mubr.f32.gmra.mrb[30].mxu1 %v119_v35  ;;  %1703 = vmatprep.subr.bf16.mxu1 %v1849_v0  ;;  %v136_v0 = vld [vmem:[%s3313_s0 + $0x3d0] sm:$0xff] }
  0x80   :  { %807 = vmatmul.mubr.f32.gmra.mrb[30].mxu0 %v121_v27  ;;  %586 = vmatprep.mubr.f32.mxu1 %v127_v39  ;;  %v224_v35 = vld [vmem:[%s3313_s0 + $0x690] sm:$0xff]  ;;  %v231_v39 = vld [vmem:[%s3313_s0 + $0x6c8] sm:$0xff] }
  0x81   :  { %811 = vmatprep.mubr.f32.mxu0 %v129_v36  ;;  %1679 = vmatpush1.bf16.msra.mxu0 %v1678_v40  ;;  %v68_v27 = vld [vmem:[%s3313_s0 + $0x1b0] sm:$0xff]  ;;  %v67_v40 = vld [vmem:[%s3313_s0 + $0x1a8] sm:$0xff]  ;;  %v185_v36 = vld [vmem:[%s3313_s0 + $0x558] sm:$0xff] }
  0x82   :  { %1719 = vmatpush1.bf16.msra.mxu1 %v2144_v41  ;;  %v143_v41 = vld [vmem:[%s3313_s0 + $0x408] sm:$0xff] }
  0x83   :  { %587 = vmatmul.mubr.f32.gmra.mrb[32].mxu1 %v126_v43  ;;  %1681 = vmatprep.subr.bf16.mxu1 %v2489_v42  ;;  %v75_v43 = vld [vmem:[%s3313_s0 + $0x1e8] sm:$0xff] }
  0x84   :  { %812 = vmatmul.mubr.f32.gmra.mrb[32].mxu0 %v128_v45  ;;  %591 = vmatprep.mubr.f32.mxu1 %v134_v34  ;;  %v336_v45 = vld [vmem:[%s3312_s1 + $0x310] sm:$0xff]  ;;  %v337_v34 = vld [vmem:[%s3312_s1 + $0x318] sm:$0xff] }
  0x85   :  { %816 = vmatprep.mubr.f32.mxu0 %v136_v0  ;;  %v184_v0 = vld [vmem:[%s3313_s0 + $0x550] sm:$0xff] }
  0x87   :  { %592 = vmatmul.mubr.f32.gmra.mrb[34].mxu1 %v133_v46  ;;  %v74_v46 = vld [vmem:[%s3313_s0 + $0x1e0] sm:$0xff] }
  0x88   :  { %817 = vmatmul.mubr.f32.gmra.mrb[34].mxu0 %v135_v47  ;;  %596 = vmatprep.mubr.f32.mxu1 %v141_v48  ;;  %v192_v47 = vld [vmem:[%s3313_s0 + $0x590] sm:$0xff]  ;;  %v82_v48 = vld [vmem:[%s3313_s0 + $0x220] sm:$0xff] }
  0x89   :  { %821 = vmatprep.mubr.f32.mxu0 %v143_v41  ;;  %v1684_v41 = vpack.c.bf16 %v337_v34, %v336_v45  ;;  %v179_v45 = vld [vmem:[%s3313_s0 + $0x528] sm:$0xff]  ;;  %v132_v34 = vld [vmem:[%s3313_s0 + $0x3b0] sm:$0xff] }
  0x8b   :  { %597 = vmatmul.mubr.f32.gmra.mrb[36].mxu1 %v140_v49  ;;  %v191_v49 = vld [vmem:[%s3313_s0 + $0x588] sm:$0xff] }
  0x8c   :  { %822 = vmatmul.mubr.f32.gmra.mrb[36].mxu0 %v142_v51  ;;  %601 = vmatprep.mubr.f32.mxu1 %v148_v44  ;;  %v81_v51 = vld [vmem:[%s3313_s0 + $0x218] sm:$0xff]  ;;  %v199_v44 = vld [vmem:[%s3313_s0 + $0x5c8] sm:$0xff] }
  0x8d   :  { %826 = vmatprep.mubr.f32.mxu0 %v150_v52  ;;  %v89_v52 = vld [vmem:[%s3313_s0 + $0x258] sm:$0xff] }
  0x8f   :  { %602 = vmatmul.mubr.f32.gmra.mrb[38].mxu1 %v147_v53  ;;  %v88_v53 = vld [vmem:[%s3313_s0 + $0x250] sm:$0xff] }
  0x90   :  { %827 = vmatmul.mubr.f32.gmra.mrb[38].mxu0 %v149_v54  ;;  %606 = vmatprep.mubr.f32.mxu1 %v155_v55  ;;  %v206_v54 = vld [vmem:[%s3313_s0 + $0x600] sm:$0xff]  ;;  %v96_v55 = vld [vmem:[%s3313_s0 + $0x290] sm:$0xff] }
  0x91   :  { %831 = vmatprep.mubr.f32.mxu0 %v157_v57  ;;  %v205_v57 = vld [vmem:[%s3313_s0 + $0x5f8] sm:$0xff] }
  0x93   :  { %607 = vmatmul.mubr.f32.gmra.mrb[40].mxu1 %v154_v8  ;;  %v95_v8 = vld [vmem:[%s3313_s0 + $0x288] sm:$0xff] }
  0x94   :  { %832 = vmatmul.mubr.f32.gmra.mrb[40].mxu0 %v156_v50  ;;  %611 = vmatprep.mubr.f32.mxu1 %v162_v58  ;;  %v213_v50 = vld [vmem:[%s3313_s0 + $0x638] sm:$0xff]  ;;  %v103_v58 = vld [vmem:[%s3313_s0 + $0x2c8] sm:$0xff] }
  0x95   :  { %836 = vmatprep.mubr.f32.mxu0 %v164_v59  ;;  %v212_v59 = vld [vmem:[%s3313_s0 + $0x630] sm:$0xff] }
  0x97   :  { %612 = vmatmul.mubr.f32.gmra.mrb[42].mxu1 %v161_v60  ;;  %v102_v60 = vld [vmem:[%s3313_s0 + $0x2c0] sm:$0xff] }
  0x98   :  { %837 = vmatmul.mubr.f32.gmra.mrb[42].mxu0 %v163_v61  ;;  %616 = vmatprep.mubr.f32.mxu1 %v169_v63  ;;  %v220_v61 = vld [vmem:[%s3313_s0 + $0x670] sm:$0xff]  ;;  %v110_v63 = vld [vmem:[%s3313_s0 + $0x300] sm:$0xff] }
  0x99   :  { %841 = vmatprep.mubr.f32.mxu0 %v171_v1  ;;  %v219_v1 = vld [vmem:[%s3313_s0 + $0x668] sm:$0xff] }
  0x9b   :  { %617 = vmatmul.mubr.f32.gmra.mrb[44].mxu1 %v168_v56  ;;  %v109_v56 = vld [vmem:[%s3313_s0 + $0x2f8] sm:$0xff] }
  0x9c   :  { %842 = vmatmul.mubr.f32.gmra.mrb[44].mxu0 %v170_v2  ;;  %621 = vmatprep.mubr.f32.mxu1 %v176_v3  ;;  %v227_v2 = vld [vmem:[%s3313_s0 + $0x6a8] sm:$0xff]  ;;  %v117_v3 = vld [vmem:[%s3313_s0 + $0x338] sm:$0xff] }
  0x9d   :  { %846 = vmatprep.mubr.f32.mxu0 %v178_v4  ;;  %v226_v4 = vld [vmem:[%s3313_s0 + $0x6a0] sm:$0xff] }
  0x9f   :  { %622 = vmatmul.mubr.f32.gmra.mrb[46].mxu1 %v175_v12  ;;  %v116_v12 = vld [vmem:[%s3313_s0 + $0x330] sm:$0xff] }
  0xa0   :  { %847 = vmatmul.mubr.f32.gmra.mrb[46].mxu0 %v177_v6  ;;  %626 = vmatprep.mubr.f32.mxu1 %v183_v7  ;;  %v234_v6 = vld [vmem:[%s3313_s0 + $0x6e0] sm:$0xff]  ;;  %v124_v7 = vld [vmem:[%s3313_s0 + $0x370] sm:$0xff] }
  0xa1   :  { %956 = vmatprep.mubr.f32.mxu0 %v19_v62  ;;  %v233_v62 = vld [vmem:[%s3313_s0 + $0x6d8] sm:$0xff] }
  0xa3   :  { %627 = vmatmul.mubr.f32.gmra.mrb[48].mxu1 %v182_v9  ;;  %v123_v9 = vld [vmem:[%s3313_s0 + $0x368] sm:$0xff] }
  0xa4   :  { %957 = vmatmul.mubr.f32.vlgmr.msra.gmra.mrb[0].mxu0 %v18_v10  ;;  %631 = vmatprep.mubr.f32.mxu1 %v190_v11  ;;  %v20_v10 = vld [vmem:[%s3313_s0 + $0x30] sm:$0xff]  ;;  %v131_v11 = vld [vmem:[%s3313_s0 + $0x3a8] sm:$0xff] }
  0xa5   :  { %961 = vmatprep.mubr.f32.mxu0 %v26_v14  ;;  %v27_v14 = vld [vmem:[%s3313_s0 + $0x68] sm:$0xff] }
  0xa7   :  { %632 = vmatmul.mubr.f32.gmra.mrb[50].mxu1 %v189_v15  ;;  %v130_v15 = vld [vmem:[%s3313_s0 + $0x3a0] sm:$0xff] }
  0xa8   :  { %962 = vmatmul.mubr.f32.gmra.mrb[2].mxu0 %v25_v18  ;;  %636 = vmatprep.mubr.f32.mxu1 %v197_v5  ;;  %v34_v18 = vld [vmem:[%s3313_s0 + $0xa0] sm:$0xff] }
  0xa9   :  { %966 = vmatprep.mubr.f32.mxu0 %v33_v16  ;;  %v138_v5 = vld [vmem:[%s3313_s0 + $0x3e0] sm:$0xff]  ;;  %v41_v16 = vld [vmem:[%s3313_s0 + $0xd8] sm:$0xff] }
  0xab   :  { %637 = vmatmul.mubr.f32.gmra.mrb[52].mxu1 %v196_v17  ;;  %v137_v17 = vld [vmem:[%s3313_s0 + $0x3d8] sm:$0xff] }
  0xac   :  { %967 = vmatmul.mubr.f32.gmra.mrb[4].mxu0 %v32_v19  ;;  %641 = vmatprep.mubr.f32.mxu1 %v204_v21  ;;  %v48_v19 = vld [vmem:[%s3313_s0 + $0x110] sm:$0xff]  ;;  %v145_v21 = vld [vmem:[%s3313_s0 + $0x418] sm:$0xff] }
  0xad   :  { %971 = vmatprep.mubr.f32.mxu0 %v40_v22  ;;  %v55_v22 = vld [vmem:[%s3313_s0 + $0x148] sm:$0xff] }
  0xaf   :  { %642 = vmatmul.mubr.f32.gmra.mrb[54].mxu1 %v203_v23  ;;  %v144_v23 = vld [vmem:[%s3313_s0 + $0x410] sm:$0xff] }
  0xb0   :  { %972 = vmatmul.mubr.f32.gmra.mrb[6].mxu0 %v39_v13  ;;  %646 = vmatprep.mubr.f32.mxu1 %v211_v24  ;;  %v62_v13 = vld [vmem:[%s3313_s0 + $0x180] sm:$0xff]  ;;  %v152_v24 = vld [vmem:[%s3313_s0 + $0x450] sm:$0xff] }
  0xb1   :  { %976 = vmatprep.mubr.f32.mxu0 %v47_v25  ;;  %v69_v25 = vld [vmem:[%s3313_s0 + $0x1b8] sm:$0xff] }
  0xb3   :  { %647 = vmatmul.mubr.f32.gmra.mrb[56].mxu1 %v210_v26  ;;  %v151_v26 = vld [vmem:[%s3313_s0 + $0x448] sm:$0xff] }
  0xb4   :  { %977 = vmatmul.mubr.f32.gmra.mrb[8].mxu0 %v46_v28  ;;  %651 = vmatprep.mubr.f32.mxu1 %v218_v29  ;;  %v76_v28 = vld [vmem:[%s3313_s0 + $0x1f0] sm:$0xff]  ;;  %v159_v29 = vld [vmem:[%s3313_s0 + $0x488] sm:$0xff] }
  0xb5   :  { %981 = vmatprep.mubr.f32.mxu0 %v54_v31  ;;  %v83_v31 = vld [vmem:[%s3313_s0 + $0x228] sm:$0xff] }
  0xb7   :  { %652 = vmatmul.mubr.f32.gmra.mrb[58].mxu1 %v217_v20  ;;  %v158_v20 = vld [vmem:[%s3313_s0 + $0x480] sm:$0xff] }
  0xb8   :  { %982 = vmatmul.mubr.f32.gmra.mrb[10].mxu0 %v53_v32  ;;  %656 = vmatprep.mubr.f32.mxu1 %v225_v30  ;;  %v90_v32 = vld [vmem:[%s3313_s0 + $0x260] sm:$0xff] }
  0xb9   :  { %986 = vmatprep.mubr.f32.mxu0 %v61_v33  ;;  %v166_v30 = vld [vmem:[%s3313_s0 + $0x4c0] sm:$0xff]  ;;  %v97_v33 = vld [vmem:[%s3313_s0 + $0x298] sm:$0xff] }
  0xbb   :  { %657 = vmatmul.mubr.f32.gmra.mrb[60].mxu1 %v224_v35  ;;  %v165_v35 = vld [vmem:[%s3313_s0 + $0x4b8] sm:$0xff] }
  0xbc   :  { %987 = vmatmul.mubr.f32.gmra.mrb[12].mxu0 %v60_v37  ;;  %661 = vmatprep.mubr.f32.mxu1 %v232_v38  ;;  %v104_v37 = vld [vmem:[%s3313_s0 + $0x2d0] sm:$0xff]  ;;  %v173_v38 = vld [vmem:[%s3313_s0 + $0x4f8] sm:$0xff] }
  0xbd   :  { %991 = vmatprep.mubr.f32.mxu0 %v68_v27  ;;  %v111_v27 = vld [vmem:[%s3313_s0 + $0x308] sm:$0xff] }
  0xbf   :  { %662 = vmatmul.mubr.f32.gmra.mrb[62].mxu1 %v231_v39  ;;  %v172_v39 = vld [vmem:[%s3313_s0 + $0x4f0] sm:$0xff] }
  0xc0   :  { %992 = vmatmul.mubr.f32.gmra.mrb[14].mxu0 %v67_v40  ;;  %851 = vmatprep.mubr.f32.mxu1 %v185_v36  ;;  %v118_v40 = vld [vmem:[%s3313_s0 + $0x340] sm:$0xff]  ;;  %v180_v36 = vld [vmem:[%s3313_s0 + $0x530] sm:$0xff] }
  0xc1   :  { %996 = vmatprep.mubr.f32.mxu0 %v75_v43  ;;  %v125_v43 = vld [vmem:[%s3313_s0 + $0x378] sm:$0xff] }
  0xc3   :  { %852 = vmatmul.mubr.f32.vlgmr.msra.gmra.mrb[48].mxu1 %v184_v0  ;;  %v187_v0 = vld [vmem:[%s3313_s0 + $0x568] sm:$0xff] }
  0xc4   :  { %997 = vmatmul.mubr.f32.gmra.mrb[16].mxu0 %v74_v46  ;;  %1683 = vmatpush3.bf16.msra.mxu1 %v2489_v42  ;;  %v198_v42 = vld [vmem:[%s3313_s0 + $0x5c0] sm:$0xff]  ;;  %v139_v46 = vld [vmem:[%s3313_s0 + $0x3e8] sm:$0xff] }
  0xc5   :  { %856 = vmatprep.mubr.f32.mxu1 %v192_v47  ;;  %1001 = vmatprep.mubr.f32.mxu0 %v82_v48  ;;  %v186_v47 = vld [vmem:[%s3313_s0 + $0x560] sm:$0xff] }
  0xc6   :  { %1685 = vmatprep.subr.bf16.mxu1 %v1684_v41  ;;  %v146_v48 = vld [vmem:[%s3313_s0 + $0x420] sm:$0xff] }
  0xc7   :  { %857 = vmatmul.mubr.f32.gmra.mrb[50].mxu1 %v191_v49  ;;  %v153_v49 = vld [vmem:[%s3313_s0 + $0x458] sm:$0xff] }
  0xc8   :  { %1002 = vmatmul.mubr.f32.gmra.mrb[18].mxu0 %v81_v51  ;;  %861 = vmatprep.mubr.f32.mxu1 %v199_v44  ;;  %v193_v51 = vld [vmem:[%s3313_s0 + $0x598] sm:$0xff]  ;;  %v160_v44 = vld [vmem:[%s3313_s0 + $0x490] sm:$0xff] }
  0xc9   :  { %1006 = vmatprep.mubr.f32.mxu0 %v89_v52  ;;  %1687 = vmatpush3.bf16.msra.mxu1 %v1684_v41  ;;  %v194_v41 = vld [vmem:[%s3313_s0 + $0x5a0] sm:$0xff]  ;;  %v201_v52 = vld [vmem:[%s3313_s0 + $0x5d8] sm:$0xff] }
  0xcb   :  { %862 = vmatmul.mubr.f32.gmra.mrb[52].mxu1 %v198_v42  ;;  %v167_v42 = vld [vmem:[%s3313_s0 + $0x4c8] sm:$0xff] }
  0xcc   :  { %1007 = vmatmul.mubr.f32.gmra.mrb[20].mxu0 %v88_v53  ;;  %866 = vmatprep.mubr.f32.mxu1 %v206_v54  ;;  %v200_v53 = vld [vmem:[%s3313_s0 + $0x5d0] sm:$0xff]  ;;  %v174_v54 = vld [vmem:[%s3313_s0 + $0x500] sm:$0xff] }
  0xcd   :  { %1011 = vmatprep.mubr.f32.mxu0 %v96_v55  ;;  %v208_v55 = vld [vmem:[%s3313_s0 + $0x610] sm:$0xff] }
  0xcf   :  { %867 = vmatmul.mubr.f32.gmra.mrb[54].mxu1 %v205_v57  ;;  %v181_v57 = vld [vmem:[%s3313_s0 + $0x538] sm:$0xff] }
  0xd0   :  { %1012 = vmatmul.mubr.f32.gmra.mrb[22].mxu0 %v95_v8  ;;  %871 = vmatprep.mubr.f32.mxu1 %v213_v50  ;;  %v207_v8 = vld [vmem:[%s3313_s0 + $0x608] sm:$0xff]  ;;  %v188_v50 = vld [vmem:[%s3313_s0 + $0x570] sm:$0xff] }
  0xd1   :  { %1016 = vmatprep.mubr.f32.mxu0 %v103_v58  ;;  %v215_v58 = vld [vmem:[%s3313_s0 + $0x648] sm:$0xff] }
  0xd3   :  { %872 = vmatmul.mubr.f32.gmra.mrb[56].mxu1 %v212_v59  ;;  %v195_v59 = vld [vmem:[%s3313_s0 + $0x5a8] sm:$0xff] }
  0xd4   :  { %1017 = vmatmul.mubr.f32.gmra.mrb[24].mxu0 %v102_v60  ;;  %876 = vmatprep.mubr.f32.mxu1 %v220_v61  ;;  %v214_v60 = vld [vmem:[%s3313_s0 + $0x640] sm:$0xff] }
  0xd5   :  { %1021 = vmatprep.mubr.f32.mxu0 %v110_v63  ;;  %v202_v61 = vld [vmem:[%s3313_s0 + $0x5e0] sm:$0xff] }
  0xd6   :  { %v222_v63 = vld [vmem:[%s3313_s0 + $0x680] sm:$0xff] }
  0xd7   :  { %877 = vmatmul.mubr.f32.gmra.mrb[58].mxu1 %v219_v1  ;;  %v209_v1 = vld [vmem:[%s3313_s0 + $0x618] sm:$0xff] }
  0xd8   :  { %1022 = vmatmul.mubr.f32.gmra.mrb[26].mxu0 %v109_v56  ;;  %881 = vmatprep.mubr.f32.mxu1 %v227_v2  ;;  %v221_v56 = vld [vmem:[%s3313_s0 + $0x678] sm:$0xff]  ;;  %v216_v2 = vld [vmem:[%s3313_s0 + $0x650] sm:$0xff] }
  0xd9   :  { %1026 = vmatprep.mubr.f32.mxu0 %v117_v3 }
  0xdb   :  { %882 = vmatmul.mubr.f32.gmra.mrb[60].mxu1 %v226_v4  ;;  %v229_v4 = vld [vmem:[%s3313_s0 + $0x6b8] sm:$0xff] }
  0xdc   :  { %1027 = vmatmul.mubr.f32.gmra.mrb[28].mxu0 %v116_v12  ;;  %886 = vmatprep.mubr.f32.mxu1 %v234_v6  ;;  %v223_v6 = vld [vmem:[%s3313_s0 + $0x688] sm:$0xff] }
  0xdd   :  { %1031 = vmatprep.mubr.f32.mxu0 %v124_v7  ;;  %v228_v7 = vld [vmem:[%s3313_s0 + $0x6b0] sm:$0xff] }
  0xdf   :  { %887 = vmatmul.mubr.f32.gmra.mrb[62].mxu1 %v233_v62  ;;  %v230_v62 = vld [vmem:[%s3313_s0 + $0x6c0] sm:$0xff] }
  0xe0   :  { %1032 = vmatmul.mubr.f32.gmra.mrb[30].mxu0 %v123_v9  ;;  %1488 = vmatprep.mubr.msk.f32.mxu1 %vm345_vm0, %v20_v10  ;;  %v236_v10 = vld [vmem:[%s3313_s0 + $0x6f0] sm:$0xff] }
  0xe1   :  { %1036 = vmatprep.mubr.f32.mxu0 %v131_v11 }
  0xe3   :  { %1489 = vmatmul.mubr.msk.f32.vlgmr.msra.gmra.mrb[64].mxu1 %vm345_vm0, %v27_v14  ;;  %v237_v14 = vld [vmem:[%s3313_s0 + $0x6f8] sm:$0xff] }
  0xe4   :  { %1037 = vmatmul.mubr.f32.gmra.mrb[32].mxu0 %v130_v15  ;;  %1491 = vmatprep.mubr.msk.f32.mxu1 %vm345_vm0, %v34_v18  ;;  %v235_v15 = vld [vmem:[%s3313_s0 + $0x6e8] sm:$0xff] }
  0xe5   :  { %1041 = vmatprep.mubr.f32.mxu0 %v138_v5 }
  0xe7   :  { %1492 = vmatmul.mubr.msk.f32.gmra.mrb[66].mxu1 %vm345_vm0, %v41_v16 }
  0xe8   :  { %1042 = vmatmul.mubr.f32.gmra.mrb[34].mxu0 %v137_v17  ;;  %1494 = vmatprep.mubr.msk.f32.mxu1 %vm345_vm0, %v48_v19 }
  0xe9   :  { %1046 = vmatprep.mubr.f32.mxu0 %v145_v21 }
  0xeb   :  { %1495 = vmatmul.mubr.msk.f32.gmra.mrb[68].mxu1 %vm345_vm0, %v55_v22 }
  0xec   :  { %1047 = vmatmul.mubr.f32.gmra.mrb[36].mxu0 %v144_v23  ;;  %1497 = vmatprep.mubr.msk.f32.mxu1 %vm345_vm0, %v62_v13 }
  0xed   :  { %1051 = vmatprep.mubr.f32.mxu0 %v152_v24 }
  0xef   :  { %1498 = vmatmul.mubr.msk.f32.gmra.mrb[70].mxu1 %vm345_vm0, %v69_v25 }
  0xf0   :  { %1052 = vmatmul.mubr.f32.gmra.mrb[38].mxu0 %v151_v26  ;;  %1500 = vmatprep.mubr.msk.f32.mxu1 %vm345_vm0, %v76_v28 }
  0xf1   :  { %1056 = vmatprep.mubr.f32.mxu0 %v159_v29 }
  0xf3   :  { %1501 = vmatmul.mubr.msk.f32.gmra.mrb[72].mxu1 %vm345_vm0, %v83_v31 }
  0xf4   :  { %1057 = vmatmul.mubr.f32.gmra.mrb[40].mxu0 %v158_v20  ;;  %1503 = vmatprep.mubr.msk.f32.mxu1 %vm345_vm0, %v90_v32 }
  0xf5   :  { %1061 = vmatprep.mubr.f32.mxu0 %v166_v30 }
  0xf7   :  { %1504 = vmatmul.mubr.msk.f32.gmra.mrb[74].mxu1 %vm345_vm0, %v97_v33 }
  0xf8   :  { %1062 = vmatmul.mubr.f32.gmra.mrb[42].mxu0 %v165_v35  ;;  %1506 = vmatprep.mubr.msk.f32.mxu1 %vm345_vm0, %v104_v37 }
  0xf9   :  { %1066 = vmatprep.mubr.f32.mxu0 %v173_v38 }
  0xfb   :  { %1507 = vmatmul.mubr.msk.f32.gmra.mrb[76].mxu1 %vm345_vm0, %v111_v27 }
  0xfc   :  { %1067 = vmatmul.mubr.f32.gmra.mrb[44].mxu0 %v172_v39  ;;  %1509 = vmatprep.mubr.msk.f32.mxu1 %vm345_vm0, %v118_v40 }
  0xfd   :  { %1071 = vmatprep.mubr.f32.mxu0 %v180_v36 }
  0xff   :  { %1510 = vmatmul.mubr.msk.f32.gmra.mrb[78].mxu1 %vm345_vm0, %v125_v43 }
 0x100   :  { %1072 = vmatmul.mubr.f32.gmra.mrb[46].mxu0 %v179_v45  ;;  %1512 = vmatprep.mubr.msk.f32.mxu1 %vm345_vm0, %v132_v34 }
 0x101   :  { %1076 = vmatprep.mubr.f32.mxu0 %v187_v0 }
 0x103   :  { %1513 = vmatmul.mubr.msk.f32.gmra.mrb[80].mxu1 %vm345_vm0, %v139_v46 }
 0x104   :  { %1077 = vmatmul.mubr.f32.gmra.mrb[48].mxu0 %v186_v47  ;;  %1515 = vmatprep.mubr.msk.f32.mxu1 %vm345_vm0, %v146_v48 }
 0x105   :  { %1081 = vmatprep.mubr.f32.mxu0 %v194_v41 }
 0x107   :  { %1516 = vmatmul.mubr.msk.f32.gmra.mrb[82].mxu1 %vm345_vm0, %v153_v49 }
 0x108   :  { %1082 = vmatmul.mubr.f32.gmra.mrb[50].mxu0 %v193_v51  ;;  %1518 = vmatprep.mubr.msk.f32.mxu1 %vm345_vm0, %v160_v44 }
 0x109   :  { %1086 = vmatprep.mubr.f32.mxu0 %v201_v52 }
 0x10b   :  { %1519 = vmatmul.mubr.msk.f32.gmra.mrb[84].mxu1 %vm345_vm0, %v167_v42 }
 0x10c   :  { %1087 = vmatmul.mubr.f32.gmra.mrb[52].mxu0 %v200_v53  ;;  %1521 = vmatprep.mubr.msk.f32.mxu1 %vm345_vm0, %v174_v54 }
 0x10d   :  { %1091 = vmatprep.mubr.f32.mxu0 %v208_v55 }
 0x10f   :  { %1522 = vmatmul.mubr.msk.f32.gmra.mrb[86].mxu1 %vm345_vm0, %v181_v57 }
 0x110   :  { %1092 = vmatmul.mubr.f32.gmra.mrb[54].mxu0 %v207_v8  ;;  %1524 = vmatprep.mubr.msk.f32.mxu1 %vm345_vm0, %v188_v50  ;;  %v3045_v8 = vld [vmem:[%s3314_s2] ss:$0 sm:$0xff] }
 0x111   :  { %1096 = vmatprep.mubr.f32.mxu0 %v215_v58 }
 0x113   :  { %1525 = vmatmul.mubr.msk.f32.gmra.mrb[88].mxu1 %vm345_vm0, %v195_v59 }
 0x114   :  { %1097 = vmatmul.mubr.f32.gmra.mrb[56].mxu0 %v214_v60  ;;  %1527 = vmatprep.mubr.msk.f32.mxu1 %vm345_vm0, %v202_v61 }
 0x115   :  { %1101 = vmatprep.mubr.f32.mxu0 %v222_v63 }
 0x116   :  { %v2980_v3 = vpop.f32.mrb[0].mxu1 }
 0x117   :  { %1528 = vmatmul.mubr.msk.f32.gmra.mrb[90].mxu1 %vm345_vm0, %v209_v1  ;;  %v510_v12 = vpop.f32.mrb[1].mxu1  ;;  %v509_v58 = vadd.f32 %v3045_v8, %v2980_v3 }
 0x118   :  { %1102 = vmatmul.mubr.f32.gmra.mrb[58].mxu0 %v221_v56  ;;  %1530 = vmatprep.mubr.msk.f32.mxu1 %vm345_vm0, %v216_v2 }
 0x119   :  { %1106 = vmatprep.mubr.f32.mxu0 %v229_v4 }
 0x11a   :  { %v513_v9 = vpop.f32.mrb[2].mxu1 }
 0x11b   :  { %1531 = vmatmul.mubr.msk.f32.gmra.mrb[92].mxu1 %vm345_vm0, %v223_v6  ;;  %v515_v11 = vpop.f32.mrb[3].mxu1  ;;  %v514_v63 = vadd.f32 %v3045_v8, %v513_v9 }
 0x11c   :  { %1107 = vmatmul.mubr.f32.gmra.mrb[60].mxu0 %v228_v7  ;;  %1533 = vmatprep.mubr.msk.f32.mxu1 %vm345_vm0, %v230_v62 }
 0x11d   :  { %1111 = vmatprep.mubr.f32.mxu0 %v236_v10 }
 0x11e   :  { %v518_v18 = vpop.f32.mrb[4].mxu1 }
 0x11f   :  { %1534 = vmatmul.mubr.msk.f32.gmra.mrb[94].mxu1 %vm345_vm0, %v237_v14  ;;  %v520_v5 = vpop.f32.mrb[5].mxu1  ;;  %v519_v4 = vadd.f32 %v3045_v8, %v518_v18 }
 0x120   :  { %1112 = vmatmul.mubr.f32.gmra.mrb[62].mxu0 %v235_v15 }
 0x122   :  { %v523_v16 = vpop.f32.mrb[6].mxu1 }
 0x123   :  { %v525_v17 = vpop.f32.mrb[7].mxu1  ;;  %v524_v62 = vadd.f32 %v3045_v8, %v523_v16 }
 0x126   :  { %v528_v19 = vpop.f32.mrb[8].mxu1 }
 0x127   :  { %v530_v21 = vpop.f32.mrb[9].mxu1  ;;  %v529_v14 = vadd.f32 %v3045_v8, %v528_v19 }
 0x12a   :  { %v533_v22 = vpop.f32.mrb[10].mxu1 }
 0x12b   :  { %v535_v23 = vpop.f32.mrb[11].mxu1  ;;  %v534_v17 = vadd.f32 %v3045_v8, %v533_v22 }
 0x12e   :  { %v538_v13 = vpop.f32.mrb[12].mxu1 }
 0x12f   :  { %v540_v24 = vpop.f32.mrb[13].mxu1 }
 0x130   :  { %v539_v24 = vadd.f32 %v3045_v8, %v538_v13 }
 0x132   :  { %v3008_v25 = vpop.f32.mrb[14].mxu1 }
 0x133   :  { %v545_v26 = vpop.f32.mrb[15].mxu1 }
 0x136   :  { %v3010_v28 = vpop.f32.mrb[16].mxu1 }
 0x137   :  { %v550_v29 = vpop.f32.mrb[17].mxu1  ;;  %v549_v22 = vadd.f32 %v3045_v8, %v3010_v28 }
 0x13a   :  { %v3012_v31 = vpop.f32.mrb[18].mxu1 }
 0x13b   :  { %v555_v20 = vpop.f32.mrb[19].mxu1 }
 0x13c   :  { %v544_v20 = vadd.f32 %v3045_v8, %v3008_v25 }
 0x13e   :  { %v3014_v32 = vpop.f32.mrb[20].mxu1 }
 0x13f   :  { %v560_v30 = vpop.f32.mrb[21].mxu1  ;;  %v559_v28 = vadd.f32 %v3045_v8, %v3014_v32 }
 0x142   :  { %v3016_v33 = vpop.f32.mrb[22].mxu1 }
 0x143   :  { %v565_v35 = vpop.f32.mrb[23].mxu1 }
 0x146   :  { %v3018_v37 = vpop.f32.mrb[24].mxu1 }
 0x147   :  { %v570_v38 = vpop.f32.mrb[25].mxu1  ;;  %v569_v32 = vadd.f32 %v3045_v8, %v3018_v37 }
 0x14a   :  { %v3020_v27 = vpop.f32.mrb[26].mxu1 }
 0x14b   :  { %v575_v39 = vpop.f32.mrb[27].mxu1 }
 0x14e   :  { %v3022_v40 = vpop.f32.mrb[28].mxu1 }
 0x14f   :  { %v580_v36 = vpop.f32.mrb[29].mxu1  ;;  %v579_v37 = vadd.f32 %v3045_v8, %v3022_v40 }
 0x152   :  { %v3024_v43 = vpop.f32.mrb[30].mxu1 }
 0x153   :  { %v585_v45 = vpop.f32.mrb[31].mxu1 }
 0x156   :  { %v3026_v34 = vpop.f32.mrb[32].mxu1 }
 0x157   :  { %v590_v0 = vpop.f32.mrb[33].mxu1  ;;  %v589_v40 = vadd.f32 %v3045_v8, %v3026_v34 }
 0x158   :  { %v554_v0 = vadd.f32 %v3045_v8, %v3012_v31  ;;  %v564_v31 = vadd.f32 %v3045_v8, %v3016_v33  ;;  %v574_v33 = vadd.f32 %v3045_v8, %v3020_v27  ;;  %v584_v27 = vadd.f32 %v3045_v8, %v3024_v43 }
 0x15a   :  { %v3028_v46 = vpop.f32.mrb[34].mxu1 }
 0x15b   :  { %v595_v47 = vpop.f32.mrb[35].mxu1 }
 0x15e   :  { %v3030_v48 = vpop.f32.mrb[36].mxu1 }
 0x15f   :  { %v600_v41 = vpop.f32.mrb[37].mxu1 }
 0x162   :  { %v3032_v49 = vpop.f32.mrb[38].mxu1 }
 0x163   :  { %v605_v51 = vpop.f32.mrb[39].mxu1 }
 0x166   :  { %v3034_v44 = vpop.f32.mrb[40].mxu1 }
 0x167   :  { %v610_v52 = vpop.f32.mrb[41].mxu1 }
 0x16a   :  { %v3036_v42 = vpop.f32.mrb[42].mxu1 }
 0x16b   :  { %v615_v53 = vpop.f32.mrb[43].mxu1 }
 0x16e   :  { %v3038_v54 = vpop.f32.mrb[44].mxu1 }
 0x16f   :  { %v620_v55 = vpop.f32.mrb[45].mxu1 }
 0x172   :  { %v3040_v57 = vpop.f32.mrb[46].mxu1 }
 0x173   :  { %v625_v50 = vpop.f32.mrb[47].mxu1 }
 0x177   :  { %v958_v59 = vpop.f32.mrb[0].mxu0 }
 0x178   :  { %v3049_v60 = vadd.f32 %v958_v59, %v509_v58  ;;  %v960_v61 = vpop.f32.mrb[1].mxu0 }
 0x17b   :  { %v963_v1 = vpop.f32.mrb[2].mxu0 }
 0x17c   :  { %v3052_v56 = vadd.f32 %v963_v1, %v514_v63  ;;  %v965_v2 = vpop.f32.mrb[3].mxu0 }
 0x17f   :  { %v968_v12 = vpop.f32.mrb[4].mxu0 }
 0x180   :  { %v3055_v6 = vadd.f32 %v968_v12, %v519_v4  ;;  %v970_v7 = vpop.f32.mrb[5].mxu0 }
 0x183   :  { %v973_v10 = vpop.f32.mrb[6].mxu0 }
 0x184   :  { %v3058_v3 = vadd.f32 %v973_v10, %v524_v62  ;;  %v975_v11 = vpop.f32.mrb[7].mxu0 }
 0x187   :  { %v978_v15 = vpop.f32.mrb[8].mxu0 }
 0x188   :  { %v3061_v9 = vadd.f32 %v978_v15, %v529_v14  ;;  %v980_v5 = vpop.f32.mrb[9].mxu0 }
 0x18b   :  { %v983_v21 = vpop.f32.mrb[10].mxu0 }
 0x18c   :  { %v3064_v18 = vadd.f32 %v983_v21, %v534_v17  ;;  %v985_v23 = vpop.f32.mrb[11].mxu0 }
 0x18f   :  { %v988_v26 = vpop.f32.mrb[12].mxu0 }
 0x190   :  { %v3067_v16 = vadd.f32 %v988_v26, %v539_v24  ;;  %v990_v29 = vpop.f32.mrb[13].mxu0 }
 0x193   :  { %v993_v19 = vpop.f32.mrb[14].mxu0 }
 0x194   :  { %v3071_v30 = vadd.f32 %v993_v19, %v544_v20  ;;  %v995_v35 = vpop.f32.mrb[15].mxu0 }
 0x196   :  { %v3075_v38 = vpop.f32.mrb[48].mxu1 }
 0x197   :  { %v998_v39 = vpop.f32.mrb[16].mxu0  ;;  %v855_v36 = vpop.f32.mrb[49].mxu1 }
 0x198   :  { %v3077_v45 = vadd.f32 %v998_v39, %v549_v22  ;;  %v1000_v13 = vpop.f32.mrb[17].mxu0 }
 0x19a   :  { %v3081_v47 = vpop.f32.mrb[50].mxu1 }
 0x19b   :  { %v1003_v25 = vpop.f32.mrb[18].mxu0  ;;  %v860_v41 = vpop.f32.mrb[51].mxu1 }
 0x19c   :  { %v3083_v51 = vadd.f32 %v1003_v25, %v554_v0  ;;  %v1005_v52 = vpop.f32.mrb[19].mxu0 }
 0x19e   :  { %v3087_v53 = vpop.f32.mrb[52].mxu1 }
 0x19f   :  { %v1008_v55 = vpop.f32.mrb[20].mxu0  ;;  %v865_v50 = vpop.f32.mrb[53].mxu1 }
 0x1a0   :  { %v3089_v58 = vadd.f32 %v1008_v55, %v559_v28  ;;  %v1010_v59 = vpop.f32.mrb[21].mxu0  ;;  %v594_v50 = vadd.f32 %v3045_v8, %v3028_v46 }
 0x1a2   :  { %v3093_v61 = vpop.f32.mrb[54].mxu1 }
 0x1a3   :  { %v1013_v63 = vpop.f32.mrb[22].mxu0  ;;  %v870_v1 = vpop.f32.mrb[55].mxu1 }
 0x1a4   :  { %v3095_v2 = vadd.f32 %v1013_v63, %v564_v31  ;;  %v1015_v4 = vpop.f32.mrb[23].mxu0 }
 0x1a6   :  { %v3099_v12 = vpop.f32.mrb[56].mxu1 }
 0x1a7   :  { %v1018_v7 = vpop.f32.mrb[24].mxu0  ;;  %v875_v62 = vpop.f32.mrb[57].mxu1 }
 0x1a8   :  { %v3101_v10 = vadd.f32 %v1018_v7, %v569_v32  ;;  %v1020_v11 = vpop.f32.mrb[25].mxu0  ;;  %v599_v32 = vadd.f32 %v3045_v8, %v3030_v48 }
 0x1aa   :  { %v3105_v14 = vpop.f32.mrb[58].mxu1 }
 0x1ab   :  { %v1023_v15 = vpop.f32.mrb[26].mxu0  ;;  %v880_v5 = vpop.f32.mrb[59].mxu1 }
 0x1ac   :  { %v3107_v17 = vadd.f32 %v1023_v15, %v574_v33  ;;  %v1025_v21 = vpop.f32.mrb[27].mxu0 }
 0x1ad   :  { %v604_v21 = vadd.f32 %v3045_v8, %v3032_v49 }
 0x1ae   :  { %v3111_v23 = vpop.f32.mrb[60].mxu1 }
 0x1af   :  { %v1028_v24 = vpop.f32.mrb[28].mxu0  ;;  %v885_v26 = vpop.f32.mrb[61].mxu1 }
 0x1b0   :  { %v3113_v29 = vadd.f32 %v1028_v24, %v579_v37  ;;  %v1030_v20 = vpop.f32.mrb[29].mxu0 }
 0x1b2   :  { %v3117_v19 = vpop.f32.mrb[62].mxu1 }
 0x1b3   :  { %v1033_v35 = vpop.f32.mrb[30].mxu0  ;;  %v890_v22 = vpop.f32.mrb[63].mxu1 }
 0x1b4   :  { %v3119_v39 = vadd.f32 %v1033_v35, %v584_v27  ;;  %v1035_v36 = vpop.f32.mrb[31].mxu0  ;;  %v609_v22 = vadd.f32 %v3045_v8, %v3034_v44 }
 0x1b6   :  { %v1490_v13 = vpop.f32.mrb[64].mxu1 }
 0x1b7   :  { %v1038_v0 = vpop.f32.mrb[32].mxu0  ;;  %v1189_v25 = vadd.f32 %v3052_v56, %v1490_v13  ;;  %v1183_v41 = vpop.f32.mrb[65].mxu1 }
 0x1b8   :  { %v3124_v52 = vadd.f32 %v1038_v0, %v589_v40  ;;  %v1040_v28 = vpop.f32.mrb[33].mxu0  ;;  %v1184_v43 = vadd.f32 %v3049_v60, %v1183_v41 }
 0x1b9   :  { %v1343_v55 = vmax.f32 %v1189_v25, 0.0  ;;  %v614_v28 = vadd.f32 %v3045_v8, %v3036_v42 }
 0x1ba   :  { %v1342_v59 = vmax.f32 %v1184_v43, 0.0  ;;  %v1493_v31 = vpop.f32.mrb[66].mxu1 }
 0x1bb   :  { %1376 = vst.msk [vmem:[%s3315_s3 + $0x8] sm:$0xff] %vm1374_vm1, %v1343_v55  ;;  %v1043_v34 = vpop.f32.mrb[34].mxu0  ;;  %v1199_v56 = vadd.f32 %v3058_v3, %v1493_v31  ;;  %v1193_v63 = vpop.f32.mrb[67].mxu1 }
 0x1bc   :  { %1375 = vst.msk [vmem:[%s3315_s3] sm:$0xff] %vm1374_vm1, %v1342_v59  ;;  %v3138_v60 = vadd.f32 %v1043_v34, %v594_v50  ;;  %v1045_v1 = vpop.f32.mrb[35].mxu0  ;;  %v1194_v46 = vadd.f32 %v3055_v6, %v1193_v63 }
 0x1bd   :  { %v1345_v4 = vmax.f32 %v1199_v56, 0.0  ;;  %v619_v56 = vadd.f32 %v3045_v8, %v3038_v54 }
 0x1be   :  { %v1344_v7 = vmax.f32 %v1194_v46, 0.0  ;;  %v1496_v62 = vpop.f32.mrb[68].mxu1 }
 0x1bf   :  { %1378 = vst.msk [vmem:[%s3315_s3 + $0x18] sm:$0xff] %vm1374_vm1, %v1345_v4  ;;  %v1048_v3 = vpop.f32.mrb[36].mxu0  ;;  %v1209_v11 = vadd.f32 %v3064_v18, %v1496_v62  ;;  %v1203_v33 = vpop.f32.mrb[69].mxu1  ;;  %v624_v62 = vadd.f32 %v3045_v8, %v3040_v57 }
 0x1c0   :  { %1377 = vst.msk [vmem:[%s3315_s3 + $0x10] sm:$0xff] %vm1374_vm1, %v1344_v7  ;;  %v3152_v6 = vadd.f32 %v1048_v3, %v599_v32  ;;  %v1050_v15 = vpop.f32.mrb[37].mxu0  ;;  %v1204_v48 = vadd.f32 %v3061_v9, %v1203_v33 }
 0x1c1   :  { %v1347_v5 = vmax.f32 %v1209_v11, 0.0 }
 0x1c2   :  { %v1346_v37 = vmax.f32 %v1204_v48, 0.0  ;;  %v1499_v24 = vpop.f32.mrb[70].mxu1 }
 0x1c3   :  { %1380 = vst.msk [vmem:[%s3315_s3 + $0x28] sm:$0xff] %vm1374_vm1, %v1347_v5  ;;  %v1053_v18 = vpop.f32.mrb[38].mxu0  ;;  %v1219_v26 = vadd.f32 %v3071_v30, %v1499_v24  ;;  %v1213_v20 = vpop.f32.mrb[71].mxu1 }
 0x1c4   :  { %1379 = vst.msk [vmem:[%s3315_s3 + $0x20] sm:$0xff] %vm1374_vm1, %v1346_v37  ;;  %v3166_v9 = vadd.f32 %v1053_v18, %v604_v21  ;;  %v1055_v27 = vpop.f32.mrb[39].mxu0  ;;  %v1214_v49 = vadd.f32 %v3067_v16, %v1213_v20  ;;  %v1768_v21 = vadd.f32 %v3045_v8, %v3075_v38 }
 0x1c5   :  { %v1349_v35 = vmax.f32 %v1219_v26, 0.0 }
 0x1c6   :  { %v1348_v36 = vmax.f32 %v1214_v49, 0.0  ;;  %v1502_v40 = vpop.f32.mrb[72].mxu1  ;;  %v1770_v49 = vadd.f32 %v3045_v8, %v3081_v47 }
 0x1c7   :  { %1382 = vst.msk [vmem:[%s3315_s3 + $0x38] sm:$0xff] %vm1374_vm1, %v1349_v35  ;;  %v1058_v30 = vpop.f32.mrb[40].mxu0  ;;  %v1229_v13 = vadd.f32 %v3083_v51, %v1502_v40  ;;  %v1223_v0 = vpop.f32.mrb[73].mxu1 }
 0x1c8   :  { %1381 = vst.msk [vmem:[%s3315_s3 + $0x30] sm:$0xff] %vm1374_vm1, %v1348_v36  ;;  %v3180_v16 = vadd.f32 %v1058_v30, %v609_v22  ;;  %v1060_v25 = vpop.f32.mrb[41].mxu0  ;;  %v1224_v44 = vadd.f32 %v3077_v45, %v1223_v0  ;;  %v1772_v0 = vadd.f32 %v3045_v8, %v3087_v53 }
 0x1c9   :  { %v1351_v41 = vmax.f32 %v1229_v13, 0.0 }
 0x1ca   :  { %v1350_v43 = vmax.f32 %v1224_v44, 0.0  ;;  %v1505_v55 = vpop.f32.mrb[74].mxu1 }
 0x1cb   :  { %1384 = vst.msk [vmem:[%s3315_s3 + $0x48] sm:$0xff] %vm1374_vm1, %v1351_v41  ;;  %v1063_v51 = vpop.f32.mrb[42].mxu0  ;;  %v1239_v50 = vadd.f32 %v3095_v2, %v1505_v55  ;;  %v1233_v59 = vpop.f32.mrb[75].mxu1 }
 0x1cc   :  { %1383 = vst.msk [vmem:[%s3315_s3 + $0x40] sm:$0xff] %vm1374_vm1, %v1350_v43  ;;  %v1763_v45 = vadd.f32 %v1063_v51, %v614_v28  ;;  %v1065_v31 = vpop.f32.mrb[43].mxu0  ;;  %v1234_v42 = vadd.f32 %v3089_v58, %v1233_v59  ;;  %v1774_v51 = vadd.f32 %v3045_v8, %v3093_v61  ;;  %v1776_v61 = vadd.f32 %v3045_v8, %v3099_v12 }
 0x1cd   :  { %v1353_v34 = vmax.f32 %v1239_v50, 0.0  ;;  %v1778_v12 = vadd.f32 %v3045_v8, %v3105_v14  ;;  %v1780_v14 = vadd.f32 %v3045_v8, %v3111_v23  ;;  %v1782_v23 = vadd.f32 %v3045_v8, %v3117_v19 }
 0x1ce   :  { %v1352_v63 = vmax.f32 %v1234_v42, 0.0  ;;  %v1508_v1 = vpop.f32.mrb[76].mxu1 }
 0x1cf   :  { %1386 = vst.msk [vmem:[%s3315_s3 + $0x58] sm:$0xff] %vm1374_vm1, %v1353_v34  ;;  %v1068_v2 = vpop.f32.mrb[44].mxu0  ;;  %v1249_v46 = vadd.f32 %v3107_v17, %v1508_v1  ;;  %v1243_v4 = vpop.f32.mrb[77].mxu1 }
 0x1d0   :  { %1385 = vst.msk [vmem:[%s3315_s3 + $0x50] sm:$0xff] %vm1374_vm1, %v1352_v63  ;;  %v1765_v58 = vadd.f32 %v1068_v2, %v619_v56  ;;  %v1070_v32 = vpop.f32.mrb[45].mxu0  ;;  %v1244_v54 = vadd.f32 %v3101_v10, %v1243_v4 }
 0x1d1   :  { %v1355_v7 = vmax.f32 %v1249_v46, 0.0 }
 0x1d2   :  { %v1354_v3 = vmax.f32 %v1244_v54, 0.0  ;;  %v1511_v11 = vpop.f32.mrb[78].mxu1 }
 0x1d3   :  { %1388 = vst.msk [vmem:[%s3315_s3 + $0x68] sm:$0xff] %vm1374_vm1, %v1355_v7  ;;  %v1073_v17 = vpop.f32.mrb[46].mxu0  ;;  %v1259_v33 = vadd.f32 %v3119_v39, %v1511_v11  ;;  %v1253_v15 = vpop.f32.mrb[79].mxu1 }
 0x1d4   :  { %1387 = vst.msk [vmem:[%s3315_s3 + $0x60] sm:$0xff] %vm1374_vm1, %v1354_v3  ;;  %v1767_v10 = vadd.f32 %v1073_v17, %v624_v62  ;;  %v1075_v48 = vpop.f32.mrb[47].mxu0  ;;  %v1254_v57 = vadd.f32 %v3113_v29, %v1253_v15 }
 0x1d5   :  { %v1357_v5 = vmax.f32 %v1259_v33, 0.0 }
 0x1d6   :  { %v1356_v37 = vmax.f32 %v1254_v57, 0.0  ;;  %v1514_v24 = vpop.f32.mrb[80].mxu1 }
 0x1d7   :  { %1390 = vst.msk [vmem:[%s3315_s3 + $0x78] sm:$0xff] %vm1374_vm1, %v1357_v5  ;;  %v1078_v39 = vpop.f32.mrb[48].mxu0  ;;  %v1269_v18 = vadd.f32 %v3138_v60, %v1514_v24  ;;  %v1263_v26 = vpop.f32.mrb[81].mxu1 }
 0x1d8   :  { %1389 = vst.msk [vmem:[%s3315_s3 + $0x70] sm:$0xff] %vm1374_vm1, %v1356_v37  ;;  %v1769_v29 = vadd.f32 %v1768_v21, %v1078_v39  ;;  %v1080_v20 = vpop.f32.mrb[49].mxu0  ;;  %v1264_v38 = vadd.f32 %v3124_v52, %v1263_v26 }
 0x1d9   :  { %v1359_v27 = vmax.f32 %v1269_v18, 0.0 }
 0x1da   :  { %v1358_v35 = vmax.f32 %v1264_v38, 0.0  ;;  %v1517_v22 = vpop.f32.mrb[82].mxu1 }
 0x1db   :  { %1392 = vst.msk [vmem:[%s3315_s3 + $0x88] sm:$0xff] %vm1374_vm1, %v1359_v27  ;;  %v1083_v60 = vpop.f32.mrb[50].mxu0  ;;  %v1279_v36 = vadd.f32 %v3166_v9, %v1517_v22  ;;  %v1273_v40 = vpop.f32.mrb[83].mxu1 }
 0x1dc   :  { %1391 = vst.msk [vmem:[%s3315_s3 + $0x80] sm:$0xff] %vm1374_vm1, %v1358_v35  ;;  %v1771_v52 = vadd.f32 %v1770_v49, %v1083_v60  ;;  %v1085_v30 = vpop.f32.mrb[51].mxu0  ;;  %v1274_v47 = vadd.f32 %v3152_v6, %v1273_v40 }
 0x1dd   :  { %v1361_v13 = vmax.f32 %v1279_v36, 0.0 }
 0x1de   :  { %v1360_v25 = vmax.f32 %v1274_v47, 0.0  ;;  %v1520_v44 = vpop.f32.mrb[84].mxu1 }
 0x1df   :  { %1394 = vst.msk [vmem:[%s3315_s3 + $0x98] sm:$0xff] %vm1374_vm1, %v1361_v13  ;;  %v1088_v9 = vpop.f32.mrb[52].mxu0  ;;  %v1289_v41 = vadd.f32 %v1763_v45, %v1520_v44  ;;  %v1283_v28 = vpop.f32.mrb[85].mxu1 }
 0x1e0   :  { %1393 = vst.msk [vmem:[%s3315_s3 + $0x90] sm:$0xff] %vm1374_vm1, %v1360_v25  ;;  %v1773_v6 = vadd.f32 %v1772_v0, %v1088_v9  ;;  %v1090_v43 = vpop.f32.mrb[53].mxu0  ;;  %v1284_v55 = vadd.f32 %v3180_v16, %v1283_v28 }
 0x1e1   :  { %v1363_v53 = vmax.f32 %v1289_v41, 0.0 }
 0x1e2   :  { %v1362_v50 = vmax.f32 %v1284_v55, 0.0  ;;  %v1523_v59 = vpop.f32.mrb[86].mxu1 }
 0x1e3   :  { %1396 = vst.msk [vmem:[%s3315_s3 + $0xa8] sm:$0xff] %vm1374_vm1, %v1363_v53  ;;  %v1093_v45 = vpop.f32.mrb[54].mxu0  ;;  %v1299_v31 = vadd.f32 %v1767_v10, %v1523_v59  ;;  %v1293_v42 = vpop.f32.mrb[87].mxu1 }
 0x1e4   :  { %1395 = vst.msk [vmem:[%s3315_s3 + $0xa0] sm:$0xff] %vm1374_vm1, %v1362_v50  ;;  %v1775_v16 = vadd.f32 %v1774_v51, %v1093_v45  ;;  %v1095_v34 = vpop.f32.mrb[55].mxu0  ;;  %v1294_v56 = vadd.f32 %v1765_v58, %v1293_v42 }
 0x1e5   :  { %v1365_v63 = vmax.f32 %v1299_v31, 0.0 }
 0x1e6   :  { %v1364_v1 = vmax.f32 %v1294_v56, 0.0  ;;  %v1526_v2 = vpop.f32.mrb[88].mxu1 }
 0x1e7   :  { %1398 = vst.msk [vmem:[%s3315_s3 + $0xb8] sm:$0xff] %vm1374_vm1, %v1365_v63  ;;  %v1098_v46 = vpop.f32.mrb[56].mxu0  ;;  %v1309_v4 = vadd.f32 %v1771_v52, %v1526_v2  ;;  %v1303_v32 = vpop.f32.mrb[89].mxu1 }
 0x1e8   :  { %1397 = vst.msk [vmem:[%s3315_s3 + $0xb0] sm:$0xff] %vm1374_vm1, %v1364_v1  ;;  %v1777_v58 = vadd.f32 %v1776_v61, %v1098_v46  ;;  %v1100_v54 = vpop.f32.mrb[57].mxu0  ;;  %v1304_v7 = vadd.f32 %v1769_v29, %v1303_v32 }
 0x1e9   :  { %v1367_v62 = vmax.f32 %v1309_v4, 0.0 }
 0x1ea   :  { %v1366_v3 = vmax.f32 %v1304_v7, 0.0  ;;  %v1529_v11 = vpop.f32.mrb[90].mxu1 }
 0x1eb   :  { %1400 = vst.msk [vmem:[%s3315_s3 + $0xc8] sm:$0xff] %vm1374_vm1, %v1367_v62  ;;  %v1103_v17 = vpop.f32.mrb[58].mxu0  ;;  %v1319_v33 = vadd.f32 %v1775_v16, %v1529_v11  ;;  %v1313_v15 = vpop.f32.mrb[91].mxu1 }
 0x1ec   :  { %1399 = vst.msk [vmem:[%s3315_s3 + $0xc0] sm:$0xff] %vm1374_vm1, %v1366_v3  ;;  %v1779_v10 = vadd.f32 %v1778_v12, %v1103_v17  ;;  %v1105_v48 = vpop.f32.mrb[59].mxu0  ;;  %v1314_v57 = vadd.f32 %v1773_v6, %v1313_v15 }
 0x1ed   :  { %v1369_v5 = vmax.f32 %v1319_v33, 0.0 }
 0x1ee   :  { %v1368_v21 = vmax.f32 %v1314_v57, 0.0  ;;  %v1532_v37 = vpop.f32.mrb[92].mxu1 }
 0x1ef   :  { %1402 = vst.msk [vmem:[%s3315_s3 + $0xd8] sm:$0xff] %vm1374_vm1, %v1369_v5  ;;  %v1108_v24 = vpop.f32.mrb[60].mxu0  ;;  %v1329_v39 = vadd.f32 %v1779_v10, %v1532_v37  ;;  %v1323_v18 = vpop.f32.mrb[93].mxu1 }
 0x1f0   :  { %1401 = vst.msk [vmem:[%s3315_s3 + $0xd0] sm:$0xff] %vm1374_vm1, %v1368_v21  ;;  %v1781_v26 = vadd.f32 %v1780_v14, %v1108_v24  ;;  %v1110_v29 = vpop.f32.mrb[61].mxu0  ;;  %v1324_v20 = vadd.f32 %v1777_v58, %v1323_v18 }
 0x1f1   :  { %v1371_v38 = vmax.f32 %v1329_v39, 0.0 }
 0x1f2   :  { %v1370_v27 = vmax.f32 %v1324_v20, 0.0  ;;  %v1535_v49 = vpop.f32.mrb[94].mxu1 }
 0x1f3   :  { %1404 = vst.msk [vmem:[%s3315_s3 + $0xe8] sm:$0xff] %vm1374_vm1, %v1371_v38  ;;  %v1113_v35 = vpop.f32.mrb[62].mxu0  ;;  %v1333_v22 = vpop.f32.mrb[95].mxu1 }
 0x1f4   :  { %1403 = vst.msk [vmem:[%s3315_s3 + $0xe0] sm:$0xff] %vm1374_vm1, %v1370_v27  ;;  %v1783_v60 = vadd.f32 %v1782_v23, %v1113_v35  ;;  %v1115_v36 = vpop.f32.mrb[63].mxu0  ;;  %v1334_v40 = vadd.f32 %v1781_v26, %v1333_v22 }
 0x1f6   :  { %v1339_v52 = vadd.f32 %v1783_v60, %v1535_v49  ;;  %v1372_v30 = vmax.f32 %v1334_v40, 0.0 }
 0x1f8   :  { %v1373_v8 = vmax.f32 %v1339_v52, 0.0  ;;  %1405 = vst.msk [vmem:[%s3315_s3 + $0xf0] sm:$0xff] %vm1374_vm1, %v1372_v30 }
 0x1fa   :  { %1406 = vst.msk [vmem:[%s3315_s3 + $0xf8] sm:$0xff] %vm1374_vm1, %v1373_v8 }

// kernel: cnnleaf_forward.8
= control target key start
LH: loop header
LB: loop body
LE: loop exit
PB: predicated region body
PF: predicated region fallthrough
CT: control target
= control target key end

     0   :  { %vm66_vm0 = vcmask 523264   ;;  %vm73_vm1 = vcmask 517120   ;;  %s215_s0 = inlined_call_operand.vmem [shape: f32[50,64], index: 0, kind: input, shape index: {}]   ;;  %s216_s1 = inlined_call_operand.vmem [shape: f32[50,64], index: 1, kind: input, shape index: {}]   ;;  %s217_s2 = inlined_call_operand.vmem [shape: f32[50,64], index: 2, kind: input, shape index: {}]   ;;  %s218_s3 = inlined_call_operand.vmem [shape: f32[50,64], index: 3, kind: input, shape index: {}]   ;;  %s219_s4 = inlined_call_operand.vmem [shape: f32[50,64], index: 4, kind: output, shape index: {}]  }
   0x1   :  { %v17_v0 = vld [vmem:[%s215_s0] sm:$0xff]  ;;  %v18_v5 = vld [vmem:[%s215_s0 + $0x8] sm:$0xff]  ;;  %v19_v11 = vld [vmem:[%s215_s0 + $0x10] sm:$0xff] }
   0x2   :  { %v24_v1 = vld [vmem:[%s216_s1] sm:$0xff]  ;;  %v25_v6 = vld [vmem:[%s216_s1 + $0x8] sm:$0xff]  ;;  %v26_v13 = vld [vmem:[%s216_s1 + $0x10] sm:$0xff] }
   0x3   :  { %v38_v2 = vld [vmem:[%s217_s2] sm:$0xff]  ;;  %v31_v3 = vmax.f32 %v17_v0, %v24_v1  ;;  %v32_v8 = vmax.f32 %v18_v5, %v25_v6  ;;  %v39_v9 = vld [vmem:[%s217_s2 + $0x8] sm:$0xff]  ;;  %v40_v14 = vld [vmem:[%s217_s2 + $0x10] sm:$0xff]  ;;  %v33_v17 = vmax.f32 %v19_v11, %v26_v13 }
   0x4   :  { %v45_v4 = vld [vmem:[%s218_s3] sm:$0xff]  ;;  %v46_v10 = vld [vmem:[%s218_s3 + $0x8] sm:$0xff]  ;;  %v47_v15 = vld [vmem:[%s218_s3 + $0x10] sm:$0xff] }
   0x5   :  { %v52_v7 = vmax.f32 %v38_v2, %v45_v4  ;;  %v53_v12 = vmax.f32 %v39_v9, %v46_v10  ;;  %v54_v18 = vmax.f32 %v40_v14, %v47_v15  ;;  %v20_v19 = vld [vmem:[%s215_s0 + $0x18] sm:$0xff]  ;;  %v21_v25 = vld [vmem:[%s215_s0 + $0x20] sm:$0xff]  ;;  %v22_v32 = vld [vmem:[%s215_s0 + $0x28] sm:$0xff] }
   0x6   :  { %v27_v20 = vld [vmem:[%s216_s1 + $0x18] sm:$0xff]  ;;  %v28_v26 = vld [vmem:[%s216_s1 + $0x20] sm:$0xff]  ;;  %v29_v34 = vld [vmem:[%s216_s1 + $0x28] sm:$0xff] }
   0x7   :  { %v59_v16 = vmax.f32 %v31_v3, %v52_v7  ;;  %v41_v21 = vld [vmem:[%s217_s2 + $0x18] sm:$0xff]  ;;  %v60_v22 = vmax.f32 %v32_v8, %v53_v12  ;;  %v34_v23 = vmax.f32 %v20_v19, %v27_v20  ;;  %v61_v27 = vmax.f32 %v33_v17, %v54_v18  ;;  %v42_v30 = vld [vmem:[%s217_s2 + $0x20] sm:$0xff]  ;;  %v43_v35 = vld [vmem:[%s217_s2 + $0x28] sm:$0xff] }
   0x8   :  { %v48_v24 = vld [vmem:[%s218_s3 + $0x18] sm:$0xff]  ;;  %v35_v29 = vmax.f32 %v21_v25, %v28_v26  ;;  %v49_v31 = vld [vmem:[%s218_s3 + $0x20] sm:$0xff]  ;;  %v50_v36 = vld [vmem:[%s218_s3 + $0x28] sm:$0xff]  ;;  %v36_v38 = vmax.f32 %v22_v32, %v29_v34 }
   0x9   :  { %67 = vst.msk [vmem:[%s219_s4] sm:$0xff] %vm66_vm0, %v59_v16  ;;  %v55_v28 = vmax.f32 %v41_v21, %v48_v24  ;;  %68 = vst.msk [vmem:[%s219_s4 + $0x8] sm:$0xff] %vm66_vm0, %v60_v22  ;;  %v56_v33 = vmax.f32 %v42_v30, %v49_v31  ;;  %v57_v39 = vmax.f32 %v43_v35, %v50_v36  ;;  %v23_v40 = vld [vmem:[%s215_s0 + $0x30] sm:$0x3] }
   0xa   :  { %69 = vst.msk [vmem:[%s219_s4 + $0x10] sm:$0xff] %vm66_vm0, %v61_v27  ;;  %v30_v41 = vld [vmem:[%s216_s1 + $0x30] sm:$0x3] }
   0xb   :  { %v62_v37 = vmax.f32 %v34_v23, %v55_v28  ;;  %v44_v42 = vld [vmem:[%s217_s2 + $0x30] sm:$0x3]  ;;  %v63_v43 = vmax.f32 %v35_v29, %v56_v33  ;;  %v37_v44 = vmax.f32 %v23_v40, %v30_v41  ;;  %v64_v46 = vmax.f32 %v36_v38, %v57_v39 }
   0xc   :  { %v51_v45 = vld [vmem:[%s218_s3 + $0x30] sm:$0x3] }
   0xd   :  { %70 = vst.msk [vmem:[%s219_s4 + $0x18] sm:$0xff] %vm66_vm0, %v62_v37  ;;  %v58_v47 = vmax.f32 %v44_v42, %v51_v45  ;;  %71 = vst.msk [vmem:[%s219_s4 + $0x20] sm:$0xff] %vm66_vm0, %v63_v43 }
   0xe   :  { %72 = vst.msk [vmem:[%s219_s4 + $0x28] sm:$0xff] %vm66_vm0, %v64_v46 }
   0xf   :  { %v65_v48 = vmax.f32 %v37_v44, %v58_v47 }
  0x11   :  { %74 = vst.msk [vmem:[%s219_s4 + $0x30] sm:$0x3] %vm73_vm1, %v65_v48 }

// kernel: cnnleaf_forward.9
= control target key start
LH: loop header
LB: loop body
LE: loop exit
PB: predicated region body
PF: predicated region fallthrough
CT: control target
= control target key end

     0   :  { %vm2497_vm0 = vcmask 523264   ;;  %s6040_s1 = inlined_call_operand.vmem [shape: bf16[1600,512], index: 1, kind: input, shape index: {}]   ;;  %s6041_s0 = inlined_call_operand.vmem [shape: bf16[8,1600], index: 0, kind: input, shape index: {}]   ;;  %s6042_s3 = inlined_call_operand.vmem [shape: bf16[512,128], index: 3, kind: input, shape index: {}]   ;;  %s6043_s2 = inlined_call_operand.vmem [shape: f32[1,512], index: 2, kind: input, shape index: {}]   ;;  %s6044_s4 = inlined_call_operand.vmem [shape: f32[1,128], index: 4, kind: input, shape index: {}]   ;;  %s6045_s5 = inlined_call_operand.vmem [shape: f32[8,128], index: 5, kind: output, shape index: {0}]   ;;  %s6046_s6 = inlined_call_operand.vmem [shape: f32[8,128], index: 6, kind: output, shape index: {1}]  }
   0x1   :  { %v3996_v0 = vld [vmem:[%s6040_s1 + $0x4] ss:$16 sps:$4 sm:$0xff]   ;;  %v3998_v1 = vld [vmem:[%s6040_s1 + $0xc] ss:$16 sps:$4 sm:$0xff]   ;;  %v4000_v2 = vld [vmem:[%s6040_s1] ss:$16 sps:$4 sm:$0xff]  }
   0x2   :  { %2501 = vmatprep.subr.bf16.mxu0 %v3996_v0  ;;  %v4001_v3 = vld [vmem:[%s6040_s1 + $0x8] ss:$16 sps:$4 sm:$0xff]   ;;  %2788 = vmatprep.subr.bf16.mxu1 %v3998_v1  ;;  %v4002_v4 = vld [vmem:[%s6040_s1 + $0x24] ss:$16 sps:$4 sm:$0xff]   ;;  %v4004_v5 = vld [vmem:[%s6040_s1 + $0x2c] ss:$16 sps:$4 sm:$0xff]  }
   0x3   :  { %2502 = vmatpush1.bf16.msra.mxu0 %v4000_v2  ;;  %2789 = vmatpush1.bf16.msra.mxu1 %v4001_v3  ;;  %v4006_v6 = vld [vmem:[%s6040_s1 + $0x20] ss:$16 sps:$4 sm:$0xff]   ;;  %v4007_v7 = vld [vmem:[%s6040_s1 + $0x28] ss:$16 sps:$4 sm:$0xff]   ;;  %v4008_v8 = vld [vmem:[%s6040_s1 + $0x44] ss:$16 sps:$4 sm:$0xff]  }
   0x4   :  { %2503 = vmatprep.subr.bf16.mxu0 %v4002_v4  ;;  %2790 = vmatprep.subr.bf16.mxu1 %v4004_v5  ;;  %v4010_v9 = vld [vmem:[%s6040_s1 + $0x4c] ss:$16 sps:$4 sm:$0xff]   ;;  %v4012_v10 = vld [vmem:[%s6040_s1 + $0x40] ss:$16 sps:$4 sm:$0xff]   ;;  %v4013_v11 = vld [vmem:[%s6040_s1 + $0x48] ss:$16 sps:$4 sm:$0xff]  }
   0x5   :  { %v4014_v12 = vld [vmem:[%s6040_s1 + $0x64] ss:$16 sps:$4 sm:$0xff]   ;;  %v4016_v13 = vld [vmem:[%s6040_s1 + $0x6c] ss:$16 sps:$4 sm:$0xff]   ;;  %v4018_v14 = vld [vmem:[%s6040_s1 + $0x60] ss:$16 sps:$4 sm:$0xff]  }
   0x6   :  { %v4019_v15 = vld [vmem:[%s6040_s1 + $0x68] ss:$16 sps:$4 sm:$0xff]   ;;  %v4020_v16 = vld [vmem:[%s6040_s1 + $0x84] ss:$16 sps:$4 sm:$0xff]   ;;  %v4022_v17 = vld [vmem:[%s6040_s1 + $0x8c] ss:$16 sps:$4 sm:$0xff]  }
   0x7   :  { %2504 = vmatpush1.bf16.msra.mxu0 %v4006_v6  ;;  %2791 = vmatpush1.bf16.msra.mxu1 %v4007_v7  ;;  %v4024_v18 = vld [vmem:[%s6040_s1 + $0x80] ss:$16 sps:$4 sm:$0xff]   ;;  %v4025_v19 = vld [vmem:[%s6040_s1 + $0x88] ss:$16 sps:$4 sm:$0xff]   ;;  %v4026_v20 = vld [vmem:[%s6040_s1 + $0xa4] ss:$16 sps:$4 sm:$0xff]  }
   0x8   :  { %2505 = vmatprep.subr.bf16.mxu0 %v4008_v8  ;;  %2792 = vmatprep.subr.bf16.mxu1 %v4010_v9  ;;  %v4028_v21 = vld [vmem:[%s6040_s1 + $0xac] ss:$16 sps:$4 sm:$0xff]   ;;  %v4030_v22 = vld [vmem:[%s6040_s1 + $0xa0] ss:$16 sps:$4 sm:$0xff]   ;;  %v4031_v23 = vld [vmem:[%s6040_s1 + $0xa8] ss:$16 sps:$4 sm:$0xff]  }
   0x9   :  { %v4032_v24 = vld [vmem:[%s6040_s1 + $0xc4] ss:$16 sps:$4 sm:$0xff]   ;;  %v4034_v25 = vld [vmem:[%s6040_s1 + $0xcc] ss:$16 sps:$4 sm:$0xff]   ;;  %v4036_v26 = vld [vmem:[%s6040_s1 + $0xc0] ss:$16 sps:$4 sm:$0xff]  }
   0xa   :  { %v4037_v27 = vld [vmem:[%s6040_s1 + $0xc8] ss:$16 sps:$4 sm:$0xff]   ;;  %v4038_v28 = vld [vmem:[%s6040_s1 + $0xe4] ss:$16 sps:$4 sm:$0xff]   ;;  %v4040_v29 = vld [vmem:[%s6040_s1 + $0xec] ss:$16 sps:$4 sm:$0xff]  }
   0xb   :  { %2506 = vmatpush1.bf16.msra.mxu0 %v4012_v10  ;;  %2793 = vmatpush1.bf16.msra.mxu1 %v4013_v11  ;;  %v4042_v30 = vld [vmem:[%s6040_s1 + $0xe0] ss:$16 sps:$4 sm:$0xff]   ;;  %v4043_v31 = vld [vmem:[%s6040_s1 + $0xe8] ss:$16 sps:$4 sm:$0xff]   ;;  %v4044_v32 = vld [vmem:[%s6040_s1 + $0x104] ss:$16 sps:$4 sm:$0xff]  }
   0xc   :  { %2507 = vmatprep.subr.bf16.mxu0 %v4014_v12  ;;  %2794 = vmatprep.subr.bf16.mxu1 %v4016_v13  ;;  %v4046_v33 = vld [vmem:[%s6040_s1 + $0x10c] ss:$16 sps:$4 sm:$0xff]   ;;  %v4048_v34 = vld [vmem:[%s6040_s1 + $0x100] ss:$16 sps:$4 sm:$0xff]   ;;  %v4049_v35 = vld [vmem:[%s6040_s1 + $0x108] ss:$16 sps:$4 sm:$0xff]  }
   0xd   :  { %v4050_v36 = vld [vmem:[%s6040_s1 + $0x124] ss:$16 sps:$4 sm:$0xff]   ;;  %v4052_v37 = vld [vmem:[%s6040_s1 + $0x12c] ss:$16 sps:$4 sm:$0xff]   ;;  %v4054_v38 = vld [vmem:[%s6040_s1 + $0x120] ss:$16 sps:$4 sm:$0xff]  }
   0xe   :  { %v4055_v39 = vld [vmem:[%s6040_s1 + $0x128] ss:$16 sps:$4 sm:$0xff]   ;;  %v4056_v40 = vld [vmem:[%s6040_s1 + $0x144] ss:$16 sps:$4 sm:$0xff]   ;;  %v4058_v41 = vld [vmem:[%s6040_s1 + $0x14c] ss:$16 sps:$4 sm:$0xff]  }
   0xf   :  { %2508 = vmatpush1.bf16.msra.mxu0 %v4018_v14  ;;  %2795 = vmatpush1.bf16.msra.mxu1 %v4019_v15  ;;  %v4060_v42 = vld [vmem:[%s6040_s1 + $0x140] ss:$16 sps:$4 sm:$0xff]   ;;  %v4061_v43 = vld [vmem:[%s6040_s1 + $0x148] ss:$16 sps:$4 sm:$0xff]   ;;  %v4062_v44 = vld [vmem:[%s6040_s1 + $0x164] ss:$16 sps:$4 sm:$0xff]  }
  0x10   :  { %2509 = vmatprep.subr.bf16.mxu0 %v4020_v16  ;;  %2796 = vmatprep.subr.bf16.mxu1 %v4022_v17  ;;  %v4064_v45 = vld [vmem:[%s6040_s1 + $0x16c] ss:$16 sps:$4 sm:$0xff]   ;;  %v23_v46 = vld [vmem:[%s6041_s0] sm:$0xff]  ;;  %v4067_v49 = vld [vmem:[%s6040_s1 + $0x168] ss:$16 sps:$4 sm:$0xff]  }
  0x11   :  { %v4066_v47 = vld [vmem:[%s6040_s1 + $0x160] ss:$16 sps:$4 sm:$0xff]   ;;  %v3452_v48 = vcombine.high %v23_v46, %v23_v46  ;;  %v4068_v50 = vld [vmem:[%s6040_s1 + $0x184] ss:$16 sps:$4 sm:$0xff]   ;;  %v4070_v51 = vld [vmem:[%s6040_s1 + $0x18c] ss:$16 sps:$4 sm:$0xff]   ;;  %v3451_v4 = vcombine.low %v23_v46, %v23_v46 }
  0x12   :  { %v4072_v52 = vld [vmem:[%s6040_s1 + $0x180] ss:$16 sps:$4 sm:$0xff]   ;;  %v4073_v53 = vld [vmem:[%s6040_s1 + $0x188] ss:$16 sps:$4 sm:$0xff]   ;;  %v4074_v54 = vld [vmem:[%s6040_s1 + $0x1a4] ss:$16 sps:$4 sm:$0xff]  }
  0x13   :  { %2510 = vmatpush1.bf16.msra.mxu0 %v4024_v18  ;;  %2797 = vmatpush1.bf16.msra.mxu1 %v4025_v19  ;;  %v4076_v55 = vld [vmem:[%s6040_s1 + $0x1ac] ss:$16 sps:$4 sm:$0xff]   ;;  %v4078_v56 = vld [vmem:[%s6040_s1 + $0x1a0] ss:$16 sps:$4 sm:$0xff]   ;;  %v4079_v57 = vld [vmem:[%s6040_s1 + $0x1a8] ss:$16 sps:$4 sm:$0xff]  }
  0x14   :  { %2511 = vmatprep.subr.bf16.mxu0 %v4026_v20  ;;  %2798 = vmatprep.subr.bf16.mxu1 %v4028_v21  ;;  %v4080_v58 = vld [vmem:[%s6040_s1 + $0x1c4] ss:$16 sps:$4 sm:$0xff]   ;;  %v4082_v59 = vld [vmem:[%s6040_s1 + $0x1cc] ss:$16 sps:$4 sm:$0xff]   ;;  %v4084_v60 = vld [vmem:[%s6040_s1 + $0x1c0] ss:$16 sps:$4 sm:$0xff]  }
  0x15   :  { %2533 = vmatprep.mubr.bf16.mxu0 %v3452_v48  ;;  %2820 = vmatprep.mubr.bf16.mxu1 %v3452_v48  ;;  %v4085_v61 = vld [vmem:[%s6040_s1 + $0x1c8] ss:$16 sps:$4 sm:$0xff]   ;;  %v4086_v62 = vld [vmem:[%s6040_s1 + $0x1e4] ss:$16 sps:$4 sm:$0xff]   ;;  %v4088_v63 = vld [vmem:[%s6040_s1 + $0x1ec] ss:$16 sps:$4 sm:$0xff]  }
  0x16   :  { %v4090_v0 = vld [vmem:[%s6040_s1 + $0x1e0] ss:$16 sps:$4 sm:$0xff]   ;;  %v4091_v1 = vld [vmem:[%s6040_s1 + $0x1e8] ss:$16 sps:$4 sm:$0xff]   ;;  %v4096_v2 = vld [vmem:[%s6040_s1 + $0x204] ss:$16 sps:$4 sm:$0xff]  }
  0x17   :  { %2512 = vmatpush1.bf16.msra.mxu0 %v4030_v22  ;;  %2799 = vmatpush1.bf16.msra.mxu1 %v4031_v23  ;;  %v4099_v3 = vld [vmem:[%s6040_s1 + $0x20c] ss:$16 sps:$4 sm:$0xff]   ;;  %v4094_v5 = vld [vmem:[%s6040_s1 + $0x200] ss:$16 sps:$4 sm:$0xff]   ;;  %v4097_v6 = vld [vmem:[%s6040_s1 + $0x208] ss:$16 sps:$4 sm:$0xff]  }
  0x18   :  { %2513 = vmatprep.subr.bf16.mxu0 %v4032_v24  ;;  %2800 = vmatprep.subr.bf16.mxu1 %v4034_v25  ;;  %v4102_v7 = vld [vmem:[%s6040_s1 + $0x224] ss:$16 sps:$4 sm:$0xff]   ;;  %v4105_v8 = vld [vmem:[%s6040_s1 + $0x22c] ss:$16 sps:$4 sm:$0xff]   ;;  %v4100_v9 = vld [vmem:[%s6040_s1 + $0x220] ss:$16 sps:$4 sm:$0xff]  }
  0x19   :  { %v4103_v10 = vld [vmem:[%s6040_s1 + $0x228] ss:$16 sps:$4 sm:$0xff]   ;;  %v4108_v11 = vld [vmem:[%s6040_s1 + $0x244] ss:$16 sps:$4 sm:$0xff]   ;;  %v4111_v12 = vld [vmem:[%s6040_s1 + $0x24c] ss:$16 sps:$4 sm:$0xff]  }
  0x1a   :  { %v4106_v13 = vld [vmem:[%s6040_s1 + $0x240] ss:$16 sps:$4 sm:$0xff]   ;;  %v4109_v14 = vld [vmem:[%s6040_s1 + $0x248] ss:$16 sps:$4 sm:$0xff]   ;;  %v4114_v15 = vld [vmem:[%s6040_s1 + $0x264] ss:$16 sps:$4 sm:$0xff]  }
  0x1b   :  { %2514 = vmatpush1.bf16.msra.mxu0 %v4036_v26  ;;  %2801 = vmatpush1.bf16.msra.mxu1 %v4037_v27  ;;  %v4117_v16 = vld [vmem:[%s6040_s1 + $0x26c] ss:$16 sps:$4 sm:$0xff]   ;;  %v4112_v17 = vld [vmem:[%s6040_s1 + $0x260] ss:$16 sps:$4 sm:$0xff]   ;;  %v4115_v18 = vld [vmem:[%s6040_s1 + $0x268] ss:$16 sps:$4 sm:$0xff]  }
  0x1c   :  { %2515 = vmatprep.subr.bf16.mxu0 %v4038_v28  ;;  %2802 = vmatprep.subr.bf16.mxu1 %v4040_v29  ;;  %v4120_v19 = vld [vmem:[%s6040_s1 + $0x284] ss:$16 sps:$4 sm:$0xff]   ;;  %v4123_v20 = vld [vmem:[%s6040_s1 + $0x28c] ss:$16 sps:$4 sm:$0xff]   ;;  %v4118_v21 = vld [vmem:[%s6040_s1 + $0x280] ss:$16 sps:$4 sm:$0xff]  }
  0x1d   :  { %v4121_v22 = vld [vmem:[%s6040_s1 + $0x288] ss:$16 sps:$4 sm:$0xff]   ;;  %v4126_v23 = vld [vmem:[%s6040_s1 + $0x2a4] ss:$16 sps:$4 sm:$0xff]   ;;  %v4129_v24 = vld [vmem:[%s6040_s1 + $0x2ac] ss:$16 sps:$4 sm:$0xff]  }
  0x1e   :  { %v4124_v25 = vld [vmem:[%s6040_s1 + $0x2a0] ss:$16 sps:$4 sm:$0xff]   ;;  %v4127_v26 = vld [vmem:[%s6040_s1 + $0x2a8] ss:$16 sps:$4 sm:$0xff]   ;;  %v4132_v27 = vld [vmem:[%s6040_s1 + $0x2c4] ss:$16 sps:$4 sm:$0xff]  }
  0x1f   :  { %2516 = vmatpush1.bf16.msra.mxu0 %v4042_v30  ;;  %2803 = vmatpush1.bf16.msra.mxu1 %v4043_v31  ;;  %v4135_v28 = vld [vmem:[%s6040_s1 + $0x2cc] ss:$16 sps:$4 sm:$0xff]   ;;  %v4130_v31 = vld [vmem:[%s6040_s1 + $0x2c0] ss:$16 sps:$4 sm:$0xff]   ;;  %v4157_v48 = vld [vmem:[%s6040_s1 + $0x348] ss:$16 sps:$4 sm:$0xff]  }
  0x20   :  { %2517 = vmatprep.subr.bf16.mxu0 %v4044_v32  ;;  %2804 = vmatprep.subr.bf16.mxu1 %v4046_v33  ;;  %v4957_v29 = vld [vmem:[%s6041_s0 + $0x8] sm:$0xff]  ;;  %v4138_v33 = vld [vmem:[%s6040_s1 + $0x2e4] ss:$16 sps:$4 sm:$0xff]  }
  0x21   :  { %v3454_v30 = vcombine.high %v4957_v29, %v4957_v29  ;;  %v4133_v32 = vld [vmem:[%s6040_s1 + $0x2c8] ss:$16 sps:$4 sm:$0xff]   ;;  %v4159_v46 = vld [vmem:[%s6040_s1 + $0x34c] ss:$16 sps:$4 sm:$0xff]  }
  0x23   :  { %2518 = vmatpush1.bf16.msra.mxu0 %v4048_v34  ;;  %2805 = vmatpush1.bf16.msra.mxu1 %v4049_v35  ;;  %v4141_v34 = vld [vmem:[%s6040_s1 + $0x2ec] ss:$16 sps:$4 sm:$0xff]   ;;  %v4136_v35 = vld [vmem:[%s6040_s1 + $0x2e0] ss:$16 sps:$4 sm:$0xff]  }
  0x24   :  { %2519 = vmatprep.subr.bf16.mxu0 %v4050_v36  ;;  %2806 = vmatprep.subr.bf16.mxu1 %v4052_v37  ;;  %v4139_v36 = vld [vmem:[%s6040_s1 + $0x2e8] ss:$16 sps:$4 sm:$0xff]   ;;  %v4144_v37 = vld [vmem:[%s6040_s1 + $0x304] ss:$16 sps:$4 sm:$0xff]  }
  0x27   :  { %2520 = vmatpush1.bf16.msra.mxu0 %v4054_v38  ;;  %2807 = vmatpush1.bf16.msra.mxu1 %v4055_v39  ;;  %v4147_v38 = vld [vmem:[%s6040_s1 + $0x30c] ss:$16 sps:$4 sm:$0xff]   ;;  %v4142_v39 = vld [vmem:[%s6040_s1 + $0x300] ss:$16 sps:$4 sm:$0xff]  }
  0x28   :  { %2521 = vmatprep.subr.bf16.mxu0 %v4056_v40  ;;  %2808 = vmatprep.subr.bf16.mxu1 %v4058_v41  ;;  %v4145_v40 = vld [vmem:[%s6040_s1 + $0x308] ss:$16 sps:$4 sm:$0xff]   ;;  %v4150_v41 = vld [vmem:[%s6040_s1 + $0x324] ss:$16 sps:$4 sm:$0xff]  }
  0x2b   :  { %2522 = vmatpush1.bf16.msra.mxu0 %v4060_v42  ;;  %2809 = vmatpush1.bf16.msra.mxu1 %v4061_v43  ;;  %v4153_v42 = vld [vmem:[%s6040_s1 + $0x32c] ss:$16 sps:$4 sm:$0xff]   ;;  %v4148_v43 = vld [vmem:[%s6040_s1 + $0x320] ss:$16 sps:$4 sm:$0xff]  }
  0x2c   :  { %2523 = vmatprep.subr.bf16.mxu0 %v4062_v44  ;;  %2810 = vmatprep.subr.bf16.mxu1 %v4064_v45  ;;  %v4151_v44 = vld [vmem:[%s6040_s1 + $0x328] ss:$16 sps:$4 sm:$0xff]   ;;  %v4156_v45 = vld [vmem:[%s6040_s1 + $0x344] ss:$16 sps:$4 sm:$0xff]  }
  0x2f   :  { %2524 = vmatpush1.bf16.msra.mxu0 %v4066_v47  ;;  %2811 = vmatpush1.bf16.msra.mxu1 %v4067_v49  ;;  %v4154_v47 = vld [vmem:[%s6040_s1 + $0x340] ss:$16 sps:$4 sm:$0xff]   ;;  %v4162_v49 = vld [vmem:[%s6040_s1 + $0x364] ss:$16 sps:$4 sm:$0xff]  }
  0x30   :  { %2525 = vmatprep.subr.bf16.mxu0 %v4068_v50  ;;  %2812 = vmatprep.subr.bf16.mxu1 %v4070_v51  ;;  %v4165_v50 = vld [vmem:[%s6040_s1 + $0x36c] ss:$16 sps:$4 sm:$0xff]   ;;  %v4160_v51 = vld [vmem:[%s6040_s1 + $0x360] ss:$16 sps:$4 sm:$0xff]  }
  0x33   :  { %2526 = vmatpush1.bf16.msra.mxu0 %v4072_v52  ;;  %2813 = vmatpush1.bf16.msra.mxu1 %v4073_v53  ;;  %v4163_v52 = vld [vmem:[%s6040_s1 + $0x368] ss:$16 sps:$4 sm:$0xff]   ;;  %v4168_v53 = vld [vmem:[%s6040_s1 + $0x384] ss:$16 sps:$4 sm:$0xff]  }
  0x34   :  { %2527 = vmatprep.subr.bf16.mxu0 %v4074_v54  ;;  %2814 = vmatprep.subr.bf16.mxu1 %v4076_v55  ;;  %v4171_v54 = vld [vmem:[%s6040_s1 + $0x38c] ss:$16 sps:$4 sm:$0xff]   ;;  %v4166_v55 = vld [vmem:[%s6040_s1 + $0x380] ss:$16 sps:$4 sm:$0xff]  }
  0x37   :  { %2528 = vmatpush1.bf16.msra.mxu0 %v4078_v56  ;;  %2815 = vmatpush1.bf16.msra.mxu1 %v4079_v57  ;;  %v4169_v56 = vld [vmem:[%s6040_s1 + $0x388] ss:$16 sps:$4 sm:$0xff]   ;;  %v4174_v57 = vld [vmem:[%s6040_s1 + $0x3a4] ss:$16 sps:$4 sm:$0xff]  }
  0x38   :  { %2529 = vmatprep.subr.bf16.mxu0 %v4080_v58  ;;  %2816 = vmatprep.subr.bf16.mxu1 %v4082_v59  ;;  %v4177_v58 = vld [vmem:[%s6040_s1 + $0x3ac] ss:$16 sps:$4 sm:$0xff]   ;;  %v4172_v59 = vld [vmem:[%s6040_s1 + $0x3a0] ss:$16 sps:$4 sm:$0xff]  }
  0x3b   :  { %2530 = vmatpush1.bf16.msra.mxu0 %v4084_v60  ;;  %2817 = vmatpush1.bf16.msra.mxu1 %v4085_v61  ;;  %v4175_v60 = vld [vmem:[%s6040_s1 + $0x3a8] ss:$16 sps:$4 sm:$0xff]   ;;  %v4180_v61 = vld [vmem:[%s6040_s1 + $0x3c4] ss:$16 sps:$4 sm:$0xff]  }
  0x3c   :  { %2531 = vmatprep.subr.bf16.mxu0 %v4086_v62  ;;  %2818 = vmatprep.subr.bf16.mxu1 %v4088_v63  ;;  %v4183_v62 = vld [vmem:[%s6040_s1 + $0x3cc] ss:$16 sps:$4 sm:$0xff]   ;;  %v4178_v63 = vld [vmem:[%s6040_s1 + $0x3c0] ss:$16 sps:$4 sm:$0xff]  }
  0x3f   :  { %2532 = vmatpush1.bf16.msra.mxu0 %v4090_v0  ;;  %2819 = vmatpush1.bf16.msra.mxu1 %v4091_v1  ;;  %v4181_v0 = vld [vmem:[%s6040_s1 + $0x3c8] ss:$16 sps:$4 sm:$0xff]   ;;  %v4186_v1 = vld [vmem:[%s6040_s1 + $0x3e4] ss:$16 sps:$4 sm:$0xff]  }
  0x40   :  { %2542 = vmatprep.subr.bf16.mxu0 %v4096_v2  ;;  %2829 = vmatprep.subr.bf16.mxu1 %v4099_v3  ;;  %v4189_v2 = vld [vmem:[%s6040_s1 + $0x3ec] ss:$16 sps:$4 sm:$0xff]   ;;  %v4184_v3 = vld [vmem:[%s6040_s1 + $0x3e0] ss:$16 sps:$4 sm:$0xff]  }
  0x42   :  { %2534 = vmatmul.mubr.bf16.vlgmr.msra.gmra.mrb[0].mxu0 %v3451_v4  ;;  %2821 = vmatmul.mubr.bf16.vlgmr.msra.gmra.mrb[0].mxu1 %v3451_v4  ;;  %v4187_v4 = vld [vmem:[%s6040_s1 + $0x3e8] ss:$16 sps:$4 sm:$0xff]  }
  0x43   :  { %2543 = vmatpush1.bf16.msra.mxu0 %v4094_v5  ;;  %2830 = vmatpush1.bf16.msra.mxu1 %v4097_v6  ;;  %v4194_v5 = vld [vmem:[%s6040_s1 + $0x404] ss:$16 sps:$4 sm:$0xff]   ;;  %v4197_v6 = vld [vmem:[%s6040_s1 + $0x40c] ss:$16 sps:$4 sm:$0xff]  }
  0x44   :  { %2544 = vmatprep.subr.bf16.mxu0 %v4102_v7  ;;  %2831 = vmatprep.subr.bf16.mxu1 %v4105_v8  ;;  %v3453_v7 = vcombine.low %v4957_v29, %v4957_v29  ;;  %v4192_v8 = vld [vmem:[%s6040_s1 + $0x400] ss:$16 sps:$4 sm:$0xff]   ;;  %v4227_v29 = vld [vmem:[%s6040_s1 + $0x4ac] ss:$16 sps:$4 sm:$0xff]  }
  0x45   :  { %2574 = vmatprep.mubr.bf16.mxu0 %v3454_v30  ;;  %2861 = vmatprep.mubr.bf16.mxu1 %v3454_v30  ;;  %v4222_v30 = vld [vmem:[%s6040_s1 + $0x4a0] ss:$16 sps:$4 sm:$0xff]  }
  0x47   :  { %2545 = vmatpush1.bf16.msra.mxu0 %v4100_v9  ;;  %2832 = vmatpush1.bf16.msra.mxu1 %v4103_v10  ;;  %v4195_v9 = vld [vmem:[%s6040_s1 + $0x408] ss:$16 sps:$4 sm:$0xff]   ;;  %v4200_v10 = vld [vmem:[%s6040_s1 + $0x424] ss:$16 sps:$4 sm:$0xff]  }
  0x48   :  { %2546 = vmatprep.subr.bf16.mxu0 %v4108_v11  ;;  %2833 = vmatprep.subr.bf16.mxu1 %v4111_v12  ;;  %v5095_v11 = vld [vmem:[%s6041_s0 + $0x10] sm:$0xff]  ;;  %v4203_v12 = vld [vmem:[%s6040_s1 + $0x42c] ss:$16 sps:$4 sm:$0xff]  }
  0x4b   :  { %2547 = vmatpush1.bf16.msra.mxu0 %v4106_v13  ;;  %2834 = vmatpush1.bf16.msra.mxu1 %v4109_v14  ;;  %v3456_v13 = vcombine.high %v5095_v11, %v5095_v11  ;;  %v4198_v14 = vld [vmem:[%s6040_s1 + $0x420] ss:$16 sps:$4 sm:$0xff]  }
  0x4c   :  { %2548 = vmatprep.subr.bf16.mxu0 %v4114_v15  ;;  %2835 = vmatprep.subr.bf16.mxu1 %v4117_v16  ;;  %v4201_v15 = vld [vmem:[%s6040_s1 + $0x428] ss:$16 sps:$4 sm:$0xff]   ;;  %v4206_v16 = vld [vmem:[%s6040_s1 + $0x444] ss:$16 sps:$4 sm:$0xff]  }
  0x4f   :  { %2549 = vmatpush1.bf16.msra.mxu0 %v4112_v17  ;;  %2836 = vmatpush1.bf16.msra.mxu1 %v4115_v18  ;;  %v4209_v17 = vld [vmem:[%s6040_s1 + $0x44c] ss:$16 sps:$4 sm:$0xff]   ;;  %v4204_v18 = vld [vmem:[%s6040_s1 + $0x440] ss:$16 sps:$4 sm:$0xff]  }
  0x50   :  { %2550 = vmatprep.subr.bf16.mxu0 %v4120_v19  ;;  %2837 = vmatprep.subr.bf16.mxu1 %v4123_v20  ;;  %v4207_v19 = vld [vmem:[%s6040_s1 + $0x448] ss:$16 sps:$4 sm:$0xff]   ;;  %v4212_v20 = vld [vmem:[%s6040_s1 + $0x464] ss:$16 sps:$4 sm:$0xff]  }
  0x53   :  { %2551 = vmatpush1.bf16.msra.mxu0 %v4118_v21  ;;  %2838 = vmatpush1.bf16.msra.mxu1 %v4121_v22  ;;  %v4215_v21 = vld [vmem:[%s6040_s1 + $0x46c] ss:$16 sps:$4 sm:$0xff]   ;;  %v4210_v22 = vld [vmem:[%s6040_s1 + $0x460] ss:$16 sps:$4 sm:$0xff]  }
  0x54   :  { %2552 = vmatprep.subr.bf16.mxu0 %v4126_v23  ;;  %2839 = vmatprep.subr.bf16.mxu1 %v4129_v24  ;;  %v4213_v23 = vld [vmem:[%s6040_s1 + $0x468] ss:$16 sps:$4 sm:$0xff]   ;;  %v4218_v24 = vld [vmem:[%s6040_s1 + $0x484] ss:$16 sps:$4 sm:$0xff]  }
  0x57   :  { %2553 = vmatpush1.bf16.msra.mxu0 %v4124_v25  ;;  %2840 = vmatpush1.bf16.msra.mxu1 %v4127_v26  ;;  %v4221_v25 = vld [vmem:[%s6040_s1 + $0x48c] ss:$16 sps:$4 sm:$0xff]   ;;  %v4216_v26 = vld [vmem:[%s6040_s1 + $0x480] ss:$16 sps:$4 sm:$0xff]  }
  0x58   :  { %2554 = vmatprep.subr.bf16.mxu0 %v4132_v27  ;;  %2841 = vmatprep.subr.bf16.mxu1 %v4135_v28  ;;  %v4219_v27 = vld [vmem:[%s6040_s1 + $0x488] ss:$16 sps:$4 sm:$0xff]   ;;  %v4224_v28 = vld [vmem:[%s6040_s1 + $0x4a4] ss:$16 sps:$4 sm:$0xff]  }
  0x5b   :  { %2555 = vmatpush1.bf16.msra.mxu0 %v4130_v31  ;;  %2842 = vmatpush1.bf16.msra.mxu1 %v4133_v32  ;;  %v4225_v31 = vld [vmem:[%s6040_s1 + $0x4a8] ss:$16 sps:$4 sm:$0xff]   ;;  %v4230_v32 = vld [vmem:[%s6040_s1 + $0x4c4] ss:$16 sps:$4 sm:$0xff]  }
  0x5c   :  { %2556 = vmatprep.subr.bf16.mxu0 %v4138_v33  ;;  %2843 = vmatprep.subr.bf16.mxu1 %v4141_v34  ;;  %v4233_v33 = vld [vmem:[%s6040_s1 + $0x4cc] ss:$16 sps:$4 sm:$0xff]   ;;  %v4228_v34 = vld [vmem:[%s6040_s1 + $0x4c0] ss:$16 sps:$4 sm:$0xff]  }
  0x5f   :  { %2557 = vmatpush1.bf16.msra.mxu0 %v4136_v35  ;;  %2844 = vmatpush1.bf16.msra.mxu1 %v4139_v36  ;;  %v4231_v35 = vld [vmem:[%s6040_s1 + $0x4c8] ss:$16 sps:$4 sm:$0xff]   ;;  %v4236_v36 = vld [vmem:[%s6040_s1 + $0x4e4] ss:$16 sps:$4 sm:$0xff]  }
  0x60   :  { %2558 = vmatprep.subr.bf16.mxu0 %v4144_v37  ;;  %2845 = vmatprep.subr.bf16.mxu1 %v4147_v38  ;;  %v4239_v37 = vld [vmem:[%s6040_s1 + $0x4ec] ss:$16 sps:$4 sm:$0xff]   ;;  %v4234_v38 = vld [vmem:[%s6040_s1 + $0x4e0] ss:$16 sps:$4 sm:$0xff]  }
  0x63   :  { %2559 = vmatpush1.bf16.msra.mxu0 %v4142_v39  ;;  %2846 = vmatpush1.bf16.msra.mxu1 %v4145_v40  ;;  %v4237_v39 = vld [vmem:[%s6040_s1 + $0x4e8] ss:$16 sps:$4 sm:$0xff]   ;;  %v4242_v40 = vld [vmem:[%s6040_s1 + $0x504] ss:$16 sps:$4 sm:$0xff]  }
  0x64   :  { %2560 = vmatprep.subr.bf16.mxu0 %v4150_v41  ;;  %2847 = vmatprep.subr.bf16.mxu1 %v4153_v42  ;;  %v4245_v41 = vld [vmem:[%s6040_s1 + $0x50c] ss:$16 sps:$4 sm:$0xff]   ;;  %v4240_v42 = vld [vmem:[%s6040_s1 + $0x500] ss:$16 sps:$4 sm:$0xff]  }
  0x67   :  { %2561 = vmatpush1.bf16.msra.mxu0 %v4148_v43  ;;  %2848 = vmatpush1.bf16.msra.mxu1 %v4151_v44  ;;  %v4243_v43 = vld [vmem:[%s6040_s1 + $0x508] ss:$16 sps:$4 sm:$0xff]   ;;  %v4248_v44 = vld [vmem:[%s6040_s1 + $0x524] ss:$16 sps:$4 sm:$0xff]  }
  0x68   :  { %2562 = vmatprep.subr.bf16.mxu0 %v4156_v45  ;;  %2849 = vmatprep.subr.bf16.mxu1 %v4159_v46  ;;  %v4251_v45 = vld [vmem:[%s6040_s1 + $0x52c] ss:$16 sps:$4 sm:$0xff]   ;;  %v4246_v46 = vld [vmem:[%s6040_s1 + $0x520] ss:$16 sps:$4 sm:$0xff]  }
  0x6b   :  { %2563 = vmatpush1.bf16.msra.mxu0 %v4154_v47  ;;  %2850 = vmatpush1.bf16.msra.mxu1 %v4157_v48  ;;  %v4249_v47 = vld [vmem:[%s6040_s1 + $0x528] ss:$16 sps:$4 sm:$0xff]   ;;  %v4254_v48 = vld [vmem:[%s6040_s1 + $0x544] ss:$16 sps:$4 sm:$0xff]  }
  0x6c   :  { %2564 = vmatprep.subr.bf16.mxu0 %v4162_v49  ;;  %2851 = vmatprep.subr.bf16.mxu1 %v4165_v50  ;;  %v4257_v49 = vld [vmem:[%s6040_s1 + $0x54c] ss:$16 sps:$4 sm:$0xff]   ;;  %v4252_v50 = vld [vmem:[%s6040_s1 + $0x540] ss:$16 sps:$4 sm:$0xff]  }
  0x6f   :  { %2565 = vmatpush1.bf16.msra.mxu0 %v4160_v51  ;;  %2852 = vmatpush1.bf16.msra.mxu1 %v4163_v52  ;;  %v4255_v51 = vld [vmem:[%s6040_s1 + $0x548] ss:$16 sps:$4 sm:$0xff]   ;;  %v4260_v52 = vld [vmem:[%s6040_s1 + $0x564] ss:$16 sps:$4 sm:$0xff]  }
  0x70   :  { %2566 = vmatprep.subr.bf16.mxu0 %v4168_v53  ;;  %2853 = vmatprep.subr.bf16.mxu1 %v4171_v54  ;;  %v4263_v53 = vld [vmem:[%s6040_s1 + $0x56c] ss:$16 sps:$4 sm:$0xff]   ;;  %v4258_v54 = vld [vmem:[%s6040_s1 + $0x560] ss:$16 sps:$4 sm:$0xff]  }
  0x73   :  { %2567 = vmatpush1.bf16.msra.mxu0 %v4166_v55  ;;  %2854 = vmatpush1.bf16.msra.mxu1 %v4169_v56  ;;  %v4261_v55 = vld [vmem:[%s6040_s1 + $0x568] ss:$16 sps:$4 sm:$0xff]   ;;  %v4266_v56 = vld [vmem:[%s6040_s1 + $0x584] ss:$16 sps:$4 sm:$0xff]  }
  0x74   :  { %2568 = vmatprep.subr.bf16.mxu0 %v4174_v57  ;;  %2855 = vmatprep.subr.bf16.mxu1 %v4177_v58  ;;  %v4269_v57 = vld [vmem:[%s6040_s1 + $0x58c] ss:$16 sps:$4 sm:$0xff]   ;;  %v4264_v58 = vld [vmem:[%s6040_s1 + $0x580] ss:$16 sps:$4 sm:$0xff]  }
  0x77   :  { %2569 = vmatpush1.bf16.msra.mxu0 %v4172_v59  ;;  %2856 = vmatpush1.bf16.msra.mxu1 %v4175_v60  ;;  %v4267_v59 = vld [vmem:[%s6040_s1 + $0x588] ss:$16 sps:$4 sm:$0xff]   ;;  %v4272_v60 = vld [vmem:[%s6040_s1 + $0x5a4] ss:$16 sps:$4 sm:$0xff]  }
  0x78   :  { %2570 = vmatprep.subr.bf16.mxu0 %v4180_v61  ;;  %2857 = vmatprep.subr.bf16.mxu1 %v4183_v62  ;;  %v4275_v61 = vld [vmem:[%s6040_s1 + $0x5ac] ss:$16 sps:$4 sm:$0xff]   ;;  %v4270_v62 = vld [vmem:[%s6040_s1 + $0x5a0] ss:$16 sps:$4 sm:$0xff]  }
  0x7b   :  { %2571 = vmatpush1.bf16.msra.mxu0 %v4178_v63  ;;  %2858 = vmatpush1.bf16.msra.mxu1 %v4181_v0  ;;  %v4273_v63 = vld [vmem:[%s6040_s1 + $0x5a8] ss:$16 sps:$4 sm:$0xff]   ;;  %v4278_v0 = vld [vmem:[%s6040_s1 + $0x5c4] ss:$16 sps:$4 sm:$0xff]  }
  0x7c   :  { %2572 = vmatprep.subr.bf16.mxu0 %v4186_v1  ;;  %2859 = vmatprep.subr.bf16.mxu1 %v4189_v2  ;;  %v4281_v1 = vld [vmem:[%s6040_s1 + $0x5cc] ss:$16 sps:$4 sm:$0xff]   ;;  %v4276_v2 = vld [vmem:[%s6040_s1 + $0x5c0] ss:$16 sps:$4 sm:$0xff]  }
  0x7f   :  { %2573 = vmatpush1.bf16.msra.mxu0 %v4184_v3  ;;  %2860 = vmatpush1.bf16.msra.mxu1 %v4187_v4  ;;  %v4279_v3 = vld [vmem:[%s6040_s1 + $0x5c8] ss:$16 sps:$4 sm:$0xff]   ;;  %v4284_v4 = vld [vmem:[%s6040_s1 + $0x5e4] ss:$16 sps:$4 sm:$0xff]  }
  0x80   :  { %2583 = vmatprep.subr.bf16.mxu0 %v4194_v5  ;;  %2870 = vmatprep.subr.bf16.mxu1 %v4197_v6  ;;  %v4287_v5 = vld [vmem:[%s6040_s1 + $0x5ec] ss:$16 sps:$4 sm:$0xff]   ;;  %v4282_v6 = vld [vmem:[%s6040_s1 + $0x5e0] ss:$16 sps:$4 sm:$0xff]  }
  0x82   :  { %2575 = vmatmul.mubr.bf16.vlgmr.msra.gmra.mrb[0].mxu0 %v3453_v7  ;;  %2862 = vmatmul.mubr.bf16.vlgmr.msra.gmra.mrb[0].mxu1 %v3453_v7  ;;  %v4285_v7 = vld [vmem:[%s6040_s1 + $0x5e8] ss:$16 sps:$4 sm:$0xff]  }
  0x83   :  { %2584 = vmatpush1.bf16.msra.mxu0 %v4192_v8  ;;  %2871 = vmatpush1.bf16.msra.mxu1 %v4195_v9  ;;  %v4292_v8 = vld [vmem:[%s6040_s1 + $0x604] ss:$16 sps:$4 sm:$0xff]   ;;  %v4295_v9 = vld [vmem:[%s6040_s1 + $0x60c] ss:$16 sps:$4 sm:$0xff]  }
  0x84   :  { %2585 = vmatprep.subr.bf16.mxu0 %v4200_v10  ;;  %2872 = vmatprep.subr.bf16.mxu1 %v4203_v12  ;;  %v4290_v10 = vld [vmem:[%s6040_s1 + $0x600] ss:$16 sps:$4 sm:$0xff]   ;;  %v3455_v12 = vcombine.low %v5095_v11, %v5095_v11  ;;  %v4301_v11 = vld [vmem:[%s6040_s1 + $0x62c] ss:$16 sps:$4 sm:$0xff]  }
  0x85   :  { %2615 = vmatprep.mubr.bf16.mxu0 %v3456_v13  ;;  %2902 = vmatprep.mubr.bf16.mxu1 %v3456_v13  ;;  %v4293_v13 = vld [vmem:[%s6040_s1 + $0x608] ss:$16 sps:$4 sm:$0xff]  }
  0x87   :  { %2586 = vmatpush1.bf16.msra.mxu0 %v4198_v14  ;;  %2873 = vmatpush1.bf16.msra.mxu1 %v4201_v15  ;;  %v5293_v14 = vld [vmem:[%s6041_s0 + $0x18] sm:$0xff]  ;;  %v4298_v15 = vld [vmem:[%s6040_s1 + $0x624] ss:$16 sps:$4 sm:$0xff]  }
  0x88   :  { %2587 = vmatprep.subr.bf16.mxu0 %v4206_v16  ;;  %2874 = vmatprep.subr.bf16.mxu1 %v4209_v17  ;;  %v3458_v16 = vcombine.high %v5293_v14, %v5293_v14  ;;  %v4296_v17 = vld [vmem:[%s6040_s1 + $0x620] ss:$16 sps:$4 sm:$0xff]  }
  0x8b   :  { %2588 = vmatpush1.bf16.msra.mxu0 %v4204_v18  ;;  %2875 = vmatpush1.bf16.msra.mxu1 %v4207_v19  ;;  %v4299_v18 = vld [vmem:[%s6040_s1 + $0x628] ss:$16 sps:$4 sm:$0xff]   ;;  %v4304_v19 = vld [vmem:[%s6040_s1 + $0x644] ss:$16 sps:$4 sm:$0xff]  }
  0x8c   :  { %2589 = vmatprep.subr.bf16.mxu0 %v4212_v20  ;;  %2876 = vmatprep.subr.bf16.mxu1 %v4215_v21  ;;  %v4307_v20 = vld [vmem:[%s6040_s1 + $0x64c] ss:$16 sps:$4 sm:$0xff]   ;;  %v4302_v21 = vld [vmem:[%s6040_s1 + $0x640] ss:$16 sps:$4 sm:$0xff]  }
  0x8f   :  { %2590 = vmatpush1.bf16.msra.mxu0 %v4210_v22  ;;  %2877 = vmatpush1.bf16.msra.mxu1 %v4213_v23  ;;  %v4305_v22 = vld [vmem:[%s6040_s1 + $0x648] ss:$16 sps:$4 sm:$0xff]   ;;  %v4310_v23 = vld [vmem:[%s6040_s1 + $0x664] ss:$16 sps:$4 sm:$0xff]  }
  0x90   :  { %2591 = vmatprep.subr.bf16.mxu0 %v4218_v24  ;;  %2878 = vmatprep.subr.bf16.mxu1 %v4221_v25  ;;  %v4313_v24 = vld [vmem:[%s6040_s1 + $0x66c] ss:$16 sps:$4 sm:$0xff]   ;;  %v4308_v25 = vld [vmem:[%s6040_s1 + $0x660] ss:$16 sps:$4 sm:$0xff]  }
  0x93   :  { %2592 = vmatpush1.bf16.msra.mxu0 %v4216_v26  ;;  %2879 = vmatpush1.bf16.msra.mxu1 %v4219_v27  ;;  %v4311_v26 = vld [vmem:[%s6040_s1 + $0x668] ss:$16 sps:$4 sm:$0xff]   ;;  %v4316_v27 = vld [vmem:[%s6040_s1 + $0x684] ss:$16 sps:$4 sm:$0xff]  }
  0x94   :  { %2593 = vmatprep.subr.bf16.mxu0 %v4224_v28  ;;  %2880 = vmatprep.subr.bf16.mxu1 %v4227_v29  ;;  %v4319_v28 = vld [vmem:[%s6040_s1 + $0x68c] ss:$16 sps:$4 sm:$0xff]   ;;  %v4314_v29 = vld [vmem:[%s6040_s1 + $0x680] ss:$16 sps:$4 sm:$0xff]  }
  0x97   :  { %2594 = vmatpush1.bf16.msra.mxu0 %v4222_v30  ;;  %2881 = vmatpush1.bf16.msra.mxu1 %v4225_v31  ;;  %v4317_v30 = vld [vmem:[%s6040_s1 + $0x688] ss:$16 sps:$4 sm:$0xff]   ;;  %v4322_v31 = vld [vmem:[%s6040_s1 + $0x6a4] ss:$16 sps:$4 sm:$0xff]  }
  0x98   :  { %2595 = vmatprep.subr.bf16.mxu0 %v4230_v32  ;;  %2882 = vmatprep.subr.bf16.mxu1 %v4233_v33  ;;  %v4325_v32 = vld [vmem:[%s6040_s1 + $0x6ac] ss:$16 sps:$4 sm:$0xff]   ;;  %v4320_v33 = vld [vmem:[%s6040_s1 + $0x6a0] ss:$16 sps:$4 sm:$0xff]  }
  0x9b   :  { %2596 = vmatpush1.bf16.msra.mxu0 %v4228_v34  ;;  %2883 = vmatpush1.bf16.msra.mxu1 %v4231_v35  ;;  %v4323_v34 = vld [vmem:[%s6040_s1 + $0x6a8] ss:$16 sps:$4 sm:$0xff]   ;;  %v4328_v35 = vld [vmem:[%s6040_s1 + $0x6c4] ss:$16 sps:$4 sm:$0xff]  }
  0x9c   :  { %2597 = vmatprep.subr.bf16.mxu0 %v4236_v36  ;;  %2884 = vmatprep.subr.bf16.mxu1 %v4239_v37  ;;  %v4331_v36 = vld [vmem:[%s6040_s1 + $0x6cc] ss:$16 sps:$4 sm:$0xff]   ;;  %v4326_v37 = vld [vmem:[%s6040_s1 + $0x6c0] ss:$16 sps:$4 sm:$0xff]  }
  0x9f   :  { %2598 = vmatpush1.bf16.msra.mxu0 %v4234_v38  ;;  %2885 = vmatpush1.bf16.msra.mxu1 %v4237_v39  ;;  %v4329_v38 = vld [vmem:[%s6040_s1 + $0x6c8] ss:$16 sps:$4 sm:$0xff]   ;;  %v4334_v39 = vld [vmem:[%s6040_s1 + $0x6e4] ss:$16 sps:$4 sm:$0xff]  }
  0xa0   :  { %2599 = vmatprep.subr.bf16.mxu0 %v4242_v40  ;;  %2886 = vmatprep.subr.bf16.mxu1 %v4245_v41  ;;  %v4337_v40 = vld [vmem:[%s6040_s1 + $0x6ec] ss:$16 sps:$4 sm:$0xff]   ;;  %v4332_v41 = vld [vmem:[%s6040_s1 + $0x6e0] ss:$16 sps:$4 sm:$0xff]  }
  0xa3   :  { %2600 = vmatpush1.bf16.msra.mxu0 %v4240_v42  ;;  %2887 = vmatpush1.bf16.msra.mxu1 %v4243_v43  ;;  %v4335_v42 = vld [vmem:[%s6040_s1 + $0x6e8] ss:$16 sps:$4 sm:$0xff]   ;;  %v4340_v43 = vld [vmem:[%s6040_s1 + $0x704] ss:$16 sps:$4 sm:$0xff]  }
  0xa4   :  { %2601 = vmatprep.subr.bf16.mxu0 %v4248_v44  ;;  %2888 = vmatprep.subr.bf16.mxu1 %v4251_v45  ;;  %v4343_v44 = vld [vmem:[%s6040_s1 + $0x70c] ss:$16 sps:$4 sm:$0xff]   ;;  %v4338_v45 = vld [vmem:[%s6040_s1 + $0x700] ss:$16 sps:$4 sm:$0xff]  }
  0xa7   :  { %2602 = vmatpush1.bf16.msra.mxu0 %v4246_v46  ;;  %2889 = vmatpush1.bf16.msra.mxu1 %v4249_v47  ;;  %v4341_v46 = vld [vmem:[%s6040_s1 + $0x708] ss:$16 sps:$4 sm:$0xff]   ;;  %v4346_v47 = vld [vmem:[%s6040_s1 + $0x724] ss:$16 sps:$4 sm:$0xff]  }
  0xa8   :  { %2603 = vmatprep.subr.bf16.mxu0 %v4254_v48  ;;  %2890 = vmatprep.subr.bf16.mxu1 %v4257_v49  ;;  %v4349_v48 = vld [vmem:[%s6040_s1 + $0x72c] ss:$16 sps:$4 sm:$0xff]   ;;  %v4344_v49 = vld [vmem:[%s6040_s1 + $0x720] ss:$16 sps:$4 sm:$0xff]  }
  0xab   :  { %2604 = vmatpush1.bf16.msra.mxu0 %v4252_v50  ;;  %2891 = vmatpush1.bf16.msra.mxu1 %v4255_v51  ;;  %v4347_v50 = vld [vmem:[%s6040_s1 + $0x728] ss:$16 sps:$4 sm:$0xff]   ;;  %v4352_v51 = vld [vmem:[%s6040_s1 + $0x744] ss:$16 sps:$4 sm:$0xff]  }
  0xac   :  { %2605 = vmatprep.subr.bf16.mxu0 %v4260_v52  ;;  %2892 = vmatprep.subr.bf16.mxu1 %v4263_v53  ;;  %v4355_v52 = vld [vmem:[%s6040_s1 + $0x74c] ss:$16 sps:$4 sm:$0xff]   ;;  %v4350_v53 = vld [vmem:[%s6040_s1 + $0x740] ss:$16 sps:$4 sm:$0xff]  }
  0xaf   :  { %2606 = vmatpush1.bf16.msra.mxu0 %v4258_v54  ;;  %2893 = vmatpush1.bf16.msra.mxu1 %v4261_v55  ;;  %v4353_v54 = vld [vmem:[%s6040_s1 + $0x748] ss:$16 sps:$4 sm:$0xff]   ;;  %v4358_v55 = vld [vmem:[%s6040_s1 + $0x764] ss:$16 sps:$4 sm:$0xff]  }
  0xb0   :  { %2607 = vmatprep.subr.bf16.mxu0 %v4266_v56  ;;  %2894 = vmatprep.subr.bf16.mxu1 %v4269_v57  ;;  %v4361_v56 = vld [vmem:[%s6040_s1 + $0x76c] ss:$16 sps:$4 sm:$0xff]   ;;  %v4356_v57 = vld [vmem:[%s6040_s1 + $0x760] ss:$16 sps:$4 sm:$0xff]  }
  0xb3   :  { %2608 = vmatpush1.bf16.msra.mxu0 %v4264_v58  ;;  %2895 = vmatpush1.bf16.msra.mxu1 %v4267_v59  ;;  %v4359_v58 = vld [vmem:[%s6040_s1 + $0x768] ss:$16 sps:$4 sm:$0xff]   ;;  %v4364_v59 = vld [vmem:[%s6040_s1 + $0x784] ss:$16 sps:$4 sm:$0xff]  }
  0xb4   :  { %2609 = vmatprep.subr.bf16.mxu0 %v4272_v60  ;;  %2896 = vmatprep.subr.bf16.mxu1 %v4275_v61  ;;  %v4367_v60 = vld [vmem:[%s6040_s1 + $0x78c] ss:$16 sps:$4 sm:$0xff]   ;;  %v4362_v61 = vld [vmem:[%s6040_s1 + $0x780] ss:$16 sps:$4 sm:$0xff]  }
  0xb7   :  { %2610 = vmatpush1.bf16.msra.mxu0 %v4270_v62  ;;  %2897 = vmatpush1.bf16.msra.mxu1 %v4273_v63  ;;  %v4365_v62 = vld [vmem:[%s6040_s1 + $0x788] ss:$16 sps:$4 sm:$0xff]   ;;  %v4370_v63 = vld [vmem:[%s6040_s1 + $0x7a4] ss:$16 sps:$4 sm:$0xff]  }
  0xb8   :  { %2611 = vmatprep.subr.bf16.mxu0 %v4278_v0  ;;  %2898 = vmatprep.subr.bf16.mxu1 %v4281_v1  ;;  %v4373_v0 = vld [vmem:[%s6040_s1 + $0x7ac] ss:$16 sps:$4 sm:$0xff]   ;;  %v4368_v1 = vld [vmem:[%s6040_s1 + $0x7a0] ss:$16 sps:$4 sm:$0xff]  }
  0xbb   :  { %2612 = vmatpush1.bf16.msra.mxu0 %v4276_v2  ;;  %2899 = vmatpush1.bf16.msra.mxu1 %v4279_v3  ;;  %v4371_v2 = vld [vmem:[%s6040_s1 + $0x7a8] ss:$16 sps:$4 sm:$0xff]   ;;  %v4376_v3 = vld [vmem:[%s6040_s1 + $0x7c4] ss:$16 sps:$4 sm:$0xff]  }
  0xbc   :  { %2613 = vmatprep.subr.bf16.mxu0 %v4284_v4  ;;  %2900 = vmatprep.subr.bf16.mxu1 %v4287_v5  ;;  %v4379_v4 = vld [vmem:[%s6040_s1 + $0x7cc] ss:$16 sps:$4 sm:$0xff]   ;;  %v4374_v5 = vld [vmem:[%s6040_s1 + $0x7c0] ss:$16 sps:$4 sm:$0xff]  }
  0xbf   :  { %2614 = vmatpush1.bf16.msra.mxu0 %v4282_v6  ;;  %2901 = vmatpush1.bf16.msra.mxu1 %v4285_v7  ;;  %v4377_v6 = vld [vmem:[%s6040_s1 + $0x7c8] ss:$16 sps:$4 sm:$0xff]   ;;  %v4382_v7 = vld [vmem:[%s6040_s1 + $0x7e4] ss:$16 sps:$4 sm:$0xff]  }
  0xc0   :  { %2624 = vmatprep.subr.bf16.mxu0 %v4292_v8  ;;  %2911 = vmatprep.subr.bf16.mxu1 %v4295_v9  ;;  %v4385_v8 = vld [vmem:[%s6040_s1 + $0x7ec] ss:$16 sps:$4 sm:$0xff]   ;;  %v4380_v9 = vld [vmem:[%s6040_s1 + $0x7e0] ss:$16 sps:$4 sm:$0xff]  }
  0xc2   :  { %2616 = vmatmul.mubr.bf16.vlgmr.msra.gmra.mrb[0].mxu0 %v3455_v12  ;;  %2903 = vmatmul.mubr.bf16.vlgmr.msra.gmra.mrb[0].mxu1 %v3455_v12  ;;  %v4390_v12 = vld [vmem:[%s6040_s1 + $0x804] ss:$16 sps:$4 sm:$0xff]  }
  0xc3   :  { %2625 = vmatpush1.bf16.msra.mxu0 %v4290_v10  ;;  %2912 = vmatpush1.bf16.msra.mxu1 %v4293_v13  ;;  %v4383_v10 = vld [vmem:[%s6040_s1 + $0x7e8] ss:$16 sps:$4 sm:$0xff]   ;;  %v4393_v13 = vld [vmem:[%s6040_s1 + $0x80c] ss:$16 sps:$4 sm:$0xff]  }
  0xc4   :  { %2626 = vmatprep.subr.bf16.mxu0 %v4298_v15  ;;  %2913 = vmatprep.subr.bf16.mxu1 %v4301_v11  ;;  %v4388_v15 = vld [vmem:[%s6040_s1 + $0x800] ss:$16 sps:$4 sm:$0xff]   ;;  %v3457_v11 = vcombine.low %v5293_v14, %v5293_v14  ;;  %v4399_v14 = vld [vmem:[%s6040_s1 + $0x82c] ss:$16 sps:$4 sm:$0xff]  }
  0xc5   :  { %2656 = vmatprep.mubr.bf16.mxu0 %v3458_v16  ;;  %2943 = vmatprep.mubr.bf16.mxu1 %v3458_v16  ;;  %v5491_v16 = vld [vmem:[%s6041_s0 + $0x20] sm:$0xff] }
  0xc7   :  { %2627 = vmatpush1.bf16.msra.mxu0 %v4296_v17  ;;  %2914 = vmatpush1.bf16.msra.mxu1 %v4299_v18  ;;  %v4391_v17 = vld [vmem:[%s6040_s1 + $0x808] ss:$16 sps:$4 sm:$0xff]   ;;  %v4396_v18 = vld [vmem:[%s6040_s1 + $0x824] ss:$16 sps:$4 sm:$0xff]  }
  0xc8   :  { %2628 = vmatprep.subr.bf16.mxu0 %v4304_v19  ;;  %2915 = vmatprep.subr.bf16.mxu1 %v4307_v20  ;;  %v3460_v19 = vcombine.high %v5491_v16, %v5491_v16  ;;  %v4394_v20 = vld [vmem:[%s6040_s1 + $0x820] ss:$16 sps:$4 sm:$0xff]  }
  0xcb   :  { %2629 = vmatpush1.bf16.msra.mxu0 %v4302_v21  ;;  %2916 = vmatpush1.bf16.msra.mxu1 %v4305_v22  ;;  %v4397_v21 = vld [vmem:[%s6040_s1 + $0x828] ss:$16 sps:$4 sm:$0xff]   ;;  %v4402_v22 = vld [vmem:[%s6040_s1 + $0x844] ss:$16 sps:$4 sm:$0xff]  }
  0xcc   :  { %2630 = vmatprep.subr.bf16.mxu0 %v4310_v23  ;;  %2917 = vmatprep.subr.bf16.mxu1 %v4313_v24  ;;  %v4405_v23 = vld [vmem:[%s6040_s1 + $0x84c] ss:$16 sps:$4 sm:$0xff]   ;;  %v4400_v24 = vld [vmem:[%s6040_s1 + $0x840] ss:$16 sps:$4 sm:$0xff]  }
  0xcf   :  { %2631 = vmatpush1.bf16.msra.mxu0 %v4308_v25  ;;  %2918 = vmatpush1.bf16.msra.mxu1 %v4311_v26  ;;  %v4403_v25 = vld [vmem:[%s6040_s1 + $0x848] ss:$16 sps:$4 sm:$0xff]   ;;  %v4408_v26 = vld [vmem:[%s6040_s1 + $0x864] ss:$16 sps:$4 sm:$0xff]  }
  0xd0   :  { %2632 = vmatprep.subr.bf16.mxu0 %v4316_v27  ;;  %2919 = vmatprep.subr.bf16.mxu1 %v4319_v28  ;;  %v4411_v27 = vld [vmem:[%s6040_s1 + $0x86c] ss:$16 sps:$4 sm:$0xff]   ;;  %v4406_v28 = vld [vmem:[%s6040_s1 + $0x860] ss:$16 sps:$4 sm:$0xff]  }
  0xd3   :  { %2633 = vmatpush1.bf16.msra.mxu0 %v4314_v29  ;;  %2920 = vmatpush1.bf16.msra.mxu1 %v4317_v30  ;;  %v4409_v29 = vld [vmem:[%s6040_s1 + $0x868] ss:$16 sps:$4 sm:$0xff]   ;;  %v4414_v30 = vld [vmem:[%s6040_s1 + $0x884] ss:$16 sps:$4 sm:$0xff]  }
  0xd4   :  { %2634 = vmatprep.subr.bf16.mxu0 %v4322_v31  ;;  %2921 = vmatprep.subr.bf16.mxu1 %v4325_v32  ;;  %v4417_v31 = vld [vmem:[%s6040_s1 + $0x88c] ss:$16 sps:$4 sm:$0xff]   ;;  %v4412_v32 = vld [vmem:[%s6040_s1 + $0x880] ss:$16 sps:$4 sm:$0xff]  }
  0xd7   :  { %2635 = vmatpush1.bf16.msra.mxu0 %v4320_v33  ;;  %2922 = vmatpush1.bf16.msra.mxu1 %v4323_v34  ;;  %v4415_v33 = vld [vmem:[%s6040_s1 + $0x888] ss:$16 sps:$4 sm:$0xff]   ;;  %v4420_v34 = vld [vmem:[%s6040_s1 + $0x8a4] ss:$16 sps:$4 sm:$0xff]  }
  0xd8   :  { %2636 = vmatprep.subr.bf16.mxu0 %v4328_v35  ;;  %2923 = vmatprep.subr.bf16.mxu1 %v4331_v36  ;;  %v4423_v35 = vld [vmem:[%s6040_s1 + $0x8ac] ss:$16 sps:$4 sm:$0xff]   ;;  %v4418_v36 = vld [vmem:[%s6040_s1 + $0x8a0] ss:$16 sps:$4 sm:$0xff]  }
  0xdb   :  { %2637 = vmatpush1.bf16.msra.mxu0 %v4326_v37  ;;  %2924 = vmatpush1.bf16.msra.mxu1 %v4329_v38  ;;  %v4421_v37 = vld [vmem:[%s6040_s1 + $0x8a8] ss:$16 sps:$4 sm:$0xff]   ;;  %v4426_v38 = vld [vmem:[%s6040_s1 + $0x8c4] ss:$16 sps:$4 sm:$0xff]  }
  0xdc   :  { %2638 = vmatprep.subr.bf16.mxu0 %v4334_v39  ;;  %2925 = vmatprep.subr.bf16.mxu1 %v4337_v40  ;;  %v4429_v39 = vld [vmem:[%s6040_s1 + $0x8cc] ss:$16 sps:$4 sm:$0xff]   ;;  %v4424_v40 = vld [vmem:[%s6040_s1 + $0x8c0] ss:$16 sps:$4 sm:$0xff]  }
  0xdf   :  { %2639 = vmatpush1.bf16.msra.mxu0 %v4332_v41  ;;  %2926 = vmatpush1.bf16.msra.mxu1 %v4335_v42  ;;  %v4427_v41 = vld [vmem:[%s6040_s1 + $0x8c8] ss:$16 sps:$4 sm:$0xff]   ;;  %v4432_v42 = vld [vmem:[%s6040_s1 + $0x8e4] ss:$16 sps:$4 sm:$0xff]  }
  0xe0   :  { %2640 = vmatprep.subr.bf16.mxu0 %v4340_v43  ;;  %2927 = vmatprep.subr.bf16.mxu1 %v4343_v44  ;;  %v4435_v43 = vld [vmem:[%s6040_s1 + $0x8ec] ss:$16 sps:$4 sm:$0xff]   ;;  %v4430_v44 = vld [vmem:[%s6040_s1 + $0x8e0] ss:$16 sps:$4 sm:$0xff]  }
  0xe3   :  { %2641 = vmatpush1.bf16.msra.mxu0 %v4338_v45  ;;  %2928 = vmatpush1.bf16.msra.mxu1 %v4341_v46  ;;  %v4433_v45 = vld [vmem:[%s6040_s1 + $0x8e8] ss:$16 sps:$4 sm:$0xff]   ;;  %v4438_v46 = vld [vmem:[%s6040_s1 + $0x904] ss:$16 sps:$4 sm:$0xff]  }
  0xe4   :  { %2642 = vmatprep.subr.bf16.mxu0 %v4346_v47  ;;  %2929 = vmatprep.subr.bf16.mxu1 %v4349_v48  ;;  %v4441_v47 = vld [vmem:[%s6040_s1 + $0x90c] ss:$16 sps:$4 sm:$0xff]   ;;  %v4436_v48 = vld [vmem:[%s6040_s1 + $0x900] ss:$16 sps:$4 sm:$0xff]  }
  0xe7   :  { %2643 = vmatpush1.bf16.msra.mxu0 %v4344_v49  ;;  %2930 = vmatpush1.bf16.msra.mxu1 %v4347_v50  ;;  %v4439_v49 = vld [vmem:[%s6040_s1 + $0x908] ss:$16 sps:$4 sm:$0xff]   ;;  %v4444_v50 = vld [vmem:[%s6040_s1 + $0x924] ss:$16 sps:$4 sm:$0xff]  }
  0xe8   :  { %2644 = vmatprep.subr.bf16.mxu0 %v4352_v51  ;;  %2931 = vmatprep.subr.bf16.mxu1 %v4355_v52  ;;  %v4447_v51 = vld [vmem:[%s6040_s1 + $0x92c] ss:$16 sps:$4 sm:$0xff]   ;;  %v4442_v52 = vld [vmem:[%s6040_s1 + $0x920] ss:$16 sps:$4 sm:$0xff]  }
  0xeb   :  { %2645 = vmatpush1.bf16.msra.mxu0 %v4350_v53  ;;  %2932 = vmatpush1.bf16.msra.mxu1 %v4353_v54  ;;  %v4445_v53 = vld [vmem:[%s6040_s1 + $0x928] ss:$16 sps:$4 sm:$0xff]   ;;  %v4450_v54 = vld [vmem:[%s6040_s1 + $0x944] ss:$16 sps:$4 sm:$0xff]  }
  0xec   :  { %2646 = vmatprep.subr.bf16.mxu0 %v4358_v55  ;;  %2933 = vmatprep.subr.bf16.mxu1 %v4361_v56  ;;  %v4453_v55 = vld [vmem:[%s6040_s1 + $0x94c] ss:$16 sps:$4 sm:$0xff]   ;;  %v4448_v56 = vld [vmem:[%s6040_s1 + $0x940] ss:$16 sps:$4 sm:$0xff]  }
  0xef   :  { %2647 = vmatpush1.bf16.msra.mxu0 %v4356_v57  ;;  %2934 = vmatpush1.bf16.msra.mxu1 %v4359_v58  ;;  %v4451_v57 = vld [vmem:[%s6040_s1 + $0x948] ss:$16 sps:$4 sm:$0xff]   ;;  %v4456_v58 = vld [vmem:[%s6040_s1 + $0x964] ss:$16 sps:$4 sm:$0xff]  }
  0xf0   :  { %2648 = vmatprep.subr.bf16.mxu0 %v4364_v59  ;;  %2935 = vmatprep.subr.bf16.mxu1 %v4367_v60  ;;  %v4459_v59 = vld [vmem:[%s6040_s1 + $0x96c] ss:$16 sps:$4 sm:$0xff]   ;;  %v4454_v60 = vld [vmem:[%s6040_s1 + $0x960] ss:$16 sps:$4 sm:$0xff]  }
  0xf3   :  { %2649 = vmatpush1.bf16.msra.mxu0 %v4362_v61  ;;  %2936 = vmatpush1.bf16.msra.mxu1 %v4365_v62  ;;  %v4457_v61 = vld [vmem:[%s6040_s1 + $0x968] ss:$16 sps:$4 sm:$0xff]   ;;  %v4462_v62 = vld [vmem:[%s6040_s1 + $0x984] ss:$16 sps:$4 sm:$0xff]  }
  0xf4   :  { %2650 = vmatprep.subr.bf16.mxu0 %v4370_v63  ;;  %2937 = vmatprep.subr.bf16.mxu1 %v4373_v0  ;;  %v4465_v63 = vld [vmem:[%s6040_s1 + $0x98c] ss:$16 sps:$4 sm:$0xff]   ;;  %v4460_v0 = vld [vmem:[%s6040_s1 + $0x980] ss:$16 sps:$4 sm:$0xff]  }
  0xf7   :  { %2651 = vmatpush1.bf16.msra.mxu0 %v4368_v1  ;;  %2938 = vmatpush1.bf16.msra.mxu1 %v4371_v2  ;;  %v4463_v1 = vld [vmem:[%s6040_s1 + $0x988] ss:$16 sps:$4 sm:$0xff]   ;;  %v4468_v2 = vld [vmem:[%s6040_s1 + $0x9a4] ss:$16 sps:$4 sm:$0xff]  }
  0xf8   :  { %2652 = vmatprep.subr.bf16.mxu0 %v4376_v3  ;;  %2939 = vmatprep.subr.bf16.mxu1 %v4379_v4  ;;  %v4471_v3 = vld [vmem:[%s6040_s1 + $0x9ac] ss:$16 sps:$4 sm:$0xff]   ;;  %v4466_v4 = vld [vmem:[%s6040_s1 + $0x9a0] ss:$16 sps:$4 sm:$0xff]  }
  0xfb   :  { %2653 = vmatpush1.bf16.msra.mxu0 %v4374_v5  ;;  %2940 = vmatpush1.bf16.msra.mxu1 %v4377_v6  ;;  %v4469_v5 = vld [vmem:[%s6040_s1 + $0x9a8] ss:$16 sps:$4 sm:$0xff]   ;;  %v4474_v6 = vld [vmem:[%s6040_s1 + $0x9c4] ss:$16 sps:$4 sm:$0xff]  }
  0xfc   :  { %2654 = vmatprep.subr.bf16.mxu0 %v4382_v7  ;;  %2941 = vmatprep.subr.bf16.mxu1 %v4385_v8  ;;  %v4477_v7 = vld [vmem:[%s6040_s1 + $0x9cc] ss:$16 sps:$4 sm:$0xff]   ;;  %v4472_v8 = vld [vmem:[%s6040_s1 + $0x9c0] ss:$16 sps:$4 sm:$0xff]  }
  0xff   :  { %2655 = vmatpush1.bf16.msra.mxu0 %v4380_v9  ;;  %2942 = vmatpush1.bf16.msra.mxu1 %v4383_v10  ;;  %v4475_v9 = vld [vmem:[%s6040_s1 + $0x9c8] ss:$16 sps:$4 sm:$0xff]   ;;  %v4480_v10 = vld [vmem:[%s6040_s1 + $0x9e4] ss:$16 sps:$4 sm:$0xff]  }
 0x100   :  { %2665 = vmatprep.subr.bf16.mxu0 %v4390_v12  ;;  %2952 = vmatprep.subr.bf16.mxu1 %v4393_v13  ;;  %v4483_v12 = vld [vmem:[%s6040_s1 + $0x9ec] ss:$16 sps:$4 sm:$0xff]   ;;  %v4478_v13 = vld [vmem:[%s6040_s1 + $0x9e0] ss:$16 sps:$4 sm:$0xff]  }
 0x102   :  { %2657 = vmatmul.mubr.bf16.vlgmr.msra.gmra.mrb[0].mxu0 %v3457_v11  ;;  %2944 = vmatmul.mubr.bf16.vlgmr.msra.gmra.mrb[0].mxu1 %v3457_v11  ;;  %v4488_v11 = vld [vmem:[%s6040_s1 + $0xa04] ss:$16 sps:$4 sm:$0xff]  }
 0x103   :  { %2666 = vmatpush1.bf16.msra.mxu0 %v4388_v15  ;;  %2953 = vmatpush1.bf16.msra.mxu1 %v4391_v17  ;;  %v4481_v15 = vld [vmem:[%s6040_s1 + $0x9e8] ss:$16 sps:$4 sm:$0xff]   ;;  %v4491_v17 = vld [vmem:[%s6040_s1 + $0xa0c] ss:$16 sps:$4 sm:$0xff]  }
 0x104   :  { %2667 = vmatprep.subr.bf16.mxu0 %v4396_v18  ;;  %2954 = vmatprep.subr.bf16.mxu1 %v4399_v14  ;;  %v3459_v18 = vcombine.low %v5491_v16, %v5491_v16  ;;  %v5689_v14 = vld [vmem:[%s6041_s0 + $0x28] sm:$0xff]  ;;  %v4494_v16 = vld [vmem:[%s6040_s1 + $0xa24] ss:$16 sps:$4 sm:$0xff]  }
 0x105   :  { %2697 = vmatprep.mubr.bf16.mxu0 %v3460_v19  ;;  %2984 = vmatprep.mubr.bf16.mxu1 %v3460_v19  ;;  %v4486_v19 = vld [vmem:[%s6040_s1 + $0xa00] ss:$16 sps:$4 sm:$0xff]  }
 0x107   :  { %2668 = vmatpush1.bf16.msra.mxu0 %v4394_v20  ;;  %2955 = vmatpush1.bf16.msra.mxu1 %v4397_v21  ;;  %v4489_v20 = vld [vmem:[%s6040_s1 + $0xa08] ss:$16 sps:$4 sm:$0xff]   ;;  %v4497_v21 = vld [vmem:[%s6040_s1 + $0xa2c] ss:$16 sps:$4 sm:$0xff]  }
 0x108   :  { %2669 = vmatprep.subr.bf16.mxu0 %v4402_v22  ;;  %2956 = vmatprep.subr.bf16.mxu1 %v4405_v23  ;;  %v3462_v22 = vcombine.high %v5689_v14, %v5689_v14  ;;  %v4492_v23 = vld [vmem:[%s6040_s1 + $0xa20] ss:$16 sps:$4 sm:$0xff]  }
 0x10b   :  { %2670 = vmatpush1.bf16.msra.mxu0 %v4400_v24  ;;  %2957 = vmatpush1.bf16.msra.mxu1 %v4403_v25  ;;  %v4495_v24 = vld [vmem:[%s6040_s1 + $0xa28] ss:$16 sps:$4 sm:$0xff]   ;;  %v4500_v25 = vld [vmem:[%s6040_s1 + $0xa44] ss:$16 sps:$4 sm:$0xff]  }
 0x10c   :  { %2671 = vmatprep.subr.bf16.mxu0 %v4408_v26  ;;  %2958 = vmatprep.subr.bf16.mxu1 %v4411_v27  ;;  %v4503_v26 = vld [vmem:[%s6040_s1 + $0xa4c] ss:$16 sps:$4 sm:$0xff]   ;;  %v4498_v27 = vld [vmem:[%s6040_s1 + $0xa40] ss:$16 sps:$4 sm:$0xff]  }
 0x10f   :  { %2672 = vmatpush1.bf16.msra.mxu0 %v4406_v28  ;;  %2959 = vmatpush1.bf16.msra.mxu1 %v4409_v29  ;;  %v4501_v28 = vld [vmem:[%s6040_s1 + $0xa48] ss:$16 sps:$4 sm:$0xff]   ;;  %v4506_v29 = vld [vmem:[%s6040_s1 + $0xa64] ss:$16 sps:$4 sm:$0xff]  }
 0x110   :  { %2673 = vmatprep.subr.bf16.mxu0 %v4414_v30  ;;  %2960 = vmatprep.subr.bf16.mxu1 %v4417_v31  ;;  %v4509_v30 = vld [vmem:[%s6040_s1 + $0xa6c] ss:$16 sps:$4 sm:$0xff]   ;;  %v4504_v31 = vld [vmem:[%s6040_s1 + $0xa60] ss:$16 sps:$4 sm:$0xff]  }
 0x113   :  { %2674 = vmatpush1.bf16.msra.mxu0 %v4412_v32  ;;  %2961 = vmatpush1.bf16.msra.mxu1 %v4415_v33  ;;  %v4507_v32 = vld [vmem:[%s6040_s1 + $0xa68] ss:$16 sps:$4 sm:$0xff]   ;;  %v4512_v33 = vld [vmem:[%s6040_s1 + $0xa84] ss:$16 sps:$4 sm:$0xff]  }
 0x114   :  { %2675 = vmatprep.subr.bf16.mxu0 %v4420_v34  ;;  %2962 = vmatprep.subr.bf16.mxu1 %v4423_v35  ;;  %v4515_v34 = vld [vmem:[%s6040_s1 + $0xa8c] ss:$16 sps:$4 sm:$0xff]   ;;  %v4510_v35 = vld [vmem:[%s6040_s1 + $0xa80] ss:$16 sps:$4 sm:$0xff]  }
 0x117   :  { %2676 = vmatpush1.bf16.msra.mxu0 %v4418_v36  ;;  %2963 = vmatpush1.bf16.msra.mxu1 %v4421_v37  ;;  %v4513_v36 = vld [vmem:[%s6040_s1 + $0xa88] ss:$16 sps:$4 sm:$0xff]   ;;  %v4518_v37 = vld [vmem:[%s6040_s1 + $0xaa4] ss:$16 sps:$4 sm:$0xff]  }
 0x118   :  { %2677 = vmatprep.subr.bf16.mxu0 %v4426_v38  ;;  %2964 = vmatprep.subr.bf16.mxu1 %v4429_v39  ;;  %v4521_v38 = vld [vmem:[%s6040_s1 + $0xaac] ss:$16 sps:$4 sm:$0xff]   ;;  %v4516_v39 = vld [vmem:[%s6040_s1 + $0xaa0] ss:$16 sps:$4 sm:$0xff]  }
 0x11b   :  { %2678 = vmatpush1.bf16.msra.mxu0 %v4424_v40  ;;  %2965 = vmatpush1.bf16.msra.mxu1 %v4427_v41  ;;  %v4519_v40 = vld [vmem:[%s6040_s1 + $0xaa8] ss:$16 sps:$4 sm:$0xff]   ;;  %v4524_v41 = vld [vmem:[%s6040_s1 + $0xac4] ss:$16 sps:$4 sm:$0xff]  }
 0x11c   :  { %2679 = vmatprep.subr.bf16.mxu0 %v4432_v42  ;;  %2966 = vmatprep.subr.bf16.mxu1 %v4435_v43  ;;  %v4527_v42 = vld [vmem:[%s6040_s1 + $0xacc] ss:$16 sps:$4 sm:$0xff]   ;;  %v4522_v43 = vld [vmem:[%s6040_s1 + $0xac0] ss:$16 sps:$4 sm:$0xff]  }
 0x11f   :  { %2680 = vmatpush1.bf16.msra.mxu0 %v4430_v44  ;;  %2967 = vmatpush1.bf16.msra.mxu1 %v4433_v45  ;;  %v4525_v44 = vld [vmem:[%s6040_s1 + $0xac8] ss:$16 sps:$4 sm:$0xff]   ;;  %v4530_v45 = vld [vmem:[%s6040_s1 + $0xae4] ss:$16 sps:$4 sm:$0xff]  }
 0x120   :  { %2681 = vmatprep.subr.bf16.mxu0 %v4438_v46  ;;  %2968 = vmatprep.subr.bf16.mxu1 %v4441_v47  ;;  %v4533_v46 = vld [vmem:[%s6040_s1 + $0xaec] ss:$16 sps:$4 sm:$0xff]   ;;  %v4528_v47 = vld [vmem:[%s6040_s1 + $0xae0] ss:$16 sps:$4 sm:$0xff]  }
 0x123   :  { %2682 = vmatpush1.bf16.msra.mxu0 %v4436_v48  ;;  %2969 = vmatpush1.bf16.msra.mxu1 %v4439_v49  ;;  %v4531_v48 = vld [vmem:[%s6040_s1 + $0xae8] ss:$16 sps:$4 sm:$0xff]   ;;  %v4536_v49 = vld [vmem:[%s6040_s1 + $0xb04] ss:$16 sps:$4 sm:$0xff]  }
 0x124   :  { %2683 = vmatprep.subr.bf16.mxu0 %v4444_v50  ;;  %2970 = vmatprep.subr.bf16.mxu1 %v4447_v51  ;;  %v4539_v50 = vld [vmem:[%s6040_s1 + $0xb0c] ss:$16 sps:$4 sm:$0xff]   ;;  %v4534_v51 = vld [vmem:[%s6040_s1 + $0xb00] ss:$16 sps:$4 sm:$0xff]  }
 0x127   :  { %2684 = vmatpush1.bf16.msra.mxu0 %v4442_v52  ;;  %2971 = vmatpush1.bf16.msra.mxu1 %v4445_v53  ;;  %v4537_v52 = vld [vmem:[%s6040_s1 + $0xb08] ss:$16 sps:$4 sm:$0xff]   ;;  %v4542_v53 = vld [vmem:[%s6040_s1 + $0xb24] ss:$16 sps:$4 sm:$0xff]  }
 0x128   :  { %2685 = vmatprep.subr.bf16.mxu0 %v4450_v54  ;;  %2972 = vmatprep.subr.bf16.mxu1 %v4453_v55  ;;  %v4545_v54 = vld [vmem:[%s6040_s1 + $0xb2c] ss:$16 sps:$4 sm:$0xff]   ;;  %v4540_v55 = vld [vmem:[%s6040_s1 + $0xb20] ss:$16 sps:$4 sm:$0xff]  }
 0x12b   :  { %2686 = vmatpush1.bf16.msra.mxu0 %v4448_v56  ;;  %2973 = vmatpush1.bf16.msra.mxu1 %v4451_v57  ;;  %v4543_v56 = vld [vmem:[%s6040_s1 + $0xb28] ss:$16 sps:$4 sm:$0xff]   ;;  %v4548_v57 = vld [vmem:[%s6040_s1 + $0xb44] ss:$16 sps:$4 sm:$0xff]  }
 0x12c   :  { %2687 = vmatprep.subr.bf16.mxu0 %v4456_v58  ;;  %2974 = vmatprep.subr.bf16.mxu1 %v4459_v59  ;;  %v4551_v58 = vld [vmem:[%s6040_s1 + $0xb4c] ss:$16 sps:$4 sm:$0xff]   ;;  %v4546_v59 = vld [vmem:[%s6040_s1 + $0xb40] ss:$16 sps:$4 sm:$0xff]  }
 0x12f   :  { %2688 = vmatpush1.bf16.msra.mxu0 %v4454_v60  ;;  %2975 = vmatpush1.bf16.msra.mxu1 %v4457_v61  ;;  %v4549_v60 = vld [vmem:[%s6040_s1 + $0xb48] ss:$16 sps:$4 sm:$0xff]   ;;  %v4554_v61 = vld [vmem:[%s6040_s1 + $0xb64] ss:$16 sps:$4 sm:$0xff]  }
 0x130   :  { %2689 = vmatprep.subr.bf16.mxu0 %v4462_v62  ;;  %2976 = vmatprep.subr.bf16.mxu1 %v4465_v63  ;;  %v4557_v62 = vld [vmem:[%s6040_s1 + $0xb6c] ss:$16 sps:$4 sm:$0xff]   ;;  %v4552_v63 = vld [vmem:[%s6040_s1 + $0xb60] ss:$16 sps:$4 sm:$0xff]  }
 0x133   :  { %2690 = vmatpush1.bf16.msra.mxu0 %v4460_v0  ;;  %2977 = vmatpush1.bf16.msra.mxu1 %v4463_v1  ;;  %v4555_v0 = vld [vmem:[%s6040_s1 + $0xb68] ss:$16 sps:$4 sm:$0xff]   ;;  %v4560_v1 = vld [vmem:[%s6040_s1 + $0xb84] ss:$16 sps:$4 sm:$0xff]  }
 0x134   :  { %2691 = vmatprep.subr.bf16.mxu0 %v4468_v2  ;;  %2978 = vmatprep.subr.bf16.mxu1 %v4471_v3  ;;  %v4563_v2 = vld [vmem:[%s6040_s1 + $0xb8c] ss:$16 sps:$4 sm:$0xff]   ;;  %v4558_v3 = vld [vmem:[%s6040_s1 + $0xb80] ss:$16 sps:$4 sm:$0xff]  }
 0x137   :  { %2692 = vmatpush1.bf16.msra.mxu0 %v4466_v4  ;;  %2979 = vmatpush1.bf16.msra.mxu1 %v4469_v5  ;;  %v4561_v4 = vld [vmem:[%s6040_s1 + $0xb88] ss:$16 sps:$4 sm:$0xff]   ;;  %v4566_v5 = vld [vmem:[%s6040_s1 + $0xba4] ss:$16 sps:$4 sm:$0xff]  }
 0x138   :  { %2693 = vmatprep.subr.bf16.mxu0 %v4474_v6  ;;  %2980 = vmatprep.subr.bf16.mxu1 %v4477_v7  ;;  %v4569_v6 = vld [vmem:[%s6040_s1 + $0xbac] ss:$16 sps:$4 sm:$0xff]   ;;  %v4564_v7 = vld [vmem:[%s6040_s1 + $0xba0] ss:$16 sps:$4 sm:$0xff]  }
 0x13b   :  { %2694 = vmatpush1.bf16.msra.mxu0 %v4472_v8  ;;  %2981 = vmatpush1.bf16.msra.mxu1 %v4475_v9  ;;  %v4567_v8 = vld [vmem:[%s6040_s1 + $0xba8] ss:$16 sps:$4 sm:$0xff]   ;;  %v4572_v9 = vld [vmem:[%s6040_s1 + $0xbc4] ss:$16 sps:$4 sm:$0xff]  }
 0x13c   :  { %2695 = vmatprep.subr.bf16.mxu0 %v4480_v10  ;;  %2982 = vmatprep.subr.bf16.mxu1 %v4483_v12  ;;  %v4575_v10 = vld [vmem:[%s6040_s1 + $0xbcc] ss:$16 sps:$4 sm:$0xff]   ;;  %v4570_v12 = vld [vmem:[%s6040_s1 + $0xbc0] ss:$16 sps:$4 sm:$0xff]  }
 0x13f   :  { %2696 = vmatpush1.bf16.msra.mxu0 %v4478_v13  ;;  %2983 = vmatpush1.bf16.msra.mxu1 %v4481_v15  ;;  %v4573_v13 = vld [vmem:[%s6040_s1 + $0xbc8] ss:$16 sps:$4 sm:$0xff]   ;;  %v4578_v15 = vld [vmem:[%s6040_s1 + $0xbe4] ss:$16 sps:$4 sm:$0xff]  }
 0x140   :  { %2706 = vmatprep.subr.bf16.mxu0 %v4488_v11  ;;  %2993 = vmatprep.subr.bf16.mxu1 %v4491_v17  ;;  %v4581_v11 = vld [vmem:[%s6040_s1 + $0xbec] ss:$16 sps:$4 sm:$0xff]   ;;  %v4576_v17 = vld [vmem:[%s6040_s1 + $0xbe0] ss:$16 sps:$4 sm:$0xff]  }
 0x142   :  { %2698 = vmatmul.mubr.bf16.vlgmr.msra.gmra.mrb[0].mxu0 %v3459_v18  ;;  %2985 = vmatmul.mubr.bf16.vlgmr.msra.gmra.mrb[0].mxu1 %v3459_v18  ;;  %v4579_v18 = vld [vmem:[%s6040_s1 + $0xbe8] ss:$16 sps:$4 sm:$0xff]  }
 0x143   :  { %2707 = vmatpush1.bf16.msra.mxu0 %v4486_v19  ;;  %2994 = vmatpush1.bf16.msra.mxu1 %v4489_v20  ;;  %v4586_v19 = vld [vmem:[%s6040_s1 + $0xc04] ss:$16 sps:$4 sm:$0xff]   ;;  %v4589_v20 = vld [vmem:[%s6040_s1 + $0xc0c] ss:$16 sps:$4 sm:$0xff]  }
 0x144   :  { %2708 = vmatprep.subr.bf16.mxu0 %v4494_v16  ;;  %2995 = vmatprep.subr.bf16.mxu1 %v4497_v21  ;;  %v3461_v16 = vcombine.low %v5689_v14, %v5689_v14  ;;  %v4584_v21 = vld [vmem:[%s6040_s1 + $0xc00] ss:$16 sps:$4 sm:$0xff]   ;;  %v4595_v14 = vld [vmem:[%s6040_s1 + $0xc2c] ss:$16 sps:$4 sm:$0xff]  }
 0x145   :  { %2738 = vmatprep.mubr.bf16.mxu0 %v3462_v22  ;;  %3025 = vmatprep.mubr.bf16.mxu1 %v3462_v22  ;;  %v4587_v22 = vld [vmem:[%s6040_s1 + $0xc08] ss:$16 sps:$4 sm:$0xff]  }
 0x147   :  { %2709 = vmatpush1.bf16.msra.mxu0 %v4492_v23  ;;  %2996 = vmatpush1.bf16.msra.mxu1 %v4495_v24  ;;  %v4592_v23 = vld [vmem:[%s6040_s1 + $0xc24] ss:$16 sps:$4 sm:$0xff]   ;;  %v4590_v24 = vld [vmem:[%s6040_s1 + $0xc20] ss:$16 sps:$4 sm:$0xff]  }
 0x148   :  { %2710 = vmatprep.subr.bf16.mxu0 %v4500_v25  ;;  %2997 = vmatprep.subr.bf16.mxu1 %v4503_v26  ;;  %v4593_v25 = vld [vmem:[%s6040_s1 + $0xc28] ss:$16 sps:$4 sm:$0xff]   ;;  %v4598_v26 = vld [vmem:[%s6040_s1 + $0xc44] ss:$16 sps:$4 sm:$0xff]  }
 0x14b   :  { %2711 = vmatpush1.bf16.msra.mxu0 %v4498_v27  ;;  %2998 = vmatpush1.bf16.msra.mxu1 %v4501_v28  ;;  %v4601_v27 = vld [vmem:[%s6040_s1 + $0xc4c] ss:$16 sps:$4 sm:$0xff]   ;;  %v4645_v28 = vmov 0  }
 0x14c   :  { %2712 = vmatprep.subr.bf16.mxu0 %v4506_v29  ;;  %2999 = vmatprep.subr.bf16.mxu1 %v4509_v30  ;;  %v4596_v29 = vld [vmem:[%s6040_s1 + $0xc40] ss:$16 sps:$4 sm:$0xff]   ;;  %v4599_v30 = vld [vmem:[%s6040_s1 + $0xc48] ss:$16 sps:$4 sm:$0xff]  }
 0x14f   :  { %2713 = vmatpush1.bf16.msra.mxu0 %v4504_v31  ;;  %3000 = vmatpush1.bf16.msra.mxu1 %v4507_v32  ;;  %v4604_v31 = vld [vmem:[%s6040_s1 + $0xc64] ss:$16 sps:$4 sm:$0xff]   ;;  %v4607_v32 = vld [vmem:[%s6040_s1 + $0xc6c] ss:$16 sps:$4 sm:$0xff]  }
 0x150   :  { %2714 = vmatprep.subr.bf16.mxu0 %v4512_v33  ;;  %3001 = vmatprep.subr.bf16.mxu1 %v4515_v34  ;;  %v4602_v33 = vld [vmem:[%s6040_s1 + $0xc60] ss:$16 sps:$4 sm:$0xff]   ;;  %v4605_v34 = vld [vmem:[%s6040_s1 + $0xc68] ss:$16 sps:$4 sm:$0xff]  }
 0x153   :  { %2715 = vmatpush1.bf16.msra.mxu0 %v4510_v35  ;;  %3002 = vmatpush1.bf16.msra.mxu1 %v4513_v36  ;;  %v4609_v35 = vld [vmem:[%s6042_s3 + $0x40] sm:$0xff]  }
 0x154   :  { %2716 = vmatprep.subr.bf16.mxu0 %v4518_v37  ;;  %3003 = vmatprep.subr.bf16.mxu1 %v4521_v38  ;;  %v4610_v36 = vld [vmem:[%s6042_s3 + $0xc0] sm:$0xff]   ;;  %v4608_v37 = vld [vmem:[%s6041_s0 + $0x30] ss:$0 sps:$4 sm:$0xff]  }
 0x155   :  { %v4611_v38 = vld [vmem:[%s6042_s3] sm:$0xff]  }
 0x157   :  { %2717 = vmatpush1.bf16.msra.mxu0 %v4516_v39  ;;  %3004 = vmatpush1.bf16.msra.mxu1 %v4519_v40  ;;  %v4612_v39 = vld [vmem:[%s6042_s3 + $0x80] sm:$0xff]   ;;  %v4613_v40 = vld [vmem:[%s6042_s3 + $0x48] sm:$0xff]  }
 0x158   :  { %2718 = vmatprep.subr.bf16.mxu0 %v4524_v41  ;;  %3005 = vmatprep.subr.bf16.mxu1 %v4527_v42  ;;  %v4614_v41 = vld [vmem:[%s6042_s3 + $0xc8] sm:$0xff]  }
 0x159   :  { %v4615_v42 = vld [vmem:[%s6042_s3 + $0x8] sm:$0xff]  }
 0x15b   :  { %2719 = vmatpush1.bf16.msra.mxu0 %v4522_v43  ;;  %3006 = vmatpush1.bf16.msra.mxu1 %v4525_v44  ;;  %v4616_v43 = vld [vmem:[%s6042_s3 + $0x88] sm:$0xff]   ;;  %v4617_v44 = vld [vmem:[%s6042_s3 + $0x50] sm:$0xff]  }
 0x15c   :  { %2720 = vmatprep.subr.bf16.mxu0 %v4530_v45  ;;  %3007 = vmatprep.subr.bf16.mxu1 %v4533_v46  ;;  %v4618_v45 = vld [vmem:[%s6042_s3 + $0xd0] sm:$0xff]  }
 0x15d   :  { %v4619_v46 = vld [vmem:[%s6042_s3 + $0x10] sm:$0xff]  }
 0x15f   :  { %2721 = vmatpush1.bf16.msra.mxu0 %v4528_v47  ;;  %3008 = vmatpush1.bf16.msra.mxu1 %v4531_v48  ;;  %v4620_v47 = vld [vmem:[%s6042_s3 + $0x90] sm:$0xff]   ;;  %v4621_v48 = vld [vmem:[%s6042_s3 + $0x58] sm:$0xff]  }
 0x160   :  { %2722 = vmatprep.subr.bf16.mxu0 %v4536_v49  ;;  %3009 = vmatprep.subr.bf16.mxu1 %v4539_v50  ;;  %v4622_v49 = vld [vmem:[%s6042_s3 + $0xd8] sm:$0xff]  }
 0x161   :  { %v4623_v50 = vld [vmem:[%s6042_s3 + $0x18] sm:$0xff]  }
 0x163   :  { %2723 = vmatpush1.bf16.msra.mxu0 %v4534_v51  ;;  %3010 = vmatpush1.bf16.msra.mxu1 %v4537_v52  ;;  %v4624_v51 = vld [vmem:[%s6042_s3 + $0x98] sm:$0xff]   ;;  %v4625_v52 = vld [vmem:[%s6042_s3 + $0x60] sm:$0xff]  }
 0x164   :  { %2724 = vmatprep.subr.bf16.mxu0 %v4542_v53  ;;  %3011 = vmatprep.subr.bf16.mxu1 %v4545_v54  ;;  %v4626_v53 = vld [vmem:[%s6042_s3 + $0xe0] sm:$0xff]  }
 0x165   :  { %v4627_v54 = vld [vmem:[%s6042_s3 + $0x20] sm:$0xff]  }
 0x167   :  { %2725 = vmatpush1.bf16.msra.mxu0 %v4540_v55  ;;  %3012 = vmatpush1.bf16.msra.mxu1 %v4543_v56  ;;  %v4628_v55 = vld [vmem:[%s6042_s3 + $0xa0] sm:$0xff]   ;;  %v4629_v56 = vld [vmem:[%s6042_s3 + $0x68] sm:$0xff]  }
 0x168   :  { %2726 = vmatprep.subr.bf16.mxu0 %v4548_v57  ;;  %3013 = vmatprep.subr.bf16.mxu1 %v4551_v58  ;;  %v4630_v57 = vld [vmem:[%s6042_s3 + $0xe8] sm:$0xff]  }
 0x169   :  { %v4631_v58 = vld [vmem:[%s6042_s3 + $0x28] sm:$0xff]  }
 0x16b   :  { %2727 = vmatpush1.bf16.msra.mxu0 %v4546_v59  ;;  %3014 = vmatpush1.bf16.msra.mxu1 %v4549_v60  ;;  %v4632_v59 = vld [vmem:[%s6042_s3 + $0xa8] sm:$0xff]   ;;  %v4633_v60 = vld [vmem:[%s6042_s3 + $0x70] sm:$0xff]  }
 0x16c   :  { %2728 = vmatprep.subr.bf16.mxu0 %v4554_v61  ;;  %3015 = vmatprep.subr.bf16.mxu1 %v4557_v62  ;;  %v4634_v61 = vld [vmem:[%s6042_s3 + $0xf0] sm:$0xff]  }
 0x16d   :  { %v4635_v62 = vld [vmem:[%s6042_s3 + $0x30] sm:$0xff]  }
 0x16f   :  { %2729 = vmatpush1.bf16.msra.mxu0 %v4552_v63  ;;  %3016 = vmatpush1.bf16.msra.mxu1 %v4555_v0  ;;  %v4636_v63 = vld [vmem:[%s6042_s3 + $0xb0] sm:$0xff]   ;;  %v4637_v0 = vld [vmem:[%s6042_s3 + $0x78] sm:$0xff]  }
 0x170   :  { %2730 = vmatprep.subr.bf16.mxu0 %v4560_v1  ;;  %3017 = vmatprep.subr.bf16.mxu1 %v4563_v2  ;;  %v4638_v1 = vld [vmem:[%s6042_s3 + $0xf8] sm:$0xff]  }
 0x171   :  { %v4639_v2 = vld [vmem:[%s6042_s3 + $0x38] sm:$0xff]  }
 0x173   :  { %2731 = vmatpush1.bf16.msra.mxu0 %v4558_v3  ;;  %3018 = vmatpush1.bf16.msra.mxu1 %v4561_v4  ;;  %v4640_v3 = vld [vmem:[%s6042_s3 + $0xb8] sm:$0xff]   ;;  %v432_v4 = vlaneseq }
 0x174   :  { %2732 = vmatprep.subr.bf16.mxu0 %v4566_v5  ;;  %3019 = vmatprep.subr.bf16.mxu1 %v4569_v6 }
 0x175   :  { %v433_v5 = vshrl.u32 %v432_v4, 7 }
 0x177   :  { %2733 = vmatpush1.bf16.msra.mxu0 %v4564_v7  ;;  %3020 = vmatpush1.bf16.msra.mxu1 %v4567_v8  ;;  %v434_v6 = vsub.s32 0, %v433_v5  ;;  %v442_v7 = vsub.s32 2, %v433_v5  ;;  %v430_v8 = vld [vmem:[%s6043_s2] sm:$0xf] }
 0x178   :  { %2734 = vmatprep.subr.bf16.mxu0 %v4572_v9  ;;  %3021 = vmatprep.subr.bf16.mxu1 %v4575_v10  ;;  %v438_v9 = vsub.s32 1, %v433_v5  ;;  %v446_v10 = vsub.s32 3, %v433_v5 }
 0x17b   :  { %2735 = vmatpush1.bf16.msra.mxu0 %v4570_v12  ;;  %3022 = vmatpush1.bf16.msra.mxu1 %v4573_v13  ;;  %v435_v12 = vrot.slane %v430_v8, %v434_v6  ;;  %v443_v13 = vrot.slane %v430_v8, %v442_v7 }
 0x17c   :  { %2736 = vmatprep.subr.bf16.mxu0 %v4578_v15  ;;  %3023 = vmatprep.subr.bf16.mxu1 %v4581_v11  ;;  %v439_v15 = vrot.slane %v430_v8, %v438_v9  ;;  %v447_v11 = vrot.slane %v430_v8, %v446_v10 }
 0x17f   :  { %2737 = vmatpush1.bf16.msra.mxu0 %v4576_v17  ;;  %3024 = vmatpush1.bf16.msra.mxu1 %v4579_v18 }
 0x180   :  { %2747 = vmatprep.subr.bf16.mxu0 %v4586_v19  ;;  %3034 = vmatprep.subr.bf16.mxu1 %v4589_v20 }
 0x182   :  { %2739 = vmatmul.mubr.bf16.vlgmr.msra.gmra.mrb[0].mxu0 %v3461_v16  ;;  %3026 = vmatmul.mubr.bf16.vlgmr.msra.gmra.mrb[0].mxu1 %v3461_v16 }
 0x183   :  { %2748 = vmatpush1.bf16.msra.mxu0 %v4584_v21  ;;  %3035 = vmatpush1.bf16.msra.mxu1 %v4587_v22 }
 0x184   :  { %2749 = vmatprep.subr.bf16.mxu0 %v4592_v23  ;;  %3036 = vmatprep.subr.bf16.mxu1 %v4595_v14 }
 0x185   :  { %2779 = vmatprep.mubr.bf16.mxu0 %v4645_v28  ;;  %3066 = vmatprep.mubr.bf16.mxu1 %v4645_v28 }
 0x187   :  { %2750 = vmatpush1.bf16.msra.mxu0 %v4590_v24  ;;  %3037 = vmatpush1.bf16.msra.mxu1 %v4593_v25 }
 0x188   :  { %2751 = vmatprep.subr.bf16.mxu0 %v4598_v26  ;;  %3038 = vmatprep.subr.bf16.mxu1 %v4601_v27 }
 0x18b   :  { %2752 = vmatpush1.bf16.msra.mxu0 %v4596_v29  ;;  %3039 = vmatpush1.bf16.msra.mxu1 %v4599_v30 }
 0x18c   :  { %2753 = vmatprep.subr.bf16.mxu0 %v4604_v31  ;;  %3040 = vmatprep.subr.bf16.mxu1 %v4607_v32 }
 0x18f   :  { %2754 = vmatpush1.bf16.msra.mxu0 %v4602_v33  ;;  %3041 = vmatpush1.bf16.msra.mxu1 %v4605_v34 }
 0x190   :  { %3899 = vmatprep.subr.bf16.mxu0 %v4609_v35  ;;  %3921 = vmatprep.subr.bf16.mxu1 %v4610_v36 }
 0x192   :  { %3864 = vmatmul.mubr.msk.bf16.vlgmr.msra.gmra.mrb[0].mxu0 %vm2497_vm0, %v4608_v37  ;;  %3865 = vmatmul.mubr.msk.bf16.vlgmr.msra.gmra.mrb[0].mxu1 %vm2497_vm0, %v4608_v37  ;;  %v3866_v37 = vld [vmem:[%s6044_s4] ss:$0 sm:$0xff] }
 0x193   :  { %3900 = vmatpush3.bf16.msra.mxu0 %v4611_v38  ;;  %3922 = vmatpush3.bf16.msra.mxu1 %v4612_v39 }
 0x194   :  { %3901 = vmatprep.subr.bf16.mxu0 %v4613_v40  ;;  %3923 = vmatprep.subr.bf16.mxu1 %v4614_v41 }
 0x197   :  { %3902 = vmatpush3.bf16.msra.mxu0 %v4615_v42  ;;  %3924 = vmatpush3.bf16.msra.mxu1 %v4616_v43 }
 0x198   :  { %3903 = vmatprep.subr.bf16.mxu0 %v4617_v44  ;;  %3925 = vmatprep.subr.bf16.mxu1 %v4618_v45 }
 0x19b   :  { %3904 = vmatpush3.bf16.msra.mxu0 %v4619_v46  ;;  %3926 = vmatpush3.bf16.msra.mxu1 %v4620_v47  ;;  %v3429_v46 = vand.u32 127, %v432_v4 }
 0x19c   :  { %3905 = vmatprep.subr.bf16.mxu0 %v4621_v48  ;;  %3927 = vmatprep.subr.bf16.mxu1 %v4622_v49 }
 0x19d   :  { %vm3430_vm1 = vcmp.lt.s32.totalorder %v3429_v46, 10 }
 0x19f   :  { %3906 = vmatpush3.bf16.msra.mxu0 %v4623_v50  ;;  %3928 = vmatpush3.bf16.msra.mxu1 %v4624_v51 }
 0x1a0   :  { %3907 = vmatprep.subr.bf16.mxu0 %v4625_v52  ;;  %3929 = vmatprep.subr.bf16.mxu1 %v4626_v53 }
 0x1a3   :  { %3908 = vmatpush3.bf16.msra.mxu0 %v4627_v54  ;;  %3930 = vmatpush3.bf16.msra.mxu1 %v4628_v55 }
 0x1a4   :  { %3909 = vmatprep.subr.bf16.mxu0 %v4629_v56  ;;  %3931 = vmatprep.subr.bf16.mxu1 %v4630_v57 }
 0x1a7   :  { %3910 = vmatpush3.bf16.msra.mxu0 %v4631_v58  ;;  %3932 = vmatpush3.bf16.msra.mxu1 %v4632_v59 }
 0x1a8   :  { %3911 = vmatprep.subr.bf16.mxu0 %v4633_v60  ;;  %3933 = vmatprep.subr.bf16.mxu1 %v4634_v61 }
 0x1ab   :  { %3912 = vmatpush3.bf16.msra.mxu0 %v4635_v62  ;;  %3934 = vmatpush3.bf16.msra.mxu1 %v4636_v63 }
 0x1ac   :  { %3913 = vmatprep.subr.bf16.mxu0 %v4637_v0  ;;  %3935 = vmatprep.subr.bf16.mxu1 %v4638_v1 }
 0x1af   :  { %3914 = vmatpush3.bf16.msra.mxu0 %v4639_v2  ;;  %3936 = vmatpush3.bf16.msra.mxu1 %v4640_v3 }
 0x265   :  { %v2781_v17 = vpop.f32.mrb[0].mxu0  ;;  %v3068_v18 = vpop.f32.mrb[0].mxu1 }
 0x266   :  { %v3943_v19 = vadd.f32 %v2781_v17, %v435_v12  ;;  %v3945_v20 = vadd.f32 %v3068_v18, %v443_v13  ;;  %v2783_v16 = vpop.f32.mrb[1].mxu0  ;;  %v3070_v21 = vpop.f32.mrb[1].mxu1 }
 0x267   :  { %v3944_v22 = vadd.f32 %v2783_v16, %v439_v15  ;;  %v3946_v23 = vadd.f32 %v3070_v21, %v447_v11  ;;  %v2785_v14 = vpop.f32.mrb[2].mxu0  ;;  %v3072_v24 = vpop.f32.mrb[2].mxu1 }
 0x268   :  { %v3075_v25 = vmax.f32 %v3943_v19, 0.0  ;;  %v3077_v26 = vmax.f32 %v3945_v20, 0.0  ;;  %v2786_v27 = vpop.f32.mrb[3].mxu0  ;;  %v3073_v28 = vpop.f32.mrb[3].mxu1 }
 0x269   :  { %v3076_v29 = vmax.f32 %v3944_v22, 0.0  ;;  %v3078_v30 = vmax.f32 %v3946_v23, 0.0 }
 0x26a   :  { %v3079_v33 = vpack.c.bf16 %v3075_v25, %v3075_v25  ;;  %v3081_v34 = vpack.c.bf16 %v3077_v26, %v3077_v26 }
 0x26b   :  { %v3080_v31 = vpack.c.bf16 %v3076_v29, %v3076_v29  ;;  %v3082_v32 = vpack.c.bf16 %v3078_v30, %v3078_v30 }
 0x26d   :  { %3378 = vmatprep.mubr.bf16.mxu0 %v3080_v31  ;;  %3418 = vmatprep.mubr.bf16.mxu1 %v3082_v32 }
 0x26e   :  { %3379 = vmatmul.mubr.bf16.vlgmr.msra.gmra.mrb[4].mxu0 %v3079_v33  ;;  %3419 = vmatmul.mubr.bf16.vlgmr.msra.gmra.mrb[4].mxu1 %v3081_v34 }
 0x341   :  { %v3915_v35 = vpop.f32.mrb[4].mxu0  ;;  %v3937_v36 = vpop.f32.mrb[4].mxu1 }
 0x342   :  { %v3916_v38 = vpop.f32.mrb[5].mxu0  ;;  %v3938_v39 = vpop.f32.mrb[5].mxu1 }
 0x343   :  { %v3917_v40 = vadd.f32 %v3916_v38, %v3915_v35  ;;  %v3939_v41 = vadd.f32 %v3938_v39, %v3937_v36  ;;  %v3918_v42 = vpop.f32.mrb[6].mxu0  ;;  %v3940_v43 = vpop.f32.mrb[6].mxu1 }
 0x344   :  { %v3919_v44 = vpop.f32.mrb[7].mxu0  ;;  %v3941_v45 = vpop.f32.mrb[7].mxu1 }
 0x345   :  { %v3381_v47 = vadd.f32 %v3917_v40, %v3866_v37 }
 0x347   :  { %v3421_v48 = vadd.f32 %v3939_v41, %v3381_v47 }
 0x349   :  { %v3426_v49 = vmax.f32 %v3421_v48, 0.0 }
 0x34b   :  { %v3431_v50 = vsel %vm3430_vm1, %v3426_v49, -inf  ;;  %3427 = vst [vmem:[%s6045_s5] sm:$0xff] %v3426_v49 }
 0x34c   :  { %3432 = vmax.xlane.f32.xlu0 %v3431_v50 }
 0x3d9   :  { %v3433_v51 = vpop.xlane.xlu0 %3432 }
 0x3da   :  { %v3434_v52 = vsub.f32 %v3431_v50, %v3433_v51 }
 0x3dc   :  { %v3435_v53 = vmul.f32 1.442695, %v3434_v52 }
 0x3de   :  { %4641 = vpow2.f32 %v3435_v53 }
 0x3e8   :  { %v4642_v54 = vpop.eup %4641 }
 0x3e9   :  { %3437 = vadd.xlane.f32.xlu0 %v4642_v54 }
 0x476   :  { %v3438_v55 = vpop.xlane.xlu0 %3437 }
 0x477   :  { %4643 = vlog2.f32 %v3438_v55 }
 0x481   :  { %v4644_v56 = vpop.eup %4643 }
 0x482   :  { %v3440_v57 = vmul.f32 0.6931472, %v4644_v56 }
 0x484   :  { %v3441_v58 = vsub.f32 %v3434_v52, %v3440_v57 }
 0x486   :  { %3442 = vst [vmem:[%s6046_s6] sm:$0xff] %v3441_v58 }

</bundles_post_ra>
